<compile_context>
chip_gen: v7x
topology: tpu7x:2x2x1
jax: 0.10.0
libtpu: 0.0.40
codegen_flags: <defaults>
</compile_context>

<pallas_src>
import functools

import jax
import jax.numpy as jnp
import numpy as np
from jax.experimental import pallas as pl
from jax.experimental.pallas import tpu as pltpu


# ---------------------------------------------------------------------------
# Fused kernel: Bt images per grid step, everything resident in VMEM.
# Slab layout: row r = h*Bt + b_local ; lanes = w*C + c.
# ---------------------------------------------------------------------------
def _lenet_kernel(x_ref, a1_ref, b1_ref, sel1_ref,
                  a2_ref, b2_ref, sel2_ref,
                  wfc1_ref, bfc1_ref, wfc2_ref, bfc2_ref,
                  wout_ref, bout_ref, o_ref):
    f32 = jnp.float32
    bf16 = jnp.bfloat16
    Bt = x_ref.shape[1] // 28           # images in this grid step (static)

    def dot(a, b):
        return jnp.dot(a, b, preferred_element_type=f32)

    # input slab (28*Bt, 28), already bf16; rows r = h*Bt + b
    x = x_ref[0]

    # ---- conv1 (1->6, 5x5, valid) + bias + relu  -> (24*Bt, 144) -------------
    # c1[h*Bt+b] = sum_i x[(h+i)*Bt+b] @ A1[i]   (5 row-shifted slab matmuls)
    d = [dot(x[i * Bt:(i + 24) * Bt, :], a1_ref[i]) for i in range(5)]
    c1 = jnp.maximum(((d[0] + d[1]) + (d[2] + d[3])) + d[4] + b1_ref[...], 0.0)
    c1b = c1.astype(bf16)

    # ---- maxpool 2x2 #1 ------------------------------------------------------
    # W axis: one-hot column-selection matmuls; H axis: Bt-block-shifted max.
    wmax = jnp.maximum(dot(c1b, sel1_ref[0]), dot(c1b, sel1_ref[1]))   # (24*Bt, 72)
    rmax = jnp.maximum(wmax[:23 * Bt, :], wmax[Bt:, :])                # valid at even h
    rmaxb = rmax.astype(bf16)

    # ---- conv2 (6->12, 5x5, valid) + bias + relu -> (15*Bt, 96) --------------
    # results valid at rows r = 2*h2*Bt + b  (h2 in [0,8)); other rows unused.
    d = [dot(rmaxb[2 * i * Bt:(2 * i + 15) * Bt, :], a2_ref[i]) for i in range(5)]
    c2 = jnp.maximum(((d[0] + d[1]) + (d[2] + d[3])) + d[4] + b2_ref[...], 0.0)
    c2b = c2.astype(bf16)

    # ---- maxpool 2x2 #2 ------------------------------------------------------
    wmax2 = jnp.maximum(dot(c2b, sel2_ref[0]), dot(c2b, sel2_ref[1]))  # (15*Bt, 48)
    rmax2 = jnp.maximum(wmax2[:13 * Bt, :], wmax2[2 * Bt:, :])         # valid at blocks 0,4,8,12
    rmax2b = rmax2.astype(bf16)

    # ---- fc1 + relu  -> (Bt, 120) --------------------------------------------
    # per-image row hp2 of the pooled map sits at slab rows [4*hp2*Bt, 4*hp2*Bt+Bt);
    # the NCHW flatten permutation is folded into Wfc1 at init time.
    d = [dot(rmax2b[4 * h * Bt:(4 * h + 1) * Bt, :], wfc1_ref[h]) for h in range(4)]
    z1 = jnp.maximum((d[0] + d[1]) + (d[2] + d[3]) + bfc1_ref[...], 0.0)

    # ---- fc2 + relu, then out  -> (Bt, 10) ------------------------------------
    z2 = jnp.maximum(dot(z1.astype(bf16), wfc2_ref[...]) + bfc2_ref[...], 0.0)
    o_ref[...] = (dot(z2.astype(bf16), wout_ref[...]) + bout_ref[...]).astype(o_ref.dtype)


_VMEM_FULL = pl.BlockSpec(memory_space=pltpu.MemorySpace.VMEM)


def _fused_forward(x, prep, *, batch_tile=32):
    assert batch_tile % 8 == 0, "batch_tile must be a multiple of 8"
    B = x.shape[0]
    Bt = batch_tile
    G = -(-B // Bt)                      # ceil-div
    Bp = G * Bt

    x = x.astype(jnp.float32)
    if Bp != B:                          # pad batch to a multiple of the tile
        x = jnp.pad(x, ((0, Bp - B), (0, 0), (0, 0), (0, 0)))

    # (Bp,1,28,28) -> (G, 28*Bt, 28) slab, rows r = h*Bt + b_local, bf16 for MXU.
    xs = (x[:, 0]
          .reshape(G, Bt, 28, 28)
          .transpose(0, 2, 1, 3)
          .reshape(G, 28 * Bt, 28)
          .astype(jnp.bfloat16))

    out = pl.pallas_call(
        _lenet_kernel,
        out_shape=jax.ShapeDtypeStruct((Bp, 10), jnp.float32),
        grid=(G,),
        in_specs=[pl.BlockSpec((1, 28 * Bt, 28), lambda g: (g, 0, 0))]
                 + [_VMEM_FULL] * 12,
        out_specs=pl.BlockSpec((Bt, 10), lambda g: (g, 0)),
        compiler_params=pltpu.CompilerParams(
            dimension_semantics=("parallel",)),
    )(xs, prep["A1"], prep["b1"], prep["SEL1"],
      prep["A2"], prep["b2"], prep["SEL2"],
      prep["Wfc1"], prep["bfc1"], prep["Wfc2"], prep["bfc2"],
      prep["Wout"], prep["bout"])
    return out[:B]


network_forward = jax.jit(_fused_forward, static_argnames=("batch_tile",))


# ---------------------------------------------------------------------------
# One-time (init-time) weight preprocessing, hoisted out of the hot path.
# ---------------------------------------------------------------------------
def prepare_params(params):
    f32 = np.float32
    bf16 = jnp.bfloat16
    w1 = np.asarray(params["conv1_w"], f32)     # (6, 1, 5, 5)
    b1 = np.asarray(params["conv1_b"], f32)     # (6,)
    w2 = np.asarray(params["conv2_w"], f32)     # (12, 6, 5, 5)
    b2 = np.asarray(params["conv2_b"], f32)     # (12,)
    fc1w = np.asarray(params["fc1_w"], f32)     # (192, 120), (in, out)

    # conv1 as 5 row-shifted matmuls: A1[i][w_in, wo*6+co] = w1[co,0,i,w_in-wo]
    A1 = np.zeros((5, 28, 24 * 6), f32)
    for i in range(5):
        for wo in range(24):
            for j in range(5):
                A1[i, wo + j, wo * 6:wo * 6 + 6] = w1[:, 0, i, j]

    # conv2: A2[i][(wo+j)*6+c, wo*12+co] = w2[co,c,i,j]
    A2 = np.zeros((5, 72, 8 * 12), f32)
    for i in range(5):
        for wo in range(8):
            for j in range(5):
                for c in range(6):
                    A2[i, (wo + j) * 6 + c, wo * 12:wo * 12 + 12] = w2[:, c, i, j]

    # 2x2 pool, W axis only: one-hot even/odd column selectors (row axis is a
    # plain shifted max inside the kernel, no matrices needed).
    def col_pool_selectors(w_out, c):
        sel = np.zeros((2, 2 * w_out * c, w_out * c), f32)
        for par in range(2):
            for q in range(w_out):
                for ch in range(c):
                    sel[par, (2 * q + par) * c + ch, q * c + ch] = 1.0
        return sel

    SEL1 = col_pool_selectors(w_out=12, c=6)    # (2, 144, 72)
    SEL2 = col_pool_selectors(w_out=4, c=12)    # (2, 96, 48)

    # fc1 with the torch flatten permutation folded in:
    # torch flat index = c*16 + h*4 + w ; kernel layout = p2[h, w*12 + c]
    Wfc1 = np.zeros((4, 48, 120), f32)
    for h in range(4):
        for w in range(4):
            for c in range(12):
                Wfc1[h, w * 12 + c, :] = fc1w[c * 16 + h * 4 + w, :]

    return {
        "A1": jnp.asarray(A1, bf16),
        "b1": jnp.asarray(np.tile(b1, 24)[None, :]),            # (1, 144) f32
        "SEL1": jnp.asarray(SEL1, bf16),
        "A2": jnp.asarray(A2, bf16),
        "b2": jnp.asarray(np.tile(b2, 8)[None, :]),             # (1, 96) f32
        "SEL2": jnp.asarray(SEL2, bf16),
        "Wfc1": jnp.asarray(Wfc1, bf16),
        "bfc1": jnp.asarray(params["fc1_b"], jnp.float32).reshape(1, 120),
        "Wfc2": jnp.asarray(params["fc2_w"], bf16),
        "bfc2": jnp.asarray(params["fc2_b"], jnp.float32).reshape(1, 60),
        "Wout": jnp.asarray(params["out_w"], bf16),
        "bout": jnp.asarray(params["out_b"], jnp.float32).reshape(1, 10),
    }


# ---------------------------------------------------------------------------
# Parameter init (matches the PyTorch module's shapes) and pure-JAX reference.
# ---------------------------------------------------------------------------
def init_params(key):
    ks = jax.random.split(key, 10)

    def uni(k, shape, fan_in):
        bound = 1.0 / np.sqrt(fan_in)
        return jax.random.uniform(k, shape, jnp.float32, -bound, bound)

    return {
        "conv1_w": uni(ks[0], (6, 1, 5, 5), 1 * 5 * 5),
        "conv1_b": uni(ks[1], (6,), 1 * 5 * 5),
        "conv2_w": uni(ks[2], (12, 6, 5, 5), 6 * 5 * 5),
        "conv2_b": uni(ks[3], (12,), 6 * 5 * 5),
        "fc1_w":   uni(ks[4], (192, 120), 192),    # stored (in, out)
        "fc1_b":   uni(ks[5], (120,), 192),
        "fc2_w":   uni(ks[6], (120, 60), 120),
        "fc2_b":   uni(ks[7], (60,), 120),
        "out_w":   uni(ks[8], (60, 10), 60),
        "out_b":   uni(ks[9], (10,), 60),
    }


def ref_forward(x, p):
    def conv(x, w, b):
        y = jax.lax.conv_general_dilated(
            x, w, (1, 1), "VALID",
            dimension_numbers=("NCHW", "OIHW", "NCHW"))
        return jnp.maximum(y + b[None, :, None, None], 0.0)

    def pool(x):
        return jax.lax.reduce_window(x, -jnp.inf, jax.lax.max,
                                     (1, 1, 2, 2), (1, 1, 2, 2), "VALID")

    t = pool(conv(x, p["conv1_w"], p["conv1_b"]))
    t = pool(conv(t, p["conv2_w"], p["conv2_b"]))
    t = t.reshape(-1, 192)
    t = jnp.maximum(t @ p["fc1_w"] + p["fc1_b"], 0.0)
    t = jnp.maximum(t @ p["fc2_w"] + p["fc2_b"], 0.0)
    return t @ p["out_w"] + p["out_b"]


if __name__ == "__main__":
    key = jax.random.PRNGKey(0)
    pkey, xkey = jax.random.split(key)
    params = init_params(pkey)
    prep = prepare_params(params)          # runs once, outside the hot path

    # Spatial size must be 28 so the flatten to 12*4*4 matches the module.
    B = 64
    x = jax.random.normal(xkey, (B, 1, 28, 28), dtype=jnp.float32)

    out = network_forward(x, prep, batch_tile=32)   # grid of 2 steps, 32 imgs each
    out = jax.block_until_ready(out)
    assert out.shape == (B, 10) and out.dtype == jnp.float32

    ref = jax.block_until_ready(ref_forward(x, params))
    np.testing.assert_allclose(np.asarray(out), np.asarray(ref),
                               rtol=3e-2, atol=3e-2)

    print("KERNEL_OK")
</pallas_src>

<mosaic_0001>
module attributes {stable_mosaic.version = 11 : i64} {
  func.func @_lenet_kernel(%arg0: i32, %arg1: memref<1x896x28xbf16, #tpu.memory_space<vmem>>, %arg2: memref<5x28x144xbf16, #tpu.memory_space<vmem>>, %arg3: memref<1x144xf32, #tpu.memory_space<vmem>>, %arg4: memref<2x144x72xbf16, #tpu.memory_space<vmem>>, %arg5: memref<5x72x96xbf16, #tpu.memory_space<vmem>>, %arg6: memref<1x96xf32, #tpu.memory_space<vmem>>, %arg7: memref<2x96x48xbf16, #tpu.memory_space<vmem>>, %arg8: memref<4x48x120xbf16, #tpu.memory_space<vmem>>, %arg9: memref<1x120xf32, #tpu.memory_space<vmem>>, %arg10: memref<120x60xbf16, #tpu.memory_space<vmem>>, %arg11: memref<1x60xf32, #tpu.memory_space<vmem>>, %arg12: memref<60x10xbf16, #tpu.memory_space<vmem>>, %arg13: memref<1x10xf32, #tpu.memory_space<vmem>>, %arg14: memref<32x10xf32, #tpu.memory_space<vmem>>) attributes {dimension_semantics = [#tpu.dimension_semantics<parallel>], iteration_bounds = array<i64: 2>, scalar_prefetch = 0 : i64, scratch_operands = 0 : i64, tpu.core_type = #tpu.core_type<tc>, window_params = [{transform_indices = @transform_0, window_bounds = array<i64: 1, 896, 28>}, {pipeline_mode = #tpu.pipeline_mode<synchronous>, transform_indices = @transform_1, window_bounds = array<i64: 5, 28, 144>}, {pipeline_mode = #tpu.pipeline_mode<synchronous>, transform_indices = @transform_2, window_bounds = array<i64: 1, 144>}, {pipeline_mode = #tpu.pipeline_mode<synchronous>, transform_indices = @transform_3, window_bounds = array<i64: 2, 144, 72>}, {pipeline_mode = #tpu.pipeline_mode<synchronous>, transform_indices = @transform_4, window_bounds = array<i64: 5, 72, 96>}, {pipeline_mode = #tpu.pipeline_mode<synchronous>, transform_indices = @transform_5, window_bounds = array<i64: 1, 96>}, {pipeline_mode = #tpu.pipeline_mode<synchronous>, transform_indices = @transform_6, window_bounds = array<i64: 2, 96, 48>}, {pipeline_mode = #tpu.pipeline_mode<synchronous>, transform_indices = @transform_7, window_bounds = array<i64: 4, 48, 120>}, {pipeline_mode = #tpu.pipeline_mode<synchronous>, transform_indices = @transform_8, window_bounds = array<i64: 1, 120>}, {pipeline_mode = #tpu.pipeline_mode<synchronous>, transform_indices = @transform_9, window_bounds = array<i64: 120, 60>}, {pipeline_mode = #tpu.pipeline_mode<synchronous>, transform_indices = @transform_10, window_bounds = array<i64: 1, 60>}, {pipeline_mode = #tpu.pipeline_mode<synchronous>, transform_indices = @transform_11, window_bounds = array<i64: 60, 10>}, {pipeline_mode = #tpu.pipeline_mode<synchronous>, transform_indices = @transform_12, window_bounds = array<i64: 1, 10>}, {transform_indices = @transform_13, window_bounds = array<i64: 32, 10>}]} {
    %c0 = arith.constant 0 : index
    %c0_0 = arith.constant 0 : index
    %c0_1 = arith.constant 0 : index
    %0 = vector.load %arg1[%c0, %c0_0, %c0_1] : memref<1x896x28xbf16, #tpu.memory_space<vmem>>, vector<1x896x28xbf16>
    %1 = vector.shape_cast %0 : vector<1x896x28xbf16> to vector<896x28xbf16>
    %2 = vector.extract_strided_slice %1 {offsets = [0, 0], sizes = [768, 28], strides = [1, 1]} : vector<896x28xbf16> to vector<768x28xbf16>
    %c0_2 = arith.constant 0 : index
    %c0_3 = arith.constant 0 : index
    %c0_4 = arith.constant 0 : index
    %3 = vector.load %arg2[%c0_2, %c0_3, %c0_4] : memref<5x28x144xbf16, #tpu.memory_space<vmem>>, vector<1x28x144xbf16>
    %4 = vector.shape_cast %3 : vector<1x28x144xbf16> to vector<28x144xbf16>
    %cst = arith.constant dense<0.000000e+00> : vector<768x144xf32>
    %5 = tpu.matmul %2, %4, %cst {dimension_numbers = #tpu.dot_dimension_numbers<[1], [0], [0], [1], [0, 0, 1, 1], [], []>} : vector<768x28xbf16>, vector<28x144xbf16>, vector<768x144xf32> -> vector<768x144xf32>
    %6 = vector.extract_strided_slice %1 {offsets = [32, 0], sizes = [768, 28], strides = [1, 1]} : vector<896x28xbf16> to vector<768x28xbf16>
    %c1 = arith.constant 1 : index
    %c0_5 = arith.constant 0 : index
    %c0_6 = arith.constant 0 : index
    %7 = vector.load %arg2[%c1, %c0_5, %c0_6] : memref<5x28x144xbf16, #tpu.memory_space<vmem>>, vector<1x28x144xbf16>
    %8 = vector.shape_cast %7 : vector<1x28x144xbf16> to vector<28x144xbf16>
    %cst_7 = arith.constant dense<0.000000e+00> : vector<768x144xf32>
    %9 = tpu.matmul %6, %8, %cst_7 {dimension_numbers = #tpu.dot_dimension_numbers<[1], [0], [0], [1], [0, 0, 1, 1], [], []>} : vector<768x28xbf16>, vector<28x144xbf16>, vector<768x144xf32> -> vector<768x144xf32>
    %10 = vector.extract_strided_slice %1 {offsets = [64, 0], sizes = [768, 28], strides = [1, 1]} : vector<896x28xbf16> to vector<768x28xbf16>
    %c2 = arith.constant 2 : index
    %c0_8 = arith.constant 0 : index
    %c0_9 = arith.constant 0 : index
    %11 = vector.load %arg2[%c2, %c0_8, %c0_9] : memref<5x28x144xbf16, #tpu.memory_space<vmem>>, vector<1x28x144xbf16>
    %12 = vector.shape_cast %11 : vector<1x28x144xbf16> to vector<28x144xbf16>
    %cst_10 = arith.constant dense<0.000000e+00> : vector<768x144xf32>
    %13 = tpu.matmul %10, %12, %cst_10 {dimension_numbers = #tpu.dot_dimension_numbers<[1], [0], [0], [1], [0, 0, 1, 1], [], []>} : vector<768x28xbf16>, vector<28x144xbf16>, vector<768x144xf32> -> vector<768x144xf32>
    %14 = vector.extract_strided_slice %1 {offsets = [96, 0], sizes = [768, 28], strides = [1, 1]} : vector<896x28xbf16> to vector<768x28xbf16>
    %c3 = arith.constant 3 : index
    %c0_11 = arith.constant 0 : index
    %c0_12 = arith.constant 0 : index
    %15 = vector.load %arg2[%c3, %c0_11, %c0_12] : memref<5x28x144xbf16, #tpu.memory_space<vmem>>, vector<1x28x144xbf16>
    %16 = vector.shape_cast %15 : vector<1x28x144xbf16> to vector<28x144xbf16>
    %cst_13 = arith.constant dense<0.000000e+00> : vector<768x144xf32>
    %17 = tpu.matmul %14, %16, %cst_13 {dimension_numbers = #tpu.dot_dimension_numbers<[1], [0], [0], [1], [0, 0, 1, 1], [], []>} : vector<768x28xbf16>, vector<28x144xbf16>, vector<768x144xf32> -> vector<768x144xf32>
    %18 = vector.extract_strided_slice %1 {offsets = [128, 0], sizes = [768, 28], strides = [1, 1]} : vector<896x28xbf16> to vector<768x28xbf16>
    %c4 = arith.constant 4 : index
    %c0_14 = arith.constant 0 : index
    %c0_15 = arith.constant 0 : index
    %19 = vector.load %arg2[%c4, %c0_14, %c0_15] : memref<5x28x144xbf16, #tpu.memory_space<vmem>>, vector<1x28x144xbf16>
    %20 = vector.shape_cast %19 : vector<1x28x144xbf16> to vector<28x144xbf16>
    %cst_16 = arith.constant dense<0.000000e+00> : vector<768x144xf32>
    %21 = tpu.matmul %18, %20, %cst_16 {dimension_numbers = #tpu.dot_dimension_numbers<[1], [0], [0], [1], [0, 0, 1, 1], [], []>} : vector<768x28xbf16>, vector<28x144xbf16>, vector<768x144xf32> -> vector<768x144xf32>
    %22 = arith.addf %5, %9 : vector<768x144xf32>
    %23 = arith.addf %13, %17 : vector<768x144xf32>
    %24 = arith.addf %22, %23 : vector<768x144xf32>
    %25 = arith.addf %24, %21 : vector<768x144xf32>
    %c0_17 = arith.constant 0 : index
    %c0_18 = arith.constant 0 : index
    %26 = vector.load %arg3[%c0_17, %c0_18] : memref<1x144xf32, #tpu.memory_space<vmem>>, vector<1x144xf32>
    %27 = vector.broadcast %26 : vector<1x144xf32> to vector<768x144xf32>
    %28 = arith.addf %25, %27 : vector<768x144xf32>
    %cst_19 = arith.constant 0.000000e+00 : f32
    %29 = vector.broadcast %cst_19 : f32 to vector<768x144xf32>
    %30 = arith.maximumf %28, %29 : vector<768x144xf32>
    %31 = arith.truncf %30 : vector<768x144xf32> to vector<768x144xbf16>
    %c0_20 = arith.constant 0 : index
    %c0_21 = arith.constant 0 : index
    %c0_22 = arith.constant 0 : index
    %32 = vector.load %arg4[%c0_20, %c0_21, %c0_22] : memref<2x144x72xbf16, #tpu.memory_space<vmem>>, vector<1x144x72xbf16>
    %33 = vector.shape_cast %32 : vector<1x144x72xbf16> to vector<144x72xbf16>
    %cst_23 = arith.constant dense<0.000000e+00> : vector<768x72xf32>
    %34 = tpu.matmul %31, %33, %cst_23 {dimension_numbers = #tpu.dot_dimension_numbers<[1], [0], [0], [1], [0, 0, 1, 1], [], []>} : vector<768x144xbf16>, vector<144x72xbf16>, vector<768x72xf32> -> vector<768x72xf32>
    %c1_24 = arith.constant 1 : index
    %c0_25 = arith.constant 0 : index
    %c0_26 = arith.constant 0 : index
    %35 = vector.load %arg4[%c1_24, %c0_25, %c0_26] : memref<2x144x72xbf16, #tpu.memory_space<vmem>>, vector<1x144x72xbf16>
    %36 = vector.shape_cast %35 : vector<1x144x72xbf16> to vector<144x72xbf16>
    %cst_27 = arith.constant dense<0.000000e+00> : vector<768x72xf32>
    %37 = tpu.matmul %31, %36, %cst_27 {dimension_numbers = #tpu.dot_dimension_numbers<[1], [0], [0], [1], [0, 0, 1, 1], [], []>} : vector<768x144xbf16>, vector<144x72xbf16>, vector<768x72xf32> -> vector<768x72xf32>
    %38 = arith.maximumf %34, %37 : vector<768x72xf32>
    %39 = vector.extract_strided_slice %38 {offsets = [0, 0], sizes = [736, 72], strides = [1, 1]} : vector<768x72xf32> to vector<736x72xf32>
    %40 = vector.extract_strided_slice %38 {offsets = [32, 0], sizes = [736, 72], strides = [1, 1]} : vector<768x72xf32> to vector<736x72xf32>
    %41 = arith.maximumf %39, %40 : vector<736x72xf32>
    %42 = arith.truncf %41 : vector<736x72xf32> to vector<736x72xbf16>
    %43 = vector.extract_strided_slice %42 {offsets = [0, 0], sizes = [480, 72], strides = [1, 1]} : vector<736x72xbf16> to vector<480x72xbf16>
    %c0_28 = arith.constant 0 : index
    %c0_29 = arith.constant 0 : index
    %c0_30 = arith.constant 0 : index
    %44 = vector.load %arg5[%c0_28, %c0_29, %c0_30] : memref<5x72x96xbf16, #tpu.memory_space<vmem>>, vector<1x72x96xbf16>
    %45 = vector.shape_cast %44 : vector<1x72x96xbf16> to vector<72x96xbf16>
    %cst_31 = arith.constant dense<0.000000e+00> : vector<480x96xf32>
    %46 = tpu.matmul %43, %45, %cst_31 {dimension_numbers = #tpu.dot_dimension_numbers<[1], [0], [0], [1], [0, 0, 1, 1], [], []>} : vector<480x72xbf16>, vector<72x96xbf16>, vector<480x96xf32> -> vector<480x96xf32>
    %47 = vector.extract_strided_slice %42 {offsets = [64, 0], sizes = [480, 72], strides = [1, 1]} : vector<736x72xbf16> to vector<480x72xbf16>
    %c1_32 = arith.constant 1 : index
    %c0_33 = arith.constant 0 : index
    %c0_34 = arith.constant 0 : index
    %48 = vector.load %arg5[%c1_32, %c0_33, %c0_34] : memref<5x72x96xbf16, #tpu.memory_space<vmem>>, vector<1x72x96xbf16>
    %49 = vector.shape_cast %48 : vector<1x72x96xbf16> to vector<72x96xbf16>
    %cst_35 = arith.constant dense<0.000000e+00> : vector<480x96xf32>
    %50 = tpu.matmul %47, %49, %cst_35 {dimension_numbers = #tpu.dot_dimension_numbers<[1], [0], [0], [1], [0, 0, 1, 1], [], []>} : vector<480x72xbf16>, vector<72x96xbf16>, vector<480x96xf32> -> vector<480x96xf32>
    %51 = vector.extract_strided_slice %42 {offsets = [128, 0], sizes = [480, 72], strides = [1, 1]} : vector<736x72xbf16> to vector<480x72xbf16>
    %c2_36 = arith.constant 2 : index
    %c0_37 = arith.constant 0 : index
    %c0_38 = arith.constant 0 : index
    %52 = vector.load %arg5[%c2_36, %c0_37, %c0_38] : memref<5x72x96xbf16, #tpu.memory_space<vmem>>, vector<1x72x96xbf16>
    %53 = vector.shape_cast %52 : vector<1x72x96xbf16> to vector<72x96xbf16>
    %cst_39 = arith.constant dense<0.000000e+00> : vector<480x96xf32>
    %54 = tpu.matmul %51, %53, %cst_39 {dimension_numbers = #tpu.dot_dimension_numbers<[1], [0], [0], [1], [0, 0, 1, 1], [], []>} : vector<480x72xbf16>, vector<72x96xbf16>, vector<480x96xf32> -> vector<480x96xf32>
    %55 = vector.extract_strided_slice %42 {offsets = [192, 0], sizes = [480, 72], strides = [1, 1]} : vector<736x72xbf16> to vector<480x72xbf16>
    %c3_40 = arith.constant 3 : index
    %c0_41 = arith.constant 0 : index
    %c0_42 = arith.constant 0 : index
    %56 = vector.load %arg5[%c3_40, %c0_41, %c0_42] : memref<5x72x96xbf16, #tpu.memory_space<vmem>>, vector<1x72x96xbf16>
    %57 = vector.shape_cast %56 : vector<1x72x96xbf16> to vector<72x96xbf16>
    %cst_43 = arith.constant dense<0.000000e+00> : vector<480x96xf32>
    %58 = tpu.matmul %55, %57, %cst_43 {dimension_numbers = #tpu.dot_dimension_numbers<[1], [0], [0], [1], [0, 0, 1, 1], [], []>} : vector<480x72xbf16>, vector<72x96xbf16>, vector<480x96xf32> -> vector<480x96xf32>
    %59 = vector.extract_strided_slice %42 {offsets = [256, 0], sizes = [480, 72], strides = [1, 1]} : vector<736x72xbf16> to vector<480x72xbf16>
    %c4_44 = arith.constant 4 : index
    %c0_45 = arith.constant 0 : index
    %c0_46 = arith.constant 0 : index
    %60 = vector.load %arg5[%c4_44, %c0_45, %c0_46] : memref<5x72x96xbf16, #tpu.memory_space<vmem>>, vector<1x72x96xbf16>
    %61 = vector.shape_cast %60 : vector<1x72x96xbf16> to vector<72x96xbf16>
    %cst_47 = arith.constant dense<0.000000e+00> : vector<480x96xf32>
    %62 = tpu.matmul %59, %61, %cst_47 {dimension_numbers = #tpu.dot_dimension_numbers<[1], [0], [0], [1], [0, 0, 1, 1], [], []>} : vector<480x72xbf16>, vector<72x96xbf16>, vector<480x96xf32> -> vector<480x96xf32>
    %63 = arith.addf %46, %50 : vector<480x96xf32>
    %64 = arith.addf %54, %58 : vector<480x96xf32>
    %65 = arith.addf %63, %64 : vector<480x96xf32>
    %66 = arith.addf %65, %62 : vector<480x96xf32>
    %c0_48 = arith.constant 0 : index
    %c0_49 = arith.constant 0 : index
    %67 = vector.load %arg6[%c0_48, %c0_49] : memref<1x96xf32, #tpu.memory_space<vmem>>, vector<1x96xf32>
    %68 = vector.broadcast %67 : vector<1x96xf32> to vector<480x96xf32>
    %69 = arith.addf %66, %68 : vector<480x96xf32>
    %cst_50 = arith.constant 0.000000e+00 : f32
    %70 = vector.broadcast %cst_50 : f32 to vector<480x96xf32>
    %71 = arith.maximumf %69, %70 : vector<480x96xf32>
    %72 = arith.truncf %71 : vector<480x96xf32> to vector<480x96xbf16>
    %c0_51 = arith.constant 0 : index
    %c0_52 = arith.constant 0 : index
    %c0_53 = arith.constant 0 : index
    %73 = vector.load %arg7[%c0_51, %c0_52, %c0_53] : memref<2x96x48xbf16, #tpu.memory_space<vmem>>, vector<1x96x48xbf16>
    %74 = vector.shape_cast %73 : vector<1x96x48xbf16> to vector<96x48xbf16>
    %cst_54 = arith.constant dense<0.000000e+00> : vector<480x48xf32>
    %75 = tpu.matmul %72, %74, %cst_54 {dimension_numbers = #tpu.dot_dimension_numbers<[1], [0], [0], [1], [0, 0, 1, 1], [], []>} : vector<480x96xbf16>, vector<96x48xbf16>, vector<480x48xf32> -> vector<480x48xf32>
    %c1_55 = arith.constant 1 : index
    %c0_56 = arith.constant 0 : index
    %c0_57 = arith.constant 0 : index
    %76 = vector.load %arg7[%c1_55, %c0_56, %c0_57] : memref<2x96x48xbf16, #tpu.memory_space<vmem>>, vector<1x96x48xbf16>
    %77 = vector.shape_cast %76 : vector<1x96x48xbf16> to vector<96x48xbf16>
    %cst_58 = arith.constant dense<0.000000e+00> : vector<480x48xf32>
    %78 = tpu.matmul %72, %77, %cst_58 {dimension_numbers = #tpu.dot_dimension_numbers<[1], [0], [0], [1], [0, 0, 1, 1], [], []>} : vector<480x96xbf16>, vector<96x48xbf16>, vector<480x48xf32> -> vector<480x48xf32>
    %79 = arith.maximumf %75, %78 : vector<480x48xf32>
    %80 = vector.extract_strided_slice %79 {offsets = [0, 0], sizes = [416, 48], strides = [1, 1]} : vector<480x48xf32> to vector<416x48xf32>
    %81 = vector.extract_strided_slice %79 {offsets = [64, 0], sizes = [416, 48], strides = [1, 1]} : vector<480x48xf32> to vector<416x48xf32>
    %82 = arith.maximumf %80, %81 : vector<416x48xf32>
    %83 = arith.truncf %82 : vector<416x48xf32> to vector<416x48xbf16>
    %84 = vector.extract_strided_slice %83 {offsets = [0, 0], sizes = [32, 48], strides = [1, 1]} : vector<416x48xbf16> to vector<32x48xbf16>
    %c0_59 = arith.constant 0 : index
    %c0_60 = arith.constant 0 : index
    %c0_61 = arith.constant 0 : index
    %85 = vector.load %arg8[%c0_59, %c0_60, %c0_61] : memref<4x48x120xbf16, #tpu.memory_space<vmem>>, vector<1x48x120xbf16>
    %86 = vector.shape_cast %85 : vector<1x48x120xbf16> to vector<48x120xbf16>
    %cst_62 = arith.constant dense<0.000000e+00> : vector<32x120xf32>
    %87 = tpu.matmul %84, %86, %cst_62 {dimension_numbers = #tpu.dot_dimension_numbers<[1], [0], [0], [1], [0, 0, 1, 1], [], []>} : vector<32x48xbf16>, vector<48x120xbf16>, vector<32x120xf32> -> vector<32x120xf32>
    %88 = vector.extract_strided_slice %83 {offsets = [128, 0], sizes = [32, 48], strides = [1, 1]} : vector<416x48xbf16> to vector<32x48xbf16>
    %c1_63 = arith.constant 1 : index
    %c0_64 = arith.constant 0 : index
    %c0_65 = arith.constant 0 : index
    %89 = vector.load %arg8[%c1_63, %c0_64, %c0_65] : memref<4x48x120xbf16, #tpu.memory_space<vmem>>, vector<1x48x120xbf16>
    %90 = vector.shape_cast %89 : vector<1x48x120xbf16> to vector<48x120xbf16>
    %cst_66 = arith.constant dense<0.000000e+00> : vector<32x120xf32>
    %91 = tpu.matmul %88, %90, %cst_66 {dimension_numbers = #tpu.dot_dimension_numbers<[1], [0], [0], [1], [0, 0, 1, 1], [], []>} : vector<32x48xbf16>, vector<48x120xbf16>, vector<32x120xf32> -> vector<32x120xf32>
    %92 = vector.extract_strided_slice %83 {offsets = [256, 0], sizes = [32, 48], strides = [1, 1]} : vector<416x48xbf16> to vector<32x48xbf16>
    %c2_67 = arith.constant 2 : index
    %c0_68 = arith.constant 0 : index
    %c0_69 = arith.constant 0 : index
    %93 = vector.load %arg8[%c2_67, %c0_68, %c0_69] : memref<4x48x120xbf16, #tpu.memory_space<vmem>>, vector<1x48x120xbf16>
    %94 = vector.shape_cast %93 : vector<1x48x120xbf16> to vector<48x120xbf16>
    %cst_70 = arith.constant dense<0.000000e+00> : vector<32x120xf32>
    %95 = tpu.matmul %92, %94, %cst_70 {dimension_numbers = #tpu.dot_dimension_numbers<[1], [0], [0], [1], [0, 0, 1, 1], [], []>} : vector<32x48xbf16>, vector<48x120xbf16>, vector<32x120xf32> -> vector<32x120xf32>
    %96 = vector.extract_strided_slice %83 {offsets = [384, 0], sizes = [32, 48], strides = [1, 1]} : vector<416x48xbf16> to vector<32x48xbf16>
    %c3_71 = arith.constant 3 : index
    %c0_72 = arith.constant 0 : index
    %c0_73 = arith.constant 0 : index
    %97 = vector.load %arg8[%c3_71, %c0_72, %c0_73] : memref<4x48x120xbf16, #tpu.memory_space<vmem>>, vector<1x48x120xbf16>
    %98 = vector.shape_cast %97 : vector<1x48x120xbf16> to vector<48x120xbf16>
    %cst_74 = arith.constant dense<0.000000e+00> : vector<32x120xf32>
    %99 = tpu.matmul %96, %98, %cst_74 {dimension_numbers = #tpu.dot_dimension_numbers<[1], [0], [0], [1], [0, 0, 1, 1], [], []>} : vector<32x48xbf16>, vector<48x120xbf16>, vector<32x120xf32> -> vector<32x120xf32>
    %100 = arith.addf %87, %91 : vector<32x120xf32>
    %101 = arith.addf %95, %99 : vector<32x120xf32>
    %102 = arith.addf %100, %101 : vector<32x120xf32>
    %c0_75 = arith.constant 0 : index
    %c0_76 = arith.constant 0 : index
    %103 = vector.load %arg9[%c0_75, %c0_76] : memref<1x120xf32, #tpu.memory_space<vmem>>, vector<1x120xf32>
    %104 = vector.broadcast %103 : vector<1x120xf32> to vector<32x120xf32>
    %105 = arith.addf %102, %104 : vector<32x120xf32>
    %cst_77 = arith.constant 0.000000e+00 : f32
    %106 = vector.broadcast %cst_77 : f32 to vector<32x120xf32>
    %107 = arith.maximumf %105, %106 : vector<32x120xf32>
    %108 = arith.truncf %107 : vector<32x120xf32> to vector<32x120xbf16>
    %c0_78 = arith.constant 0 : index
    %c0_79 = arith.constant 0 : index
    %109 = vector.load %arg10[%c0_78, %c0_79] : memref<120x60xbf16, #tpu.memory_space<vmem>>, vector<120x60xbf16>
    %cst_80 = arith.constant dense<0.000000e+00> : vector<32x60xf32>
    %110 = tpu.matmul %108, %109, %cst_80 {dimension_numbers = #tpu.dot_dimension_numbers<[1], [0], [0], [1], [0, 0, 1, 1], [], []>} : vector<32x120xbf16>, vector<120x60xbf16>, vector<32x60xf32> -> vector<32x60xf32>
    %c0_81 = arith.constant 0 : index
    %c0_82 = arith.constant 0 : index
    %111 = vector.load %arg11[%c0_81, %c0_82] : memref<1x60xf32, #tpu.memory_space<vmem>>, vector<1x60xf32>
    %112 = vector.broadcast %111 : vector<1x60xf32> to vector<32x60xf32>
    %113 = arith.addf %110, %112 : vector<32x60xf32>
    %cst_83 = arith.constant 0.000000e+00 : f32
    %114 = vector.broadcast %cst_83 : f32 to vector<32x60xf32>
    %115 = arith.maximumf %113, %114 : vector<32x60xf32>
    %116 = arith.truncf %115 : vector<32x60xf32> to vector<32x60xbf16>
    %c0_84 = arith.constant 0 : index
    %c0_85 = arith.constant 0 : index
    %117 = vector.load %arg12[%c0_84, %c0_85] : memref<60x10xbf16, #tpu.memory_space<vmem>>, vector<60x10xbf16>
    %cst_86 = arith.constant dense<0.000000e+00> : vector<32x10xf32>
    %118 = tpu.matmul %116, %117, %cst_86 {dimension_numbers = #tpu.dot_dimension_numbers<[1], [0], [0], [1], [0, 0, 1, 1], [], []>} : vector<32x60xbf16>, vector<60x10xbf16>, vector<32x10xf32> -> vector<32x10xf32>
    %c0_87 = arith.constant 0 : index
    %c0_88 = arith.constant 0 : index
    %119 = vector.load %arg13[%c0_87, %c0_88] : memref<1x10xf32, #tpu.memory_space<vmem>>, vector<1x10xf32>
    %120 = vector.broadcast %119 : vector<1x10xf32> to vector<32x10xf32>
    %121 = arith.addf %118, %120 : vector<32x10xf32>
    %c0_89 = arith.constant 0 : index
    %c0_90 = arith.constant 0 : index
    %122 = vector.load %arg14[%c0_89, %c0_90] : memref<32x10xf32, #tpu.memory_space<vmem>>, vector<32x10xf32>
    tpu.vector_store %arg14[%c0_89, %c0_90], %121 {strides = array<i32>} : memref<32x10xf32, #tpu.memory_space<vmem>>, vector<32x10xf32>,
    return
  }
  func.func @transform_0(%arg0: i32) -> (i32, i32, i32) {
    %c0_i32 = arith.constant 0 : i32
    %c0_i32_0 = arith.constant 0 : i32
    %c0_i32_1 = arith.constant 0 : i32
    return %arg0, %c0_i32, %c0_i32_0 : i32, i32, i32
  }
  func.func @transform_1(%arg0: i32) -> (i32, i32, i32) {
    %c0_i32 = arith.constant 0 : i32
    %c0_i32_0 = arith.constant 0 : i32
    %c0_i32_1 = arith.constant 0 : i32
    %c0_i32_2 = arith.constant 0 : i32
    return %c0_i32, %c0_i32_0, %c0_i32_1 : i32, i32, i32
  }
  func.func @transform_2(%arg0: i32) -> (i32, i32) {
    %c0_i32 = arith.constant 0 : i32
    %c0_i32_0 = arith.constant 0 : i32
    %c0_i32_1 = arith.constant 0 : i32
    return %c0_i32, %c0_i32_0 : i32, i32
  }
  func.func @transform_3(%arg0: i32) -> (i32, i32, i32) {
    %c0_i32 = arith.constant 0 : i32
    %c0_i32_0 = arith.constant 0 : i32
    %c0_i32_1 = arith.constant 0 : i32
    %c0_i32_2 = arith.constant 0 : i32
    return %c0_i32, %c0_i32_0, %c0_i32_1 : i32, i32, i32
  }
  func.func @transform_4(%arg0: i32) -> (i32, i32, i32) {
    %c0_i32 = arith.constant 0 : i32
    %c0_i32_0 = arith.constant 0 : i32
    %c0_i32_1 = arith.constant 0 : i32
    %c0_i32_2 = arith.constant 0 : i32
    return %c0_i32, %c0_i32_0, %c0_i32_1 : i32, i32, i32
  }
  func.func @transform_5(%arg0: i32) -> (i32, i32) {
    %c0_i32 = arith.constant 0 : i32
    %c0_i32_0 = arith.constant 0 : i32
    %c0_i32_1 = arith.constant 0 : i32
    return %c0_i32, %c0_i32_0 : i32, i32
  }
  func.func @transform_6(%arg0: i32) -> (i32, i32, i32) {
    %c0_i32 = arith.constant 0 : i32
    %c0_i32_0 = arith.constant 0 : i32
    %c0_i32_1 = arith.constant 0 : i32
    %c0_i32_2 = arith.constant 0 : i32
    return %c0_i32, %c0_i32_0, %c0_i32_1 : i32, i32, i32
  }
  func.func @transform_7(%arg0: i32) -> (i32, i32, i32) {
    %c0_i32 = arith.constant 0 : i32
    %c0_i32_0 = arith.constant 0 : i32
    %c0_i32_1 = arith.constant 0 : i32
    %c0_i32_2 = arith.constant 0 : i32
    return %c0_i32, %c0_i32_0, %c0_i32_1 : i32, i32, i32
  }
  func.func @transform_8(%arg0: i32) -> (i32, i32) {
    %c0_i32 = arith.constant 0 : i32
    %c0_i32_0 = arith.constant 0 : i32
    %c0_i32_1 = arith.constant 0 : i32
    return %c0_i32, %c0_i32_0 : i32, i32
  }
  func.func @transform_9(%arg0: i32) -> (i32, i32) {
    %c0_i32 = arith.constant 0 : i32
    %c0_i32_0 = arith.constant 0 : i32
    %c0_i32_1 = arith.constant 0 : i32
    return %c0_i32, %c0_i32_0 : i32, i32
  }
  func.func @transform_10(%arg0: i32) -> (i32, i32) {
    %c0_i32 = arith.constant 0 : i32
    %c0_i32_0 = arith.constant 0 : i32
    %c0_i32_1 = arith.constant 0 : i32
    return %c0_i32, %c0_i32_0 : i32, i32
  }
  func.func @transform_11(%arg0: i32) -> (i32, i32) {
    %c0_i32 = arith.constant 0 : i32
    %c0_i32_0 = arith.constant 0 : i32
    %c0_i32_1 = arith.constant 0 : i32
    return %c0_i32, %c0_i32_0 : i32, i32
  }
  func.func @transform_12(%arg0: i32) -> (i32, i32) {
    %c0_i32 = arith.constant 0 : i32
    %c0_i32_0 = arith.constant 0 : i32
    %c0_i32_1 = arith.constant 0 : i32
    return %c0_i32, %c0_i32_0 : i32, i32
  }
  func.func @transform_13(%arg0: i32) -> (i32, i32) {
    %c0_i32 = arith.constant 0 : i32
    %c0_i32_0 = arith.constant 0 : i32
    return %arg0, %c0_i32 : i32, i32
  }
}

</mosaic_0001>

<bundles_post_ra>
// kernel: _fused_forward.1
= control target key start
LH: loop header
LB: loop body
LE: loop exit
PB: predicated region body
PF: predicated region fallthrough
CT: control target
= control target key end

     0   :  { %s12291_s25 = smov 0   ;;  %s15443_s0 = inlined_call_operand.vmem [shape: bf16[2,896,28], index: 0, kind: input, shape index: {}]   ;;  %s15444_s1 = inlined_call_operand.vmem [shape: bf16[5,28,144], index: 1, kind: input, shape index: {}]   ;;  %s15445_s2 = inlined_call_operand.vmem [shape: f32[1,144], index: 2, kind: input, shape index: {}]   ;;  %s15446_s3 = inlined_call_operand.vmem [shape: bf16[2,144,72], index: 3, kind: input, shape index: {}]   ;;  %s15447_s4 = inlined_call_operand.vmem [shape: bf16[5,72,96], index: 4, kind: input, shape index: {}]   ;;  %s15448_s5 = inlined_call_operand.vmem [shape: f32[1,96], index: 5, kind: input, shape index: {}]   ;;  %s15449_s6 = inlined_call_operand.vmem [shape: bf16[2,96,48], index: 6, kind: input, shape index: {}]   ;;  %s15450_s7 = inlined_call_operand.vmem [shape: bf16[4,48,120], index: 7, kind: input, shape index: {}]   ;;  %s15451_s8 = inlined_call_operand.vmem [shape: f32[1,120], index: 8, kind: input, shape index: {}]   ;;  %s15452_s9 = inlined_call_operand.vmem [shape: bf16[120,60], index: 9, kind: input, shape index: {}]   ;;  %s15453_s10 = inlined_call_operand.vmem [shape: f32[1,60], index: 10, kind: input, shape index: {}]   ;;  %s15454_s11 = inlined_call_operand.vmem [shape: bf16[60,10], index: 11, kind: input, shape index: {}]   ;;  %s15455_s12 = inlined_call_operand.vmem [shape: f32[1,10], index: 12, kind: input, shape index: {}]   ;;  %s15456_s13 = inlined_call_operand.vmem [shape: f32[64,10], index: 13, kind: output, shape index: {}]  }
   0x1 LB: > { %s12297_s26 = sadd.s32 4294967295, %s12218_s25   ;;  %p9298_p0 = scmp.ge.s32.totalorder %s12218_s25, 1  ;;  %s12218_s25 = sphi %s12291_s25, %s23_s25  }
   0x2   : > { %p387_p1 = scmp.lt.s32.totalorder %s12218_s25, 3 }
   0x4   : > { %p388_p2 = pnand %p9298_p0, %p387_p1 }
   0x6   : > { %391 = sbr.rel (%p388_p2) target bundleno = 4293 (0x10c5), region = 72 }
   0xd   : > { %v12016_v0 = vld [vmem:[%s15444_s1 + $0x24] ss:$8 sps:$4 sm:$0xff]   ;;  %vm967_vm0 = vcmask 1045504   ;;  %v12018_v1 = vld [vmem:[%s15444_s1 + $0x20] ss:$8 sps:$4 sm:$0xff]   ;;  %v15457_v2 = vmov 0  }
   0xe   : > { %1006 = vmatprep.mubr.bf16.mxu0 %v15457_v2  ;;  %p431_p3 = scmp.lt.s32.totalorder %s12297_s26, 1  ;;  %1356 = vmatprep.mubr.bf16.mxu1 %v15457_v2  ;;  %v12019_v3 = vld [vmem:[%s15444_s1 + $0x34] ss:$8 sps:$4 sm:$0x3f]   ;;  %v12025_v6 = vld [vmem:[%s15444_s1 + $0x64] ss:$8 sps:$4 sm:$0xff]  }
   0xf   : > { %974 = vmatprep.subr.bf16.mxu0 %v12016_v0  ;;  %v12021_v4 = vld [vmem:[%s15444_s1 + $0x30] ss:$8 sps:$4 sm:$0x3f]   ;;  %10975 = vmatprep.subr.bf16.mxu1 %v12016_v0  ;;  %v12023_v7 = vld [vmem:[%s15444_s1 + $0x60] ss:$8 sps:$4 sm:$0xff]   ;;  %vm822_vm1 = vcmask 228352  }
  0x10   : > { %975 = vmatpush1.bf16.msra.mxu0 %v12018_v1  ;;  %s432_s18 = scalar_select %p431_p3, %s12297_s26, 1  ;;  %10977 = vmatpush1.bf16.msra.mxu1 %v12018_v1  ;;  %v969_v5 = vsel %vm967_vm0, %v12021_v4, 0  ;;  %v12043_v11 = vld [vmem:[%s15444_s1 + $0x74] ss:$8 sps:$4 sm:$0x3f]   ;;  %vm4662_vm2 = vcmask 130048  }
  0x11   : > { %9358 = vmatprep.subr.msk.bf16.mxu0 %vm967_vm0, %v12019_v3  ;;  %10976 = vmatprep.subr.msk.bf16.mxu1 %vm967_vm0, %v12019_v3  ;;  %v12045_v12 = vld [vmem:[%s15444_s1 + $0x70] ss:$8 sps:$4 sm:$0x3f]   ;;  %v12065_v31 = vld [vmem:[%s15444_s1 + $0x84] ss:$8 sps:$4 sm:$0xff]   ;;  %vm6085_vm3 = vcmask 1043456  }
  0x12   : > { %s12006_s21 = smul.u32 448, %s432_s18  ;;  %v1548_v14 = vsel %vm967_vm0, %v12045_v12, 0  ;;  %v12063_v47 = vld [vmem:[%s15444_s1 + $0x80] ss:$8 sps:$4 sm:$0xff]   ;;  %v12088_v0 = vld [vmem:[%s15444_s1 + $0x4] ss:$8 sps:$4 sm:$0xff]  }
  0x13   : > { %v12066_v48 = vld [vmem:[%s15444_s1 + $0x94] ss:$8 sps:$4 sm:$0x3f]   ;;  %v12068_v49 = vld [vmem:[%s15444_s1 + $0x90] ss:$8 sps:$4 sm:$0x3f]  }
  0x14   : > { %977 = vmatpush1.bf16.msra.mxu0 %v969_v5  ;;  %s12329_s28 = scalar_lea.vmem %s15443_s0, %s12006_s21  ;;  %10978 = vmatpush1.bf16.msra.mxu1 %v969_v5  ;;  %v2106_v50 = vsel %vm967_vm0, %v12068_v49, 0  ;;  %vm5994_vm4 = vcmask 588800   ;;  %vm7977_vm5 = vcmask 785408   ;;  %vm8694_vm6 = vcmask 392192   ;;  %s9300_s15 = sshll.u32 %s12297_s26, 2 }
  0x15   : > { %v12022_v8 = vld [vmem:[%s12329_s28 + $0x10] sm:$0xff]   ;;  %1553 = vmatprep.subr.bf16.mxu0 %v12025_v6  ;;  %4807 = vmatprep.subr.bf16.mxu1 %v15457_v2  ;;  %v12026_v9 = vld [vmem:[%s12329_s28 + $0x18] sm:$0xff]   ;;  %v12027_v10 = vld [vmem:[%s12329_s28 + $0x20] sm:$0xff]   ;;  %vm9071_vm7 = vcmask 982016   ;;  %vm9174_vm8 = vcmask 490496   ;;  %p437_p4 = scmp.lt.s32.totalorder %s9300_s15, 7 }
  0x16   : > { %v12028_v13 = vld [vmem:[%s12329_s28 + $0x28] sm:$0xff]   ;;  %v12353_v15 = vld [vmem:[%s12329_s28 + $0x30] sm:$0xff]   ;;  %v12359_v16 = vld [vmem:[%s12329_s28 + $0x38] sm:$0xff]   ;;  %vm9233_vm9 = vcmask 80896  }
  0x17   : > { %9359 = vmatmul.mubr.msk.bf16.vlgmr.msra.gmra.mrb[0].mxu0 %vm822_vm1, %v12022_v8  ;;  %v12365_v17 = vld [vmem:[%s12329_s28 + $0x40] sm:$0xff]   ;;  %v12371_v18 = vld [vmem:[%s12329_s28 + $0x48] sm:$0xff]   ;;  %v12377_v19 = vld [vmem:[%s12329_s28 + $0x50] sm:$0xff]   ;;  %s15870_s15 = smov (!%p437_p4, %s9300_s15), 7 }
  0x18   : > { %1554 = vmatpush1.bf16.msra.mxu0 %v12023_v7  ;;  %1016 = vmatprep.mubr.bf16.mxu0 %v15457_v2  ;;  %v12383_v20 = vld [vmem:[%s12329_s28 + $0x58] sm:$0xff]   ;;  %v12389_v21 = vld [vmem:[%s12329_s28 + $0x60] sm:$0xff]   ;;  %v12395_v22 = vld [vmem:[%s12329_s28 + $0x68] sm:$0xff]   ;;  %s9301_s16 = sshll.u32 %s15870_s15, 3 }
  0x19   : > { %9423 = vmatprep.subr.msk.bf16.mxu0 %vm967_vm0, %v12043_v11  ;;  %v12401_v23 = vld [vmem:[%s12329_s28 + $0x70] sm:$0xff]   ;;  %v12407_v24 = vld [vmem:[%s12329_s28 + $0x78] sm:$0xff]   ;;  %v12413_v25 = vld [vmem:[%s12329_s28 + $0x80] sm:$0xff]   ;;  %s440_s20 = scalar_lea.vmem %s15456_s13, %s9301_s16 }
  0x1a   : > { %v12419_v26 = vld [vmem:[%s12329_s28 + $0x88] sm:$0xff]   ;;  %v12425_v27 = vld [vmem:[%s12329_s28 + $0x90] sm:$0xff]   ;;  %v12431_v28 = vld [vmem:[%s12329_s28 + $0x98] sm:$0xff]  }
  0x1b   : > { %v12437_v29 = vld [vmem:[%s12329_s28 + $0xa0] sm:$0xff]   ;;  %v12443_v30 = vld [vmem:[%s12329_s28 + $0xa8] sm:$0xff]   ;;  %v12452_v32 = vld [vmem:[%s12329_s28 + $0xb0] sm:$0xff]  }
  0x1c   : > { %1556 = vmatpush1.bf16.msra.mxu0 %v1548_v14  ;;  %v12458_v33 = vld [vmem:[%s12329_s28 + $0xb8] sm:$0xff]   ;;  %v12464_v34 = vld [vmem:[%s12329_s28 + $0xc0] sm:$0xff]   ;;  %v12470_v35 = vld [vmem:[%s12329_s28 + $0xc8] sm:$0xff]  }
  0x1d   : > { %2111 = vmatprep.subr.bf16.mxu0 %v12065_v31  ;;  %v12476_v36 = vld [vmem:[%s12329_s28 + $0xd0] sm:$0xff]   ;;  %v12482_v37 = vld [vmem:[%s12329_s28 + $0xd8] sm:$0xff]   ;;  %v12488_v38 = vld [vmem:[%s12329_s28 + $0xe0] sm:$0xff]  }
  0x1e   : > { %v12494_v39 = vld [vmem:[%s12329_s28 + $0xe8] sm:$0xff]   ;;  %v12500_v40 = vld [vmem:[%s12329_s28 + $0xf0] sm:$0xff]   ;;  %v12506_v41 = vld [vmem:[%s12329_s28 + $0xf8] sm:$0xff]  }
  0x1f   : > { %9360 = vmatmul.mubr.msk.bf16.gmra.mrb[4].mxu0 %vm822_vm1, %v12026_v9  ;;  %v12512_v42 = vld [vmem:[%s12329_s28 + $0x100] sm:$0xff]   ;;  %v12518_v43 = vld [vmem:[%s12329_s28 + $0x108] sm:$0xff]   ;;  %v12524_v44 = vld [vmem:[%s12329_s28 + $0x110] sm:$0xff]  }
  0x20   : > { %1026 = vmatprep.mubr.bf16.mxu0 %v15457_v2  ;;  %v12530_v45 = vld [vmem:[%s12329_s28 + $0x118] sm:$0xff]   ;;  %v12536_v46 = vld [vmem:[%s12329_s28 + $0x120] sm:$0xff]   ;;  %v12598_v51 = vld [vmem:[%s12329_s28 + $0x128] sm:$0xff]  }
  0x21   : > { %9394 = vmatmul.mubr.msk.bf16.vlgmr.msra.gmra.mrb[0].mxu1 %vm822_vm1, %v12598_v51  ;;  %v12607_v52 = vld [vmem:[%s12329_s28 + $0x130] sm:$0xff]   ;;  %v12616_v53 = vld [vmem:[%s12329_s28 + $0x138] sm:$0xff]   ;;  %v12625_v54 = vld [vmem:[%s12329_s28 + $0x140] sm:$0xff]  }
  0x22   : > { %1366 = vmatprep.mubr.bf16.mxu1 %v15457_v2  ;;  %v12634_v55 = vld [vmem:[%s12329_s28 + $0x148] sm:$0xff]   ;;  %v12643_v56 = vld [vmem:[%s12329_s28 + $0x150] sm:$0xff]   ;;  %v12652_v57 = vld [vmem:[%s12329_s28 + $0x158] sm:$0xff]  }
  0x23   : > { %v12661_v58 = vld [vmem:[%s12329_s28 + $0x160] sm:$0xff]   ;;  %v12670_v59 = vld [vmem:[%s12329_s28 + $0x168] sm:$0xff]   ;;  %v12679_v60 = vld [vmem:[%s12329_s28 + $0x170] sm:$0xff]  }
  0x24   : > { %v12688_v61 = vld [vmem:[%s12329_s28 + $0x178] sm:$0xff]   ;;  %v12697_v62 = vld [vmem:[%s12329_s28 + $0x180] sm:$0xff]   ;;  %v12706_v63 = vld [vmem:[%s12329_s28 + $0x188] sm:$0xff]  }
  0x25   : > { %v12765_v1 = vld [vmem:[%s12329_s28 + $0x190] sm:$0xff]   ;;  %v12771_v3 = vld [vmem:[%s12329_s28 + $0x198] sm:$0xff]   ;;  %v12777_v4 = vld [vmem:[%s12329_s28 + $0x1a0] sm:$0xff]  }
  0x26   : > { %v12783_v5 = vld [vmem:[%s12329_s28 + $0x1a8] sm:$0xff]   ;;  %v12089_v7 = vld [vmem:[%s15444_s1 + $0x14] ss:$8 sps:$4 sm:$0x3f]   ;;  %v12962_v31 = vld [vmem:[%s12329_s28 + $0x20] sm:$0xff]  }
  0x27   : > { %9361 = vmatmul.mubr.msk.bf16.gmra.mrb[8].mxu0 %vm822_vm1, %v12027_v10  ;;  %v12086_v6 = vld [vmem:[%s15444_s1] ss:$8 sps:$4 sm:$0xff]   ;;  %v12091_v8 = vld [vmem:[%s15444_s1 + $0x10] ss:$8 sps:$4 sm:$0x3f]  }
  0x28   : > { %1036 = vmatprep.mubr.bf16.mxu0 %v15457_v2  ;;  %v2659_v9 = vsel %vm967_vm0, %v12091_v8, 0  ;;  %v12097_v10 = vld [vmem:[%s15444_s1 + $0x44] ss:$8 sps:$4 sm:$0xff]   ;;  %v12092_v11 = vld [vmem:[%s12329_s28 + $0x1b0] sm:$0xff]   ;;  %v12093_v12 = vld [vmem:[%s12329_s28 + $0x1b8] sm:$0xff]  }
  0x29   : > { %9395 = vmatmul.mubr.msk.bf16.gmra.mrb[4].mxu1 %vm822_vm1, %v12607_v52  ;;  %v12095_v14 = vld [vmem:[%s15444_s1 + $0x40] ss:$8 sps:$4 sm:$0xff]   ;;  %v12980_v49 = vld [vmem:[%s12329_s28 + $0x38] sm:$0xff]  }
  0x2a   : > { %1376 = vmatprep.mubr.bf16.mxu1 %v15457_v2 }
  0x2f   : > { %9362 = vmatmul.mubr.msk.bf16.gmra.mrb[12].mxu0 %vm822_vm1, %v12028_v13  ;;  %v12094_v13 = vld [vmem:[%s12329_s28] sm:$0xff]  }
  0x30   : > { %1046 = vmatprep.mubr.bf16.mxu0 %v15457_v2 }
  0x31   : > { %9396 = vmatmul.mubr.msk.bf16.gmra.mrb[8].mxu1 %vm822_vm1, %v12616_v53 }
  0x32   : > { %1386 = vmatprep.mubr.bf16.mxu1 %v15457_v2 }
  0x37   : > { %9363 = vmatmul.mubr.msk.bf16.gmra.mrb[16].mxu0 %vm822_vm1, %v12353_v15 }
  0x38   : > { %1056 = vmatprep.mubr.bf16.mxu0 %v15457_v2 }
  0x39   : > { %9397 = vmatmul.mubr.msk.bf16.gmra.mrb[12].mxu1 %vm822_vm1, %v12625_v54 }
  0x3a   : > { %1396 = vmatprep.mubr.bf16.mxu1 %v15457_v2 }
  0x3f   : > { %9364 = vmatmul.mubr.msk.bf16.gmra.mrb[20].mxu0 %vm822_vm1, %v12359_v16 }
  0x40   : > { %1066 = vmatprep.mubr.bf16.mxu0 %v15457_v2 }
  0x41   : > { %9398 = vmatmul.mubr.msk.bf16.gmra.mrb[16].mxu1 %vm822_vm1, %v12634_v55 }
  0x42   : > { %1406 = vmatprep.mubr.bf16.mxu1 %v15457_v2 }
  0x47   : > { %9365 = vmatmul.mubr.msk.bf16.gmra.mrb[24].mxu0 %vm822_vm1, %v12365_v17 }
  0x48   : > { %1076 = vmatprep.mubr.bf16.mxu0 %v15457_v2 }
  0x49   : > { %9399 = vmatmul.mubr.msk.bf16.gmra.mrb[20].mxu1 %vm822_vm1, %v12643_v56 }
  0x4a   : > { %1416 = vmatprep.mubr.bf16.mxu1 %v15457_v2 }
  0x4f   : > { %9366 = vmatmul.mubr.msk.bf16.gmra.mrb[28].mxu0 %vm822_vm1, %v12371_v18 }
  0x50   : > { %1086 = vmatprep.mubr.bf16.mxu0 %v15457_v2 }
  0x51   : > { %9400 = vmatmul.mubr.msk.bf16.gmra.mrb[24].mxu1 %vm822_vm1, %v12652_v57 }
  0x52   : > { %1426 = vmatprep.mubr.bf16.mxu1 %v15457_v2 }
  0x57   : > { %9367 = vmatmul.mubr.msk.bf16.gmra.mrb[32].mxu0 %vm822_vm1, %v12377_v19 }
  0x58   : > { %1096 = vmatprep.mubr.bf16.mxu0 %v15457_v2 }
  0x59   : > { %9401 = vmatmul.mubr.msk.bf16.gmra.mrb[28].mxu1 %vm822_vm1, %v12661_v58 }
  0x5a   : > { %1436 = vmatprep.mubr.bf16.mxu1 %v15457_v2 }
  0x5f   : > { %9368 = vmatmul.mubr.msk.bf16.gmra.mrb[36].mxu0 %vm822_vm1, %v12383_v20 }
  0x60   : > { %1106 = vmatprep.mubr.bf16.mxu0 %v15457_v2 }
  0x61   : > { %9402 = vmatmul.mubr.msk.bf16.gmra.mrb[32].mxu1 %vm822_vm1, %v12670_v59 }
  0x62   : > { %1446 = vmatprep.mubr.bf16.mxu1 %v15457_v2 }
  0x67   : > { %9369 = vmatmul.mubr.msk.bf16.gmra.mrb[40].mxu0 %vm822_vm1, %v12389_v21 }
  0x68   : > { %1116 = vmatprep.mubr.bf16.mxu0 %v15457_v2 }
  0x69   : > { %9403 = vmatmul.mubr.msk.bf16.gmra.mrb[36].mxu1 %vm822_vm1, %v12679_v60 }
  0x6a   : > { %1456 = vmatprep.mubr.bf16.mxu1 %v15457_v2 }
  0x6f   : > { %9370 = vmatmul.mubr.msk.bf16.gmra.mrb[44].mxu0 %vm822_vm1, %v12395_v22 }
  0x70   : > { %1126 = vmatprep.mubr.bf16.mxu0 %v15457_v2 }
  0x71   : > { %9404 = vmatmul.mubr.msk.bf16.gmra.mrb[40].mxu1 %vm822_vm1, %v12688_v61 }
  0x72   : > { %1466 = vmatprep.mubr.bf16.mxu1 %v15457_v2 }
  0x77   : > { %9371 = vmatmul.mubr.msk.bf16.gmra.mrb[48].mxu0 %vm822_vm1, %v12401_v23 }
  0x78   : > { %1136 = vmatprep.mubr.bf16.mxu0 %v15457_v2 }
  0x79   : > { %9405 = vmatmul.mubr.msk.bf16.gmra.mrb[44].mxu1 %vm822_vm1, %v12697_v62 }
  0x7a   : > { %1476 = vmatprep.mubr.bf16.mxu1 %v15457_v2 }
  0x7f   : > { %9372 = vmatmul.mubr.msk.bf16.gmra.mrb[52].mxu0 %vm822_vm1, %v12407_v24 }
  0x80   : > { %1146 = vmatprep.mubr.bf16.mxu0 %v15457_v2 }
  0x81   : > { %9406 = vmatmul.mubr.msk.bf16.gmra.mrb[48].mxu1 %vm822_vm1, %v12706_v63 }
  0x87   : > { %9373 = vmatmul.mubr.msk.bf16.gmra.mrb[56].mxu0 %vm822_vm1, %v12413_v25 }
  0x88   : > { %1156 = vmatprep.mubr.bf16.mxu0 %v15457_v2 }
  0x8f   : > { %9374 = vmatmul.mubr.msk.bf16.gmra.mrb[60].mxu0 %vm822_vm1, %v12419_v26 }
  0x90   : > { %1166 = vmatprep.mubr.bf16.mxu0 %v15457_v2 }
  0x97   : > { %9375 = vmatmul.mubr.msk.bf16.gmra.mrb[64].mxu0 %vm822_vm1, %v12425_v27 }
  0x98   : > { %1176 = vmatprep.mubr.bf16.mxu0 %v15457_v2 }
  0x9f   : > { %9376 = vmatmul.mubr.msk.bf16.gmra.mrb[68].mxu0 %vm822_vm1, %v12431_v28 }
  0xa0   : > { %1186 = vmatprep.mubr.bf16.mxu0 %v15457_v2 }
  0xa7   : > { %9377 = vmatmul.mubr.msk.bf16.gmra.mrb[72].mxu0 %vm822_vm1, %v12437_v29 }
  0xa8   : > { %1196 = vmatprep.mubr.bf16.mxu0 %v15457_v2 }
  0xaf   : > { %9378 = vmatmul.mubr.msk.bf16.gmra.mrb[76].mxu0 %vm822_vm1, %v12443_v30 }
  0xb0   : > { %1206 = vmatprep.mubr.bf16.mxu0 %v15457_v2 }
  0xb7   : > { %9379 = vmatmul.mubr.msk.bf16.gmra.mrb[80].mxu0 %vm822_vm1, %v12452_v32 }
  0xb8   : > { %1216 = vmatprep.mubr.bf16.mxu0 %v15457_v2 }
  0xbf   : > { %9380 = vmatmul.mubr.msk.bf16.gmra.mrb[84].mxu0 %vm822_vm1, %v12458_v33 }
  0xc0   : > { %1226 = vmatprep.mubr.bf16.mxu0 %v15457_v2 }
  0xc7   : > { %9381 = vmatmul.mubr.msk.bf16.gmra.mrb[88].mxu0 %vm822_vm1, %v12464_v34 }
  0xc8   : > { %1236 = vmatprep.mubr.bf16.mxu0 %v15457_v2 }
  0xcf   : > { %9382 = vmatmul.mubr.msk.bf16.gmra.mrb[92].mxu0 %vm822_vm1, %v12470_v35 }
  0xd0   : > { %1246 = vmatprep.mubr.bf16.mxu0 %v15457_v2 }
  0xd7   : > { %9383 = vmatmul.mubr.msk.bf16.gmra.mrb[96].mxu0 %vm822_vm1, %v12476_v36 }
  0xd8   : > { %1256 = vmatprep.mubr.bf16.mxu0 %v15457_v2 }
  0xdf   : > { %9384 = vmatmul.mubr.msk.bf16.gmra.mrb[100].mxu0 %vm822_vm1, %v12482_v37 }
  0xe0   : > { %1266 = vmatprep.mubr.bf16.mxu0 %v15457_v2 }
  0xe7   : > { %9385 = vmatmul.mubr.msk.bf16.gmra.mrb[104].mxu0 %vm822_vm1, %v12488_v38 }
  0xe8   : > { %1276 = vmatprep.mubr.bf16.mxu0 %v15457_v2 }
  0xef   : > { %9386 = vmatmul.mubr.msk.bf16.gmra.mrb[108].mxu0 %vm822_vm1, %v12494_v39 }
  0xf0   : > { %1286 = vmatprep.mubr.bf16.mxu0 %v15457_v2 }
  0xf7   : > { %9387 = vmatmul.mubr.msk.bf16.gmra.mrb[112].mxu0 %vm822_vm1, %v12500_v40 }
  0xf8   : > { %1296 = vmatprep.mubr.bf16.mxu0 %v15457_v2 }
  0xff   : > { %9388 = vmatmul.mubr.msk.bf16.gmra.mrb[116].mxu0 %vm822_vm1, %v12506_v41 }
 0x100   : > { %1306 = vmatprep.mubr.bf16.mxu0 %v15457_v2 }
 0x107   : > { %9389 = vmatmul.mubr.msk.bf16.gmra.mrb[120].mxu0 %vm822_vm1, %v12512_v42 }
 0x108   : > { %1316 = vmatprep.mubr.bf16.mxu0 %v15457_v2 }
 0x10f   : > { %9390 = vmatmul.mubr.msk.bf16.gmra.mrb[124].mxu0 %vm822_vm1, %v12518_v43 }
 0x110   : > { %1326 = vmatprep.mubr.bf16.mxu0 %v15457_v2 }
 0x117   : > { %9391 = vmatmul.mubr.msk.bf16.gmra.mrb[128].mxu0 %vm822_vm1, %v12524_v44 }
 0x118   : > { %1336 = vmatprep.mubr.bf16.mxu0 %v15457_v2 }
 0x11f   : > { %9392 = vmatmul.mubr.msk.bf16.gmra.mrb[132].mxu0 %vm822_vm1, %v12530_v45 }
 0x120   : > { %1346 = vmatprep.mubr.bf16.mxu0 %v15457_v2 }
 0x127   : > { %9393 = vmatmul.mubr.msk.bf16.gmra.mrb[136].mxu0 %vm822_vm1, %v12536_v46 }
 0x128   : > { %1585 = vmatprep.mubr.bf16.mxu0 %v15457_v2 }
 0x12f   : > { %9424 = vmatmul.mubr.msk.bf16.vlgmr.msra.gmra.mrb[0].mxu0 %vm822_vm1, %v12353_v15  ;;  %v12098_v15 = vld [vmem:[%s12329_s28 + $0x8] sm:$0xff]  }
 0x130   : > { %2112 = vmatpush1.bf16.msra.mxu0 %v12063_v47  ;;  %1595 = vmatprep.mubr.bf16.mxu0 %v15457_v2  ;;  %v12968_v47 = vld [vmem:[%s12329_s28 + $0x28] sm:$0xff]  }
 0x131   : > { %9482 = vmatprep.subr.msk.bf16.mxu0 %vm967_vm0, %v12066_v48  ;;  %v12974_v48 = vld [vmem:[%s12329_s28 + $0x30] sm:$0xff]  }
 0x134   : > { %2114 = vmatpush1.bf16.msra.mxu0 %v2106_v50  ;;  %v12986_v50 = vld [vmem:[%s12329_s28 + $0x40] sm:$0xff]  }
 0x135   : > { %2664 = vmatprep.subr.bf16.mxu0 %v12088_v0 }
 0x137   : > { %9425 = vmatmul.mubr.msk.bf16.gmra.mrb[4].mxu0 %vm822_vm1, %v12359_v16  ;;  %v12181_v16 = vld [vmem:[%s12329_s28 + $0x10] sm:$0xff]  }
 0x138   : > { %1605 = vmatprep.mubr.bf16.mxu0 %v15457_v2 }
 0x13f   : > { %9426 = vmatmul.mubr.msk.bf16.gmra.mrb[8].mxu0 %vm822_vm1, %v12365_v17 }
 0x140   : > { %1615 = vmatprep.mubr.bf16.mxu0 %v15457_v2 }
 0x147   : > { %9427 = vmatmul.mubr.msk.bf16.gmra.mrb[12].mxu0 %vm822_vm1, %v12371_v18 }
 0x148   : > { %1625 = vmatprep.mubr.bf16.mxu0 %v15457_v2 }
 0x14f   : > { %9428 = vmatmul.mubr.msk.bf16.gmra.mrb[16].mxu0 %vm822_vm1, %v12377_v19 }
 0x150   : > { %1635 = vmatprep.mubr.bf16.mxu0 %v15457_v2 }
 0x157   : > { %9429 = vmatmul.mubr.msk.bf16.gmra.mrb[20].mxu0 %vm822_vm1, %v12383_v20 }
 0x158   : > { %1645 = vmatprep.mubr.bf16.mxu0 %v15457_v2 }
 0x15f   : > { %9430 = vmatmul.mubr.msk.bf16.gmra.mrb[24].mxu0 %vm822_vm1, %v12389_v21 }
 0x160   : > { %1655 = vmatprep.mubr.bf16.mxu0 %v15457_v2 }
 0x167   : > { %9431 = vmatmul.mubr.msk.bf16.gmra.mrb[28].mxu0 %vm822_vm1, %v12395_v22 }
 0x168   : > { %1665 = vmatprep.mubr.bf16.mxu0 %v15457_v2 }
 0x16f   : > { %9432 = vmatmul.mubr.msk.bf16.gmra.mrb[32].mxu0 %vm822_vm1, %v12401_v23 }
 0x170   : > { %1675 = vmatprep.mubr.bf16.mxu0 %v15457_v2 }
 0x177   : > { %9433 = vmatmul.mubr.msk.bf16.gmra.mrb[36].mxu0 %vm822_vm1, %v12407_v24 }
 0x178   : > { %1685 = vmatprep.mubr.bf16.mxu0 %v15457_v2 }
 0x17f   : > { %9434 = vmatmul.mubr.msk.bf16.gmra.mrb[40].mxu0 %vm822_vm1, %v12413_v25 }
 0x180   : > { %1695 = vmatprep.mubr.bf16.mxu0 %v15457_v2 }
 0x187   : > { %9435 = vmatmul.mubr.msk.bf16.gmra.mrb[44].mxu0 %vm822_vm1, %v12419_v26 }
 0x188   : > { %1705 = vmatprep.mubr.bf16.mxu0 %v15457_v2 }
 0x18f   : > { %9436 = vmatmul.mubr.msk.bf16.gmra.mrb[48].mxu0 %vm822_vm1, %v12425_v27 }
 0x190   : > { %1715 = vmatprep.mubr.bf16.mxu0 %v15457_v2 }
 0x197   : > { %9437 = vmatmul.mubr.msk.bf16.gmra.mrb[52].mxu0 %vm822_vm1, %v12431_v28 }
 0x198   : > { %1725 = vmatprep.mubr.bf16.mxu0 %v15457_v2 }
 0x19f   : > { %9438 = vmatmul.mubr.msk.bf16.gmra.mrb[56].mxu0 %vm822_vm1, %v12437_v29 }
 0x1a0   : > { %1735 = vmatprep.mubr.bf16.mxu0 %v15457_v2 }
 0x1a7   : > { %9439 = vmatmul.mubr.msk.bf16.gmra.mrb[60].mxu0 %vm822_vm1, %v12443_v30 }
 0x1a8   : > { %1745 = vmatprep.mubr.bf16.mxu0 %v15457_v2 }
 0x1af   : > { %9440 = vmatmul.mubr.msk.bf16.gmra.mrb[64].mxu0 %vm822_vm1, %v12452_v32 }
 0x1b0   : > { %1755 = vmatprep.mubr.bf16.mxu0 %v15457_v2 }
 0x1b7   : > { %9441 = vmatmul.mubr.msk.bf16.gmra.mrb[68].mxu0 %vm822_vm1, %v12458_v33 }
 0x1b8   : > { %1765 = vmatprep.mubr.bf16.mxu0 %v15457_v2 }
 0x1bf   : > { %9442 = vmatmul.mubr.msk.bf16.gmra.mrb[72].mxu0 %vm822_vm1, %v12464_v34 }
 0x1c0   : > { %1775 = vmatprep.mubr.bf16.mxu0 %v15457_v2 }
 0x1c7   : > { %9443 = vmatmul.mubr.msk.bf16.gmra.mrb[76].mxu0 %vm822_vm1, %v12470_v35 }
 0x1c8   : > { %1785 = vmatprep.mubr.bf16.mxu0 %v15457_v2 }
 0x1cf   : > { %9444 = vmatmul.mubr.msk.bf16.gmra.mrb[80].mxu0 %vm822_vm1, %v12476_v36 }
 0x1d0   : > { %1795 = vmatprep.mubr.bf16.mxu0 %v15457_v2 }
 0x1d7   : > { %9445 = vmatmul.mubr.msk.bf16.gmra.mrb[84].mxu0 %vm822_vm1, %v12482_v37 }
 0x1d8   : > { %1805 = vmatprep.mubr.bf16.mxu0 %v15457_v2 }
 0x1df   : > { %9446 = vmatmul.mubr.msk.bf16.gmra.mrb[88].mxu0 %vm822_vm1, %v12488_v38 }
 0x1e0   : > { %1815 = vmatprep.mubr.bf16.mxu0 %v15457_v2 }
 0x1e7   : > { %9447 = vmatmul.mubr.msk.bf16.gmra.mrb[92].mxu0 %vm822_vm1, %v12494_v39 }
 0x1e8   : > { %1825 = vmatprep.mubr.bf16.mxu0 %v15457_v2 }
 0x1ef   : > { %9448 = vmatmul.mubr.msk.bf16.gmra.mrb[96].mxu0 %vm822_vm1, %v12500_v40 }
 0x1f0   : > { %1835 = vmatprep.mubr.bf16.mxu0 %v15457_v2 }
 0x1f7   : > { %9449 = vmatmul.mubr.msk.bf16.gmra.mrb[100].mxu0 %vm822_vm1, %v12506_v41 }
 0x1f8   : > { %1845 = vmatprep.mubr.bf16.mxu0 %v15457_v2 }
 0x1ff   : > { %9450 = vmatmul.mubr.msk.bf16.gmra.mrb[104].mxu0 %vm822_vm1, %v12512_v42 }
 0x200   : > { %1855 = vmatprep.mubr.bf16.mxu0 %v15457_v2 }
 0x207   : > { %9451 = vmatmul.mubr.msk.bf16.gmra.mrb[108].mxu0 %vm822_vm1, %v12518_v43 }
 0x208   : > { %1865 = vmatprep.mubr.bf16.mxu0 %v15457_v2 }
 0x20f   : > { %9452 = vmatmul.mubr.msk.bf16.gmra.mrb[112].mxu0 %vm822_vm1, %v12524_v44 }
 0x210   : > { %1875 = vmatprep.mubr.bf16.mxu0 %v15457_v2 }
 0x217   : > { %9453 = vmatmul.mubr.msk.bf16.gmra.mrb[116].mxu0 %vm822_vm1, %v12530_v45 }
 0x218   : > { %1885 = vmatprep.mubr.bf16.mxu0 %v15457_v2 }
 0x21f   : > { %9454 = vmatmul.mubr.msk.bf16.gmra.mrb[120].mxu0 %vm822_vm1, %v12536_v46 }
 0x220   : > { %1895 = vmatprep.mubr.bf16.mxu0 %v15457_v2 }
 0x227   : > { %9455 = vmatmul.mubr.msk.bf16.gmra.mrb[124].mxu0 %vm822_vm1, %v12598_v51 }
 0x228   : > { %1905 = vmatprep.mubr.bf16.mxu0 %v15457_v2 }
 0x22f   : > { %9456 = vmatmul.mubr.msk.bf16.gmra.mrb[128].mxu0 %vm822_vm1, %v12607_v52 }
 0x230   : > { %1915 = vmatprep.mubr.bf16.mxu0 %v15457_v2 }
 0x237   : > { %9457 = vmatmul.mubr.msk.bf16.gmra.mrb[132].mxu0 %vm822_vm1, %v12616_v53 }
 0x238   : > { %1925 = vmatprep.mubr.bf16.mxu0 %v15457_v2 }
 0x23f   : > { %9458 = vmatmul.mubr.msk.bf16.gmra.mrb[136].mxu0 %vm822_vm1, %v12625_v54 }
 0x240   : > { %1935 = vmatprep.mubr.bf16.mxu0 %v15457_v2 }
 0x247   : > { %9459 = vmatmul.mubr.msk.bf16.gmra.mrb[140].mxu0 %vm822_vm1, %v12634_v55 }
 0x248   : > { %1945 = vmatprep.mubr.bf16.mxu0 %v15457_v2 }
 0x24f   : > { %9460 = vmatmul.mubr.msk.bf16.gmra.mrb[144].mxu0 %vm822_vm1, %v12643_v56 }
 0x250   : > { %1955 = vmatprep.mubr.bf16.mxu0 %v15457_v2 }
 0x257   : > { %9461 = vmatmul.mubr.msk.bf16.gmra.mrb[148].mxu0 %vm822_vm1, %v12652_v57 }
 0x258   : > { %1965 = vmatprep.mubr.bf16.mxu0 %v15457_v2 }
 0x25f   : > { %9462 = vmatmul.mubr.msk.bf16.gmra.mrb[152].mxu0 %vm822_vm1, %v12661_v58 }
 0x260   : > { %1975 = vmatprep.mubr.bf16.mxu0 %v15457_v2 }
 0x267   : > { %9463 = vmatmul.mubr.msk.bf16.gmra.mrb[156].mxu0 %vm822_vm1, %v12670_v59 }
 0x268   : > { %1985 = vmatprep.mubr.bf16.mxu0 %v15457_v2 }
 0x26f   : > { %9464 = vmatmul.mubr.msk.bf16.gmra.mrb[160].mxu0 %vm822_vm1, %v12679_v60 }
 0x270   : > { %1995 = vmatprep.mubr.bf16.mxu0 %v15457_v2 }
 0x277   : > { %9465 = vmatmul.mubr.msk.bf16.gmra.mrb[164].mxu0 %vm822_vm1, %v12688_v61 }
 0x278   : > { %2005 = vmatprep.mubr.bf16.mxu0 %v15457_v2 }
 0x27f   : > { %9466 = vmatmul.mubr.msk.bf16.gmra.mrb[168].mxu0 %vm822_vm1, %v12697_v62 }
 0x280   : > { %2015 = vmatprep.mubr.bf16.mxu0 %v15457_v2 }
 0x287   : > { %9467 = vmatmul.mubr.msk.bf16.gmra.mrb[172].mxu0 %vm822_vm1, %v12706_v63 }
 0x288   : > { %2025 = vmatprep.mubr.bf16.mxu0 %v15457_v2 }
 0x28f   : > { %9468 = vmatmul.mubr.msk.bf16.gmra.mrb[176].mxu0 %vm822_vm1, %v12765_v1 }
 0x290   : > { %2035 = vmatprep.mubr.bf16.mxu0 %v15457_v2 }
 0x297   : > { %9469 = vmatmul.mubr.msk.bf16.gmra.mrb[180].mxu0 %vm822_vm1, %v12771_v3 }
 0x298   : > { %2045 = vmatprep.mubr.bf16.mxu0 %v15457_v2 }
 0x29f   : > { %9470 = vmatmul.mubr.msk.bf16.gmra.mrb[184].mxu0 %vm822_vm1, %v12777_v4 }
 0x2a0   : > { %2055 = vmatprep.mubr.bf16.mxu0 %v15457_v2 }
 0x2a7   : > { %9471 = vmatmul.mubr.msk.bf16.gmra.mrb[188].mxu0 %vm822_vm1, %v12783_v5 }
 0x2a8   : > { %2143 = vmatprep.mubr.bf16.mxu0 %v15457_v2 }
 0x2af   : > { %9483 = vmatmul.mubr.msk.bf16.vlgmr.msra.gmra.mrb[0].mxu0 %vm822_vm1, %v12365_v17  ;;  %v12182_v17 = vld [vmem:[%s12329_s28 + $0x18] sm:$0xff]  }
 0x2b0   : > { %2665 = vmatpush1.bf16.msra.mxu0 %v12086_v6  ;;  %2153 = vmatprep.mubr.bf16.mxu0 %v15457_v2 }
 0x2b1   : > { %9537 = vmatprep.subr.msk.bf16.mxu0 %vm967_vm0, %v12089_v7 }
 0x2b4   : > { %2667 = vmatpush1.bf16.msra.mxu0 %v2659_v9 }
 0x2b5   : > { %3201 = vmatprep.subr.bf16.mxu0 %v12097_v10 }
 0x2b7   : > { %9484 = vmatmul.mubr.msk.bf16.gmra.mrb[4].mxu0 %vm822_vm1, %v12371_v18 }
 0x2b8   : > { %2163 = vmatprep.mubr.bf16.mxu0 %v15457_v2 }
 0x2bf   : > { %9485 = vmatmul.mubr.msk.bf16.gmra.mrb[8].mxu0 %vm822_vm1, %v12377_v19 }
 0x2c0   : > { %2173 = vmatprep.mubr.bf16.mxu0 %v15457_v2 }
 0x2c7   : > { %9486 = vmatmul.mubr.msk.bf16.gmra.mrb[12].mxu0 %vm822_vm1, %v12383_v20 }
 0x2c8   : > { %2183 = vmatprep.mubr.bf16.mxu0 %v15457_v2 }
 0x2cf   : > { %9487 = vmatmul.mubr.msk.bf16.gmra.mrb[16].mxu0 %vm822_vm1, %v12389_v21 }
 0x2d0   : > { %2193 = vmatprep.mubr.bf16.mxu0 %v15457_v2 }
 0x2d7   : > { %9488 = vmatmul.mubr.msk.bf16.gmra.mrb[20].mxu0 %vm822_vm1, %v12395_v22 }
 0x2d8   : > { %2203 = vmatprep.mubr.bf16.mxu0 %v15457_v2 }
 0x2df   : > { %9489 = vmatmul.mubr.msk.bf16.gmra.mrb[24].mxu0 %vm822_vm1, %v12401_v23 }
 0x2e0   : > { %2213 = vmatprep.mubr.bf16.mxu0 %v15457_v2 }
 0x2e7   : > { %9490 = vmatmul.mubr.msk.bf16.gmra.mrb[28].mxu0 %vm822_vm1, %v12407_v24 }
 0x2e8   : > { %2223 = vmatprep.mubr.bf16.mxu0 %v15457_v2 }
 0x2ef   : > { %9491 = vmatmul.mubr.msk.bf16.gmra.mrb[32].mxu0 %vm822_vm1, %v12413_v25 }
 0x2f0   : > { %2233 = vmatprep.mubr.bf16.mxu0 %v15457_v2 }
 0x2f7   : > { %9492 = vmatmul.mubr.msk.bf16.gmra.mrb[36].mxu0 %vm822_vm1, %v12419_v26 }
 0x2f8   : > { %2243 = vmatprep.mubr.bf16.mxu0 %v15457_v2 }
 0x2ff   : > { %9493 = vmatmul.mubr.msk.bf16.gmra.mrb[40].mxu0 %vm822_vm1, %v12425_v27 }
 0x300   : > { %2253 = vmatprep.mubr.bf16.mxu0 %v15457_v2 }
 0x307   : > { %9494 = vmatmul.mubr.msk.bf16.gmra.mrb[44].mxu0 %vm822_vm1, %v12431_v28 }
 0x308   : > { %2263 = vmatprep.mubr.bf16.mxu0 %v15457_v2 }
 0x30f   : > { %9495 = vmatmul.mubr.msk.bf16.gmra.mrb[48].mxu0 %vm822_vm1, %v12437_v29 }
 0x310   : > { %2273 = vmatprep.mubr.bf16.mxu0 %v15457_v2 }
 0x317   : > { %9496 = vmatmul.mubr.msk.bf16.gmra.mrb[52].mxu0 %vm822_vm1, %v12443_v30 }
 0x318   : > { %2283 = vmatprep.mubr.bf16.mxu0 %v15457_v2 }
 0x31f   : > { %9497 = vmatmul.mubr.msk.bf16.gmra.mrb[56].mxu0 %vm822_vm1, %v12452_v32 }
 0x320   : > { %2293 = vmatprep.mubr.bf16.mxu0 %v15457_v2 }
 0x327   : > { %9498 = vmatmul.mubr.msk.bf16.gmra.mrb[60].mxu0 %vm822_vm1, %v12458_v33 }
 0x328   : > { %2303 = vmatprep.mubr.bf16.mxu0 %v15457_v2 }
 0x32f   : > { %9499 = vmatmul.mubr.msk.bf16.gmra.mrb[64].mxu0 %vm822_vm1, %v12464_v34 }
 0x330   : > { %2313 = vmatprep.mubr.bf16.mxu0 %v15457_v2 }
 0x337   : > { %9500 = vmatmul.mubr.msk.bf16.gmra.mrb[68].mxu0 %vm822_vm1, %v12470_v35 }
 0x338   : > { %2323 = vmatprep.mubr.bf16.mxu0 %v15457_v2 }
 0x33f   : > { %9501 = vmatmul.mubr.msk.bf16.gmra.mrb[72].mxu0 %vm822_vm1, %v12476_v36 }
 0x340   : > { %2333 = vmatprep.mubr.bf16.mxu0 %v15457_v2 }
 0x347   : > { %9502 = vmatmul.mubr.msk.bf16.gmra.mrb[76].mxu0 %vm822_vm1, %v12482_v37 }
 0x348   : > { %2343 = vmatprep.mubr.bf16.mxu0 %v15457_v2 }
 0x34f   : > { %9503 = vmatmul.mubr.msk.bf16.gmra.mrb[80].mxu0 %vm822_vm1, %v12488_v38 }
 0x350   : > { %2353 = vmatprep.mubr.bf16.mxu0 %v15457_v2 }
 0x357   : > { %9504 = vmatmul.mubr.msk.bf16.gmra.mrb[84].mxu0 %vm822_vm1, %v12494_v39 }
 0x358   : > { %2363 = vmatprep.mubr.bf16.mxu0 %v15457_v2 }
 0x35f   : > { %9505 = vmatmul.mubr.msk.bf16.gmra.mrb[88].mxu0 %vm822_vm1, %v12500_v40 }
 0x360   : > { %2373 = vmatprep.mubr.bf16.mxu0 %v15457_v2 }
 0x367   : > { %9506 = vmatmul.mubr.msk.bf16.gmra.mrb[92].mxu0 %vm822_vm1, %v12506_v41 }
 0x368   : > { %2383 = vmatprep.mubr.bf16.mxu0 %v15457_v2 }
 0x36f   : > { %9507 = vmatmul.mubr.msk.bf16.gmra.mrb[96].mxu0 %vm822_vm1, %v12512_v42 }
 0x370   : > { %2393 = vmatprep.mubr.bf16.mxu0 %v15457_v2 }
 0x377   : > { %9508 = vmatmul.mubr.msk.bf16.gmra.mrb[100].mxu0 %vm822_vm1, %v12518_v43 }
 0x378   : > { %2403 = vmatprep.mubr.bf16.mxu0 %v15457_v2 }
 0x37f   : > { %9509 = vmatmul.mubr.msk.bf16.gmra.mrb[104].mxu0 %vm822_vm1, %v12524_v44 }
 0x380   : > { %2413 = vmatprep.mubr.bf16.mxu0 %v15457_v2 }
 0x387   : > { %9510 = vmatmul.mubr.msk.bf16.gmra.mrb[108].mxu0 %vm822_vm1, %v12530_v45 }
 0x388   : > { %2423 = vmatprep.mubr.bf16.mxu0 %v15457_v2 }
 0x38f   : > { %9511 = vmatmul.mubr.msk.bf16.gmra.mrb[112].mxu0 %vm822_vm1, %v12536_v46 }
 0x390   : > { %2433 = vmatprep.mubr.bf16.mxu0 %v15457_v2 }
 0x397   : > { %9512 = vmatmul.mubr.msk.bf16.gmra.mrb[116].mxu0 %vm822_vm1, %v12598_v51 }
 0x398   : > { %2443 = vmatprep.mubr.bf16.mxu0 %v15457_v2 }
 0x39f   : > { %9513 = vmatmul.mubr.msk.bf16.gmra.mrb[120].mxu0 %vm822_vm1, %v12607_v52 }
 0x3a0   : > { %2453 = vmatprep.mubr.bf16.mxu0 %v15457_v2 }
 0x3a7   : > { %9514 = vmatmul.mubr.msk.bf16.gmra.mrb[124].mxu0 %vm822_vm1, %v12616_v53 }
 0x3a8   : > { %2463 = vmatprep.mubr.bf16.mxu0 %v15457_v2 }
 0x3af   : > { %9515 = vmatmul.mubr.msk.bf16.gmra.mrb[128].mxu0 %vm822_vm1, %v12625_v54 }
 0x3b0   : > { %2473 = vmatprep.mubr.bf16.mxu0 %v15457_v2 }
 0x3b7   : > { %9516 = vmatmul.mubr.msk.bf16.gmra.mrb[132].mxu0 %vm822_vm1, %v12634_v55 }
 0x3b8   : > { %2483 = vmatprep.mubr.bf16.mxu0 %v15457_v2 }
 0x3bf   : > { %9517 = vmatmul.mubr.msk.bf16.gmra.mrb[136].mxu0 %vm822_vm1, %v12643_v56 }
 0x3c0   : > { %2493 = vmatprep.mubr.bf16.mxu0 %v15457_v2 }
 0x3c7   : > { %9518 = vmatmul.mubr.msk.bf16.gmra.mrb[140].mxu0 %vm822_vm1, %v12652_v57 }
 0x3c8   : > { %2503 = vmatprep.mubr.bf16.mxu0 %v15457_v2 }
 0x3cf   : > { %9519 = vmatmul.mubr.msk.bf16.gmra.mrb[144].mxu0 %vm822_vm1, %v12661_v58 }
 0x3d0   : > { %2513 = vmatprep.mubr.bf16.mxu0 %v15457_v2 }
 0x3d7   : > { %9520 = vmatmul.mubr.msk.bf16.gmra.mrb[148].mxu0 %vm822_vm1, %v12670_v59 }
 0x3d8   : > { %2523 = vmatprep.mubr.bf16.mxu0 %v15457_v2 }
 0x3df   : > { %9521 = vmatmul.mubr.msk.bf16.gmra.mrb[152].mxu0 %vm822_vm1, %v12679_v60 }
 0x3e0   : > { %2533 = vmatprep.mubr.bf16.mxu0 %v15457_v2 }
 0x3e7   : > { %9522 = vmatmul.mubr.msk.bf16.gmra.mrb[156].mxu0 %vm822_vm1, %v12688_v61 }
 0x3e8   : > { %2543 = vmatprep.mubr.bf16.mxu0 %v15457_v2 }
 0x3ef   : > { %9523 = vmatmul.mubr.msk.bf16.gmra.mrb[160].mxu0 %vm822_vm1, %v12697_v62  ;;  %v12099_v62 = vld [vmem:[%s15444_s1 + $0x54] ss:$8 sps:$4 sm:$0x3f]  }
 0x3f0   : > { %2553 = vmatprep.mubr.bf16.mxu0 %v15457_v2 }
 0x3f7   : > { %9524 = vmatmul.mubr.msk.bf16.gmra.mrb[164].mxu0 %vm822_vm1, %v12706_v63  ;;  %v12101_v63 = vld [vmem:[%s15444_s1 + $0x50] ss:$8 sps:$4 sm:$0x3f]  }
 0x3f8   : > { %2563 = vmatprep.mubr.bf16.mxu0 %v15457_v2  ;;  %v3196_v0 = vsel %vm967_vm0, %v12101_v63, 0 }
 0x3ff   : > { %9525 = vmatmul.mubr.msk.bf16.gmra.mrb[168].mxu0 %vm822_vm1, %v12765_v1 }
 0x400   : > { %2573 = vmatprep.mubr.bf16.mxu0 %v15457_v2 }
 0x407   : > { %9526 = vmatmul.mubr.msk.bf16.gmra.mrb[172].mxu0 %vm822_vm1, %v12771_v3 }
 0x408   : > { %2583 = vmatprep.mubr.bf16.mxu0 %v15457_v2 }
 0x40f   : > { %9527 = vmatmul.mubr.msk.bf16.gmra.mrb[176].mxu0 %vm822_vm1, %v12777_v4 }
 0x410   : > { %2593 = vmatprep.mubr.bf16.mxu0 %v15457_v2 }
 0x417   : > { %9528 = vmatmul.mubr.msk.bf16.gmra.mrb[180].mxu0 %vm822_vm1, %v12783_v5 }
 0x418   : > { %2603 = vmatprep.mubr.bf16.mxu0 %v15457_v2 }
 0x41f   : > { %9529 = vmatmul.mubr.msk.bf16.gmra.mrb[184].mxu0 %vm822_vm1, %v12092_v11 }
 0x420   : > { %2613 = vmatprep.mubr.bf16.mxu0 %v15457_v2 }
 0x427   : > { %9530 = vmatmul.mubr.msk.bf16.gmra.mrb[188].mxu0 %vm822_vm1, %v12093_v12 }
 0x428   : > { %2696 = vmatprep.mubr.bf16.mxu0 %v15457_v2 }
 0x42f   : > { %9538 = vmatmul.mubr.msk.bf16.vlgmr.msra.gmra.mrb[0].mxu0 %vm822_vm1, %v12094_v13 }
 0x430   : > { %3202 = vmatpush1.bf16.msra.mxu0 %v12095_v14  ;;  %2706 = vmatprep.mubr.bf16.mxu0 %v15457_v2 }
 0x431   : > { %9590 = vmatprep.subr.msk.bf16.mxu0 %vm967_vm0, %v12099_v62 }
 0x434   : > { %3204 = vmatpush1.bf16.msra.mxu0 %v3196_v0 }
 0x437   : > { %9539 = vmatmul.mubr.msk.bf16.gmra.mrb[4].mxu0 %vm822_vm1, %v12098_v15 }
 0x438   : > { %2716 = vmatprep.mubr.bf16.mxu0 %v15457_v2 }
 0x43f   : > { %9540 = vmatmul.mubr.msk.bf16.gmra.mrb[8].mxu0 %vm822_vm1, %v12181_v16 }
 0x440   : > { %2726 = vmatprep.mubr.bf16.mxu0 %v15457_v2 }
 0x447   : > { %9541 = vmatmul.mubr.msk.bf16.gmra.mrb[12].mxu0 %vm822_vm1, %v12182_v17 }
 0x448   : > { %2736 = vmatprep.mubr.bf16.mxu0 %v15457_v2 }
 0x44f   : > { %9542 = vmatmul.mubr.msk.bf16.gmra.mrb[16].mxu0 %vm822_vm1, %v12962_v31 }
 0x450   : > { %2746 = vmatprep.mubr.bf16.mxu0 %v15457_v2 }
 0x457   : > { %9543 = vmatmul.mubr.msk.bf16.gmra.mrb[20].mxu0 %vm822_vm1, %v12968_v47 }
 0x458   : > { %2756 = vmatprep.mubr.bf16.mxu0 %v15457_v2 }
 0x45f   : > { %9544 = vmatmul.mubr.msk.bf16.gmra.mrb[24].mxu0 %vm822_vm1, %v12974_v48 }
 0x460   : > { %2766 = vmatprep.mubr.bf16.mxu0 %v15457_v2 }
 0x467   : > { %9545 = vmatmul.mubr.msk.bf16.gmra.mrb[28].mxu0 %vm822_vm1, %v12980_v49 }
 0x468   : > { %2776 = vmatprep.mubr.bf16.mxu0 %v15457_v2 }
 0x46f   : > { %9546 = vmatmul.mubr.msk.bf16.gmra.mrb[32].mxu0 %vm822_vm1, %v12986_v50 }
 0x470   : > { %2786 = vmatprep.mubr.bf16.mxu0 %v15457_v2 }
 0x477   : > { %9547 = vmatmul.mubr.msk.bf16.gmra.mrb[36].mxu0 %vm822_vm1, %v12371_v18  ;;  %v12102_v18 = vld [vmem:[%s15446_s3] sm:$0xff]  }
 0x478   : > { %2796 = vmatprep.mubr.bf16.mxu0 %v15457_v2  ;;  %4808 = vmatpush1.bf16.msra.mxu1 %v12102_v18 }
 0x479   : > { %4809 = vmatprep.subr.bf16.mxu1 %v15457_v2 }
 0x47f   : > { %9548 = vmatmul.mubr.msk.bf16.gmra.mrb[40].mxu0 %vm822_vm1, %v12377_v19  ;;  %v12103_v19 = vld [vmem:[%s15446_s3 + $0x8] sm:$0xff]  }
 0x480   : > { %2806 = vmatprep.mubr.bf16.mxu0 %v15457_v2  ;;  %4810 = vmatpush1.bf16.msra.mxu1 %v12103_v19 }
 0x481   : > { %4811 = vmatprep.subr.bf16.mxu1 %v15457_v2 }
 0x487   : > { %9549 = vmatmul.mubr.msk.bf16.gmra.mrb[44].mxu0 %vm822_vm1, %v12383_v20  ;;  %v12104_v20 = vld [vmem:[%s15446_s3 + $0x10] sm:$0xff]  }
 0x488   : > { %2816 = vmatprep.mubr.bf16.mxu0 %v15457_v2  ;;  %4812 = vmatpush1.bf16.msra.mxu1 %v12104_v20 }
 0x489   : > { %4813 = vmatprep.subr.bf16.mxu1 %v15457_v2 }
 0x48f   : > { %9550 = vmatmul.mubr.msk.bf16.gmra.mrb[48].mxu0 %vm822_vm1, %v12389_v21  ;;  %v12105_v21 = vld [vmem:[%s15446_s3 + $0x18] sm:$0xff]  }
 0x490   : > { %2826 = vmatprep.mubr.bf16.mxu0 %v15457_v2  ;;  %4814 = vmatpush1.bf16.msra.mxu1 %v12105_v21 }
 0x491   : > { %4815 = vmatprep.subr.bf16.mxu1 %v15457_v2 }
 0x497   : > { %9551 = vmatmul.mubr.msk.bf16.gmra.mrb[52].mxu0 %vm822_vm1, %v12395_v22  ;;  %v12188_v22 = vld [vmem:[%s12329_s28 + $0x48] sm:$0xff]  }
 0x498   : > { %2836 = vmatprep.mubr.bf16.mxu0 %v15457_v2 }
 0x49f   : > { %9552 = vmatmul.mubr.msk.bf16.gmra.mrb[56].mxu0 %vm822_vm1, %v12401_v23 }
 0x4a0   : > { %2846 = vmatprep.mubr.bf16.mxu0 %v15457_v2 }
 0x4a7   : > { %9553 = vmatmul.mubr.msk.bf16.gmra.mrb[60].mxu0 %vm822_vm1, %v12407_v24 }
 0x4a8   : > { %2856 = vmatprep.mubr.bf16.mxu0 %v15457_v2 }
 0x4af   : > { %9554 = vmatmul.mubr.msk.bf16.gmra.mrb[64].mxu0 %vm822_vm1, %v12413_v25 }
 0x4b0   : > { %2866 = vmatprep.mubr.bf16.mxu0 %v15457_v2 }
 0x4b7   : > { %9555 = vmatmul.mubr.msk.bf16.gmra.mrb[68].mxu0 %vm822_vm1, %v12419_v26 }
 0x4b8   : > { %2876 = vmatprep.mubr.bf16.mxu0 %v15457_v2 }
 0x4bf   : > { %9556 = vmatmul.mubr.msk.bf16.gmra.mrb[72].mxu0 %vm822_vm1, %v12425_v27 }
 0x4c0   : > { %2886 = vmatprep.mubr.bf16.mxu0 %v15457_v2 }
 0x4c7   : > { %9557 = vmatmul.mubr.msk.bf16.gmra.mrb[76].mxu0 %vm822_vm1, %v12431_v28 }
 0x4c8   : > { %2896 = vmatprep.mubr.bf16.mxu0 %v15457_v2 }
 0x4cf   : > { %9558 = vmatmul.mubr.msk.bf16.gmra.mrb[80].mxu0 %vm822_vm1, %v12437_v29 }
 0x4d0   : > { %2906 = vmatprep.mubr.bf16.mxu0 %v15457_v2 }
 0x4d7   : > { %9559 = vmatmul.mubr.msk.bf16.gmra.mrb[84].mxu0 %vm822_vm1, %v12443_v30 }
 0x4d8   : > { %2916 = vmatprep.mubr.bf16.mxu0 %v15457_v2 }
 0x4df   : > { %9560 = vmatmul.mubr.msk.bf16.gmra.mrb[88].mxu0 %vm822_vm1, %v12452_v32 }
 0x4e0   : > { %2926 = vmatprep.mubr.bf16.mxu0 %v15457_v2 }
 0x4e7   : > { %9561 = vmatmul.mubr.msk.bf16.gmra.mrb[92].mxu0 %vm822_vm1, %v12458_v33 }
 0x4e8   : > { %2936 = vmatprep.mubr.bf16.mxu0 %v15457_v2 }
 0x4ef   : > { %9562 = vmatmul.mubr.msk.bf16.gmra.mrb[96].mxu0 %vm822_vm1, %v12464_v34 }
 0x4f0   : > { %2946 = vmatprep.mubr.bf16.mxu0 %v15457_v2 }
 0x4f7   : > { %9563 = vmatmul.mubr.msk.bf16.gmra.mrb[100].mxu0 %vm822_vm1, %v12470_v35 }
 0x4f8   : > { %2956 = vmatprep.mubr.bf16.mxu0 %v15457_v2 }
 0x4ff   : > { %9564 = vmatmul.mubr.msk.bf16.gmra.mrb[104].mxu0 %vm822_vm1, %v12476_v36 }
 0x500   : > { %2966 = vmatprep.mubr.bf16.mxu0 %v15457_v2 }
 0x507   : > { %9565 = vmatmul.mubr.msk.bf16.gmra.mrb[108].mxu0 %vm822_vm1, %v12482_v37 }
 0x508   : > { %2976 = vmatprep.mubr.bf16.mxu0 %v15457_v2 }
 0x50f   : > { %9566 = vmatmul.mubr.msk.bf16.gmra.mrb[112].mxu0 %vm822_vm1, %v12488_v38 }
 0x510   : > { %2986 = vmatprep.mubr.bf16.mxu0 %v15457_v2 }
 0x517   : > { %9567 = vmatmul.mubr.msk.bf16.gmra.mrb[116].mxu0 %vm822_vm1, %v12494_v39 }
 0x518   : > { %2996 = vmatprep.mubr.bf16.mxu0 %v15457_v2 }
 0x51f   : > { %9568 = vmatmul.mubr.msk.bf16.gmra.mrb[120].mxu0 %vm822_vm1, %v12500_v40 }
 0x520   : > { %3006 = vmatprep.mubr.bf16.mxu0 %v15457_v2 }
 0x527   : > { %9569 = vmatmul.mubr.msk.bf16.gmra.mrb[124].mxu0 %vm822_vm1, %v12506_v41 }
 0x528   : > { %3016 = vmatprep.mubr.bf16.mxu0 %v15457_v2 }
 0x52f   : > { %9570 = vmatmul.mubr.msk.bf16.gmra.mrb[128].mxu0 %vm822_vm1, %v12512_v42 }
 0x530   : > { %3026 = vmatprep.mubr.bf16.mxu0 %v15457_v2 }
 0x537   : > { %9571 = vmatmul.mubr.msk.bf16.gmra.mrb[132].mxu0 %vm822_vm1, %v12518_v43  ;;  %v12106_v43 = vld [vmem:[%s15446_s3 + $0x20] sm:$0xff]  }
 0x538   : > { %3036 = vmatprep.mubr.bf16.mxu0 %v15457_v2  ;;  %4816 = vmatpush1.bf16.msra.mxu1 %v12106_v43 }
 0x539   : > { %4817 = vmatprep.subr.bf16.mxu1 %v15457_v2 }
 0x53f   : > { %9572 = vmatmul.mubr.msk.bf16.gmra.mrb[136].mxu0 %vm822_vm1, %v12524_v44  ;;  %v12189_v44 = vld [vmem:[%s12329_s28 + $0x50] sm:$0xff]  }
 0x540   : > { %3046 = vmatprep.mubr.bf16.mxu0 %v15457_v2 }
 0x547   : > { %9573 = vmatmul.mubr.msk.bf16.gmra.mrb[140].mxu0 %vm822_vm1, %v12530_v45  ;;  %v12107_v45 = vld [vmem:[%s15446_s3 + $0x28] sm:$0xff]  }
 0x548   : > { %3056 = vmatprep.mubr.bf16.mxu0 %v15457_v2  ;;  %4818 = vmatpush1.bf16.msra.mxu1 %v12107_v45 }
 0x549   : > { %4819 = vmatprep.subr.bf16.mxu1 %v15457_v2 }
 0x54f   : > { %9574 = vmatmul.mubr.msk.bf16.gmra.mrb[144].mxu0 %vm822_vm1, %v12536_v46  ;;  %v12190_v46 = vld [vmem:[%s12329_s28 + $0x58] sm:$0xff]  }
 0x550   : > { %3066 = vmatprep.mubr.bf16.mxu0 %v15457_v2 }
 0x557   : > { %9575 = vmatmul.mubr.msk.bf16.gmra.mrb[148].mxu0 %vm822_vm1, %v12598_v51  ;;  %v12108_v51 = vld [vmem:[%s15446_s3 + $0x30] sm:$0xff]  }
 0x558   : > { %3076 = vmatprep.mubr.bf16.mxu0 %v15457_v2  ;;  %4820 = vmatpush1.bf16.msra.mxu1 %v12108_v51 }
 0x559   : > { %4821 = vmatprep.subr.bf16.mxu1 %v15457_v2 }
 0x55f   : > { %9576 = vmatmul.mubr.msk.bf16.gmra.mrb[152].mxu0 %vm822_vm1, %v12607_v52  ;;  %v12191_v52 = vld [vmem:[%s12329_s28 + $0x60] sm:$0xff]  }
 0x560   : > { %3086 = vmatprep.mubr.bf16.mxu0 %v15457_v2 }
 0x567   : > { %9577 = vmatmul.mubr.msk.bf16.gmra.mrb[156].mxu0 %vm822_vm1, %v12616_v53  ;;  %v12192_v53 = vld [vmem:[%s12329_s28 + $0x68] sm:$0xff]  }
 0x568   : > { %3096 = vmatprep.mubr.bf16.mxu0 %v15457_v2 }
 0x56f   : > { %9578 = vmatmul.mubr.msk.bf16.gmra.mrb[160].mxu0 %vm822_vm1, %v12625_v54  ;;  %v12109_v54 = vld [vmem:[%s15446_s3 + $0x38] sm:$0xff]  }
 0x570   : > { %3106 = vmatprep.mubr.bf16.mxu0 %v15457_v2  ;;  %4822 = vmatpush1.bf16.msra.mxu1 %v12109_v54 }
 0x571   : > { %4823 = vmatprep.subr.bf16.mxu1 %v15457_v2 }
 0x577   : > { %9579 = vmatmul.mubr.msk.bf16.gmra.mrb[164].mxu0 %vm822_vm1, %v12634_v55  ;;  %v12110_v55 = vld [vmem:[%s15446_s3 + $0x40] sm:$0xff]  }
 0x578   : > { %3116 = vmatprep.mubr.bf16.mxu0 %v15457_v2  ;;  %4824 = vmatpush1.bf16.msra.mxu1 %v12110_v55  ;;  %v12114_v55 = vld [vmem:[%s15446_s3 + $0x60] sm:$0xff]  }
 0x579   : > { %5297 = vmatprep.subr.bf16.mxu1 %v15457_v2 }
 0x57f   : > { %9580 = vmatmul.mubr.msk.bf16.gmra.mrb[168].mxu0 %vm822_vm1, %v12643_v56 }
 0x580   : > { %3126 = vmatprep.mubr.bf16.mxu0 %v15457_v2 }
 0x587   : > { %9581 = vmatmul.mubr.msk.bf16.gmra.mrb[172].mxu0 %vm822_vm1, %v12652_v57 }
 0x588   : > { %3136 = vmatprep.mubr.bf16.mxu0 %v15457_v2 }
 0x58f   : > { %9582 = vmatmul.mubr.msk.bf16.gmra.mrb[176].mxu0 %vm822_vm1, %v12661_v58 }
 0x590   : > { %3146 = vmatprep.mubr.bf16.mxu0 %v15457_v2 }
 0x597   : > { %9583 = vmatmul.mubr.msk.bf16.gmra.mrb[180].mxu0 %vm822_vm1, %v12670_v59 }
 0x598   : > { %3156 = vmatprep.mubr.bf16.mxu0 %v15457_v2 }
 0x59f   : > { %9584 = vmatmul.mubr.msk.bf16.gmra.mrb[184].mxu0 %vm822_vm1, %v12679_v60 }
 0x5a0   : > { %3166 = vmatprep.mubr.bf16.mxu0 %v15457_v2 }
 0x5a7   : > { %9585 = vmatmul.mubr.msk.bf16.gmra.mrb[188].mxu0 %vm822_vm1, %v12688_v61 }
 0x5a8   : > { %3233 = vmatprep.mubr.bf16.mxu0 %v15457_v2 }
 0x5af   : > { %9591 = vmatmul.mubr.msk.bf16.vlgmr.msra.gmra.mrb[0].mxu0 %vm822_vm1, %v12962_v31 }
 0x5b0   : > { %3243 = vmatprep.mubr.bf16.mxu0 %v15457_v2 }
 0x5b7   : > { %9592 = vmatmul.mubr.msk.bf16.gmra.mrb[4].mxu0 %vm822_vm1, %v12968_v47 }
 0x5b8   : > { %3253 = vmatprep.mubr.bf16.mxu0 %v15457_v2 }
 0x5bf   : > { %9593 = vmatmul.mubr.msk.bf16.gmra.mrb[8].mxu0 %vm822_vm1, %v12974_v48  ;;  %v12112_v48 = vld [vmem:[%s15446_s3 + $0x50] sm:$0xff]  }
 0x5c0   : > { %3263 = vmatprep.mubr.bf16.mxu0 %v15457_v2 }
 0x5c7   : > { %9594 = vmatmul.mubr.msk.bf16.gmra.mrb[12].mxu0 %vm822_vm1, %v12980_v49 }
 0x5c8   : > { %3273 = vmatprep.mubr.bf16.mxu0 %v15457_v2 }
 0x5cf   : > { %9595 = vmatmul.mubr.msk.bf16.gmra.mrb[16].mxu0 %vm822_vm1, %v12986_v50 }
 0x5d0   : > { %3283 = vmatprep.mubr.bf16.mxu0 %v15457_v2 }
 0x5d7   : > { %9596 = vmatmul.mubr.msk.bf16.gmra.mrb[20].mxu0 %vm822_vm1, %v12188_v22 }
 0x5d8   : > { %3293 = vmatprep.mubr.bf16.mxu0 %v15457_v2 }
 0x5df   : > { %9597 = vmatmul.mubr.msk.bf16.gmra.mrb[24].mxu0 %vm822_vm1, %v12189_v44 }
 0x5e0   : > { %3303 = vmatprep.mubr.bf16.mxu0 %v15457_v2 }
 0x5e7   : > { %9598 = vmatmul.mubr.msk.bf16.gmra.mrb[28].mxu0 %vm822_vm1, %v12190_v46 }
 0x5e8   : > { %3313 = vmatprep.mubr.bf16.mxu0 %v15457_v2 }
 0x5ef   : > { %9599 = vmatmul.mubr.msk.bf16.gmra.mrb[32].mxu0 %vm822_vm1, %v12191_v52 }
 0x5f0   : > { %3323 = vmatprep.mubr.bf16.mxu0 %v15457_v2 }
 0x5f7   : > { %9600 = vmatmul.mubr.msk.bf16.gmra.mrb[36].mxu0 %vm822_vm1, %v12192_v53 }
 0x5f8   : > { %3333 = vmatprep.mubr.bf16.mxu0 %v15457_v2 }
 0x5ff   : > { %9601 = vmatmul.mubr.msk.bf16.gmra.mrb[40].mxu0 %vm822_vm1, %v12401_v23  ;;  %v4100_v23 = vlaneseq }
 0x600   : > { %3343 = vmatprep.mubr.bf16.mxu0 %v15457_v2 }
 0x607   : > { %9602 = vmatmul.mubr.msk.bf16.gmra.mrb[44].mxu0 %vm822_vm1, %v12407_v24  ;;  %v4101_v24 = vshrl.u32 %v4100_v23, 7 }
 0x608   : > { %3353 = vmatprep.mubr.bf16.mxu0 %v15457_v2 }
 0x60f   : > { %9603 = vmatmul.mubr.msk.bf16.gmra.mrb[48].mxu0 %vm822_vm1, %v12413_v25  ;;  %v13229_v25 = vpop.f32.mrb[0].mxu1 }
 0x610   : > { %3363 = vmatprep.mubr.bf16.mxu0 %v15457_v2 }
 0x617   : > { %9604 = vmatmul.mubr.msk.bf16.gmra.mrb[52].mxu0 %vm822_vm1, %v12419_v26  ;;  %v13232_v26 = vpop.f32.mrb[1].mxu1 }
 0x618   : > { %3373 = vmatprep.mubr.bf16.mxu0 %v15457_v2 }
 0x61f   : > { %9605 = vmatmul.mubr.msk.bf16.gmra.mrb[56].mxu0 %vm822_vm1, %v12425_v27  ;;  %v13234_v27 = vpop.f32.mrb[2].mxu1 }
 0x620   : > { %3383 = vmatprep.mubr.bf16.mxu0 %v15457_v2 }
 0x627   : > { %9606 = vmatmul.mubr.msk.bf16.gmra.mrb[60].mxu0 %vm822_vm1, %v12431_v28  ;;  %v13236_v28 = vpop.f32.mrb[3].mxu1 }
 0x628   : > { %3393 = vmatprep.mubr.bf16.mxu0 %v15457_v2 }
 0x62f   : > { %9607 = vmatmul.mubr.msk.bf16.gmra.mrb[64].mxu0 %vm822_vm1, %v12437_v29  ;;  %v4102_v29 = vsub.s32 0, %v4101_v24 }
 0x630   : > { %3403 = vmatprep.mubr.bf16.mxu0 %v15457_v2 }
 0x637   : > { %9608 = vmatmul.mubr.msk.bf16.gmra.mrb[68].mxu0 %vm822_vm1, %v12443_v30  ;;  %v4098_v30 = vld [vmem:[%s15445_s2] sm:$0x3] }
 0x638   : > { %3413 = vmatprep.mubr.bf16.mxu0 %v15457_v2 }
 0x63f   : > { %9609 = vmatmul.mubr.msk.bf16.gmra.mrb[72].mxu0 %vm822_vm1, %v12452_v32  ;;  %v4106_v32 = vsub.s32 1, %v4101_v24 }
 0x640   : > { %3423 = vmatprep.mubr.bf16.mxu0 %v15457_v2 }
 0x647   : > { %9610 = vmatmul.mubr.msk.bf16.gmra.mrb[76].mxu0 %vm822_vm1, %v12458_v33  ;;  %v13243_v33 = vrot.slane %v4098_v30, %v4102_v29  ;;  %v12193_v29 = vld [vmem:[%s12329_s28 + $0x108] sm:$0xff]  }
 0x648   : > { %3433 = vmatprep.mubr.bf16.mxu0 %v15457_v2 }
 0x64f   : > { %9611 = vmatmul.mubr.msk.bf16.gmra.mrb[80].mxu0 %vm822_vm1, %v12464_v34  ;;  %v13245_v34 = vpop.f32.mrb[4].mxu1 }
 0x650   : > { %3443 = vmatprep.mubr.bf16.mxu0 %v15457_v2 }
 0x657   : > { %9612 = vmatmul.mubr.msk.bf16.gmra.mrb[84].mxu0 %vm822_vm1, %v12470_v35  ;;  %v13247_v35 = vrot.slane %v4098_v30, %v4106_v32 }
 0x658   : > { %3453 = vmatprep.mubr.bf16.mxu0 %v15457_v2 }
 0x65f   : > { %9613 = vmatmul.mubr.msk.bf16.gmra.mrb[88].mxu0 %vm822_vm1, %v12476_v36  ;;  %v13250_v36 = vpop.f32.mrb[5].mxu1 }
 0x660   : > { %3463 = vmatprep.mubr.bf16.mxu0 %v15457_v2 }
 0x667   : > { %9614 = vmatmul.mubr.msk.bf16.gmra.mrb[92].mxu0 %vm822_vm1, %v12482_v37  ;;  %v13252_v37 = vpop.f32.mrb[6].mxu1 }
 0x668   : > { %3473 = vmatprep.mubr.bf16.mxu0 %v15457_v2 }
 0x66f   : > { %9615 = vmatmul.mubr.msk.bf16.gmra.mrb[96].mxu0 %vm822_vm1, %v12488_v38 }
 0x670   : > { %3483 = vmatprep.mubr.bf16.mxu0 %v15457_v2 }
 0x677   : > { %9616 = vmatmul.mubr.msk.bf16.gmra.mrb[100].mxu0 %vm822_vm1, %v12494_v39  ;;  %v13254_v39 = vpop.f32.mrb[7].mxu1 }
 0x678   : > { %3493 = vmatprep.mubr.bf16.mxu0 %v15457_v2  ;;  %v13262_v4 = vpop.f32.mrb[8].mxu1 }
 0x679   : > { %v13265_v7 = vpop.f32.mrb[9].mxu1 }
 0x67a   : > { %v13269_v9 = vpop.f32.mrb[10].mxu1 }
 0x67b   : > { %v13276_v12 = vpop.f32.mrb[11].mxu1 }
 0x67c   : > { %v13291_v62 = vpop.f32.mrb[12].mxu1 }
 0x67d   : > { %v13294_v18 = vpop.f32.mrb[13].mxu1 }
 0x67e   : > { %v13298_v20 = vpop.f32.mrb[14].mxu1 }
 0x67f   : > { %9617 = vmatmul.mubr.msk.bf16.gmra.mrb[104].mxu0 %vm822_vm1, %v12500_v40  ;;  %v13305_v43 = vpop.f32.mrb[15].mxu1 }
 0x680   : > { %3503 = vmatprep.mubr.bf16.mxu0 %v15457_v2  ;;  %v13321_v30 = vpop.f32.mrb[16].mxu1 }
 0x682   : > { %v3235_v38 = vpop.f32.mrb[0].mxu0 }
 0x683   : > { %v4110_v56 = vadd.f32 %v13243_v33, %v3235_v38  ;;  %v3237_v57 = vpop.f32.mrb[1].mxu0 }
 0x684   : > { %v4111_v40 = vadd.f32 %v13247_v35, %v3237_v57  ;;  %v3239_v58 = vpop.f32.mrb[2].mxu0 }
 0x685   : > { %v4112_v59 = vadd.f32 %v13243_v33, %v3239_v58  ;;  %v3241_v60 = vpop.f32.mrb[3].mxu0  ;;  %v4302_v1 = vmax.f32 %v4110_v56, 0.0  ;;  %v13324_v56 = vpop.f32.mrb[17].mxu1 }
 0x686   : > { %v4113_v61 = vadd.f32 %v13247_v35, %v3241_v60  ;;  %v4303_v5 = vmax.f32 %v4111_v40, 0.0  ;;  %v13328_v40 = vpop.f32.mrb[18].mxu1 }
 0x687   : > { %v4304_v3 = vmax.f32 %v4112_v59, 0.0  ;;  %9618 = vmatmul.mubr.msk.bf16.gmra.mrb[108].mxu0 %vm822_vm1, %v12506_v41  ;;  %v12111_v41 = vld [vmem:[%s15446_s3 + $0x48] sm:$0xff]   ;;  %v13332_v60 = vpop.f32.mrb[19].mxu1 }
 0x688   : > { %v4305_v6 = vmax.f32 %v4113_v61, 0.0  ;;  %3513 = vmatprep.mubr.bf16.mxu0 %v15457_v2 }
 0x689   : > { %v13267_v8 = vpack.c.bf16 %v4304_v3, %v4302_v1 }
 0x68a   : > { %v13271_v10 = vpack.c.bf16 %v4305_v6, %v4303_v5  ;;  %v3245_v11 = vpop.f32.mrb[4].mxu0 }
 0x68b   : > { %15538 = vst [vmem:[#allocation2_spill] sm:$0xff] %v13267_v8  ;;  %v4114_v13 = vadd.f32 %v13243_v33, %v3245_v11  ;;  %v3247_v14 = vpop.f32.mrb[5].mxu0 }
 0x68c   : > { %15539 = vst [vmem:[#allocation3_spill] sm:$0xff] %v13271_v10  ;;  %v4115_v15 = vadd.f32 %v13247_v35, %v3247_v14  ;;  %v3249_v16 = vpop.f32.mrb[6].mxu0  ;;  %9648 = vmatprep.mubr.msk.bf16.mxu1 %vm4662_vm2, %v13271_v10  ;;  %v12201_v10 = vld [vmem:[%s12329_s28 + $0x148] sm:$0xff]  }
 0x68d   : > { %v4116_v17 = vadd.f32 %v13243_v33, %v3249_v16  ;;  %v3251_v31 = vpop.f32.mrb[7].mxu0  ;;  %4840 = vmatmul.mubr.bf16.vlgmr.msra.gmra.mrb[52].mxu1 %v13267_v8  ;;  %v4306_v49 = vmax.f32 %v4114_v13, 0.0  ;;  %v13344_v16 = vpop.f32.mrb[20].mxu1 }
 0x68e   : > { %v4117_v47 = vadd.f32 %v13247_v35, %v3251_v31  ;;  %5298 = vmatpush1.bf16.msra.mxu1 %v12111_v41  ;;  %v4307_v63 = vmax.f32 %v4115_v15, 0.0  ;;  %v12194_v15 = vld [vmem:[%s12329_s28 + $0x110] sm:$0xff]  }
 0x68f   : > { %v4308_v50 = vmax.f32 %v4116_v17, 0.0  ;;  %9619 = vmatmul.mubr.msk.bf16.gmra.mrb[112].mxu0 %vm822_vm1, %v12512_v42  ;;  %5299 = vmatprep.subr.bf16.mxu1 %v15457_v2  ;;  %v12113_v42 = vld [vmem:[%s15446_s3 + $0x58] sm:$0xff]  }
 0x690   : > { %v4309_v0 = vmax.f32 %v4117_v47, 0.0  ;;  %3523 = vmatprep.mubr.bf16.mxu0 %v15457_v2  ;;  %v13347_v47 = vpop.f32.mrb[21].mxu1 }
 0x691   : > { %v13296_v19 = vpack.c.bf16 %v4308_v50, %v4306_v49  ;;  %v13351_v49 = vpop.f32.mrb[22].mxu1 }
 0x692   : > { %v13300_v21 = vpack.c.bf16 %v4309_v0, %v4307_v63  ;;  %v3255_v22 = vpop.f32.mrb[8].mxu0  ;;  %5300 = vmatpush1.bf16.msra.mxu1 %v12112_v48  ;;  %v13355_v0 = vpop.f32.mrb[23].mxu1 }
 0x693   : > { %15540 = vst [vmem:[#allocation4_spill] sm:$0xff] %v13296_v19  ;;  %v4118_v44 = vadd.f32 %v13243_v33, %v3255_v22  ;;  %v3257_v45 = vpop.f32.mrb[9].mxu0  ;;  %5301 = vmatprep.subr.bf16.mxu1 %v15457_v2 }
 0x694   : > { %15541 = vst [vmem:[#allocation5_spill] sm:$0xff] %v13300_v21  ;;  %v4119_v46 = vadd.f32 %v13247_v35, %v3257_v45  ;;  %v3259_v51 = vpop.f32.mrb[10].mxu0  ;;  %9649 = vmatprep.mubr.msk.bf16.mxu1 %vm4662_vm2, %v13300_v21 }
 0x695   : > { %v4120_v52 = vadd.f32 %v13243_v33, %v3259_v51  ;;  %v3261_v53 = vpop.f32.mrb[11].mxu0  ;;  %4848 = vmatmul.mubr.bf16.gmra.mrb[56].mxu1 %v13296_v19  ;;  %v4310_v23 = vmax.f32 %v4118_v44, 0.0 }
 0x696   : > { %v4121_v54 = vadd.f32 %v13247_v35, %v3261_v53  ;;  %5302 = vmatpush1.bf16.msra.mxu1 %v12113_v42  ;;  %v4311_v32 = vmax.f32 %v4119_v46, 0.0 }
 0x697   : > { %v4312_v24 = vmax.f32 %v4120_v52, 0.0  ;;  %9620 = vmatmul.mubr.msk.bf16.gmra.mrb[116].mxu0 %vm822_vm1, %v12193_v29  ;;  %5303 = vmatprep.subr.bf16.mxu1 %v15457_v2 }
 0x698   : > { %v4313_v38 = vmax.f32 %v4121_v54, 0.0  ;;  %3533 = vmatprep.mubr.bf16.mxu0 %v15457_v2 }
 0x699   : > { %v13326_v57 = vpack.c.bf16 %v4312_v24, %v4310_v23  ;;  %v13366_v23 = vpop.f32.mrb[24].mxu1 }
 0x69a   : > { %v13330_v58 = vpack.c.bf16 %v4313_v38, %v4311_v32  ;;  %v3265_v59 = vpop.f32.mrb[12].mxu0  ;;  %5304 = vmatpush1.bf16.msra.mxu1 %v12114_v55  ;;  %v12195_v55 = vld [vmem:[%s12329_s28 + $0x118] sm:$0xff]   ;;  %v13369_v32 = vpop.f32.mrb[25].mxu1 }
 0x69b   : > { %15542 = vst [vmem:[#allocation6_spill] sm:$0xff] %v13326_v57  ;;  %v4122_v61 = vadd.f32 %v13243_v33, %v3265_v59  ;;  %v3267_v1 = vpop.f32.mrb[13].mxu0  ;;  %5305 = vmatprep.subr.bf16.mxu1 %v15457_v2  ;;  %v13373_v59 = vpop.f32.mrb[26].mxu1 }
 0x69c   : > { %15543 = vst [vmem:[#allocation7_spill] sm:$0xff] %v13330_v58  ;;  %v4123_v3 = vadd.f32 %v13247_v35, %v3267_v1  ;;  %v3269_v5 = vpop.f32.mrb[14].mxu0  ;;  %9650 = vmatprep.mubr.msk.bf16.mxu1 %vm4662_vm2, %v13330_v58  ;;  %v12200_v58 = vld [vmem:[%s12329_s28 + $0x140] sm:$0xff]  }
 0x69d   : > { %v4124_v6 = vadd.f32 %v13243_v33, %v3269_v5  ;;  %v3271_v11 = vpop.f32.mrb[15].mxu0  ;;  %4856 = vmatmul.mubr.bf16.gmra.mrb[60].mxu1 %v13326_v57  ;;  %v4314_v13 = vmax.f32 %v4122_v61, 0.0 }
 0x69e   : > { %v4125_v41 = vadd.f32 %v13247_v35, %v3271_v11  ;;  %v4315_v17 = vmax.f32 %v4123_v3, 0.0  ;;  %v13377_v3 = vpop.f32.mrb[27].mxu1 }
 0x69f   : > { %v4316_v14 = vmax.f32 %v4124_v6, 0.0  ;;  %9621 = vmatmul.mubr.msk.bf16.gmra.mrb[120].mxu0 %vm822_vm1, %v12194_v15 }
 0x6a0   : > { %v4317_v31 = vmax.f32 %v4125_v41, 0.0  ;;  %3543 = vmatprep.mubr.bf16.mxu0 %v15457_v2 }
 0x6a1   : > { %v13349_v48 = vpack.c.bf16 %v4316_v14, %v4314_v13 }
 0x6a2   : > { %v13353_v50 = vpack.c.bf16 %v4317_v31, %v4315_v17  ;;  %v3275_v63 = vpop.f32.mrb[16].mxu0 }
 0x6a3   : > { %15544 = vst [vmem:[#allocation8_spill] sm:$0xff] %v13349_v48  ;;  %v4126_v22 = vadd.f32 %v13243_v33, %v3275_v63  ;;  %v3277_v42 = vpop.f32.mrb[17].mxu0  ;;  %v12196_v63 = vld [vmem:[%s12329_s28 + $0x120] sm:$0xff]  }
 0x6a4   : > { %15545 = vst [vmem:[#allocation9_spill] sm:$0xff] %v13353_v50  ;;  %v4127_v44 = vadd.f32 %v13247_v35, %v3277_v42  ;;  %v3279_v45 = vpop.f32.mrb[18].mxu0  ;;  %9651 = vmatprep.mubr.msk.bf16.mxu1 %vm4662_vm2, %v13353_v50 }
 0x6a5   : > { %v4128_v46 = vadd.f32 %v13243_v33, %v3279_v45  ;;  %v3281_v51 = vpop.f32.mrb[19].mxu0  ;;  %4864 = vmatmul.mubr.bf16.gmra.mrb[64].mxu1 %v13349_v48  ;;  %v4318_v53 = vmax.f32 %v4126_v22, 0.0  ;;  %v13388_v22 = vpop.f32.mrb[28].mxu1 }
 0x6a6   : > { %v4129_v52 = vadd.f32 %v13247_v35, %v3281_v51  ;;  %v4319_v24 = vmax.f32 %v4127_v44, 0.0  ;;  %v13391_v45 = vpop.f32.mrb[29].mxu1 }
 0x6a7   : > { %v4320_v54 = vmax.f32 %v4128_v46, 0.0  ;;  %9622 = vmatmul.mubr.msk.bf16.gmra.mrb[124].mxu0 %vm822_vm1, %v12195_v55  ;;  %v13395_v51 = vpop.f32.mrb[30].mxu1 }
 0x6a8   : > { %v4321_v29 = vmax.f32 %v4129_v52, 0.0  ;;  %3553 = vmatprep.mubr.bf16.mxu0 %v15457_v2 }
 0x6a9   : > { %v13371_v38 = vpack.c.bf16 %v4320_v54, %v4318_v53  ;;  %v13399_v54 = vpop.f32.mrb[31].mxu1 }
 0x6aa   : > { %v13375_v61 = vpack.c.bf16 %v4321_v29, %v4319_v24  ;;  %v3285_v1 = vpop.f32.mrb[20].mxu0 }
 0x6ab   : > { %15546 = vst [vmem:[#allocation10_spill] sm:$0xff] %v13371_v38  ;;  %v4130_v5 = vadd.f32 %v13243_v33, %v3285_v1  ;;  %v3287_v6 = vpop.f32.mrb[21].mxu0 }
 0x6ac   : > { %15547 = vst [vmem:[#allocation11_spill] sm:$0xff] %v13375_v61  ;;  %v4131_v11 = vadd.f32 %v13247_v35, %v3287_v6  ;;  %v3289_v41 = vpop.f32.mrb[22].mxu0  ;;  %9652 = vmatprep.mubr.msk.bf16.mxu1 %vm4662_vm2, %v13375_v61  ;;  %v12199_v61 = vld [vmem:[%s12329_s28 + $0x138] sm:$0xff]  }
 0x6ad   : > { %v4132_v13 = vadd.f32 %v13243_v33, %v3289_v41  ;;  %v3291_v14 = vpop.f32.mrb[23].mxu0  ;;  %4872 = vmatmul.mubr.bf16.gmra.mrb[68].mxu1 %v13371_v38  ;;  %v4322_v17 = vmax.f32 %v4130_v5, 0.0 }
 0x6ae   : > { %v4133_v15 = vadd.f32 %v13247_v35, %v3291_v14  ;;  %v4323_v42 = vmax.f32 %v4131_v11, 0.0  ;;  %v12197_v14 = vld [vmem:[%s12329_s28 + $0x128] sm:$0xff]  }
 0x6af   : > { %v4324_v31 = vmax.f32 %v4132_v13, 0.0  ;;  %9623 = vmatmul.mubr.msk.bf16.gmra.mrb[128].mxu0 %vm822_vm1, %v12196_v63 }
 0x6b0   : > { %v4325_v44 = vmax.f32 %v4133_v15, 0.0  ;;  %3563 = vmatprep.mubr.bf16.mxu0 %v15457_v2  ;;  %v13410_v15 = vpop.f32.mrb[32].mxu1 }
 0x6b1   : > { %v13393_v46 = vpack.c.bf16 %v4324_v31, %v4322_v17  ;;  %v13413_v63 = vpop.f32.mrb[33].mxu1 }
 0x6b2   : > { %v13397_v52 = vpack.c.bf16 %v4325_v44, %v4323_v42  ;;  %v3295_v53 = vpop.f32.mrb[24].mxu0  ;;  %v13417_v44 = vpop.f32.mrb[34].mxu1 }
 0x6b3   : > { %15548 = vst [vmem:[#allocation12_spill] sm:$0xff] %v13393_v46  ;;  %v4134_v55 = vadd.f32 %v13243_v33, %v3295_v53  ;;  %v3297_v24 = vpop.f32.mrb[25].mxu0 }
 0x6b4   : > { %15549 = vst [vmem:[#allocation13_spill] sm:$0xff] %v13397_v52  ;;  %v4135_v29 = vadd.f32 %v13247_v35, %v3297_v24  ;;  %v3299_v1 = vpop.f32.mrb[26].mxu0  ;;  %9653 = vmatprep.mubr.msk.bf16.mxu1 %vm4662_vm2, %v13397_v52  ;;  %v13421_v24 = vpop.f32.mrb[35].mxu1 }
 0x6b5   : > { %v4136_v5 = vadd.f32 %v13243_v33, %v3299_v1  ;;  %v3301_v6 = vpop.f32.mrb[27].mxu0  ;;  %4880 = vmatmul.mubr.bf16.gmra.mrb[72].mxu1 %v13393_v46  ;;  %v4326_v41 = vmax.f32 %v4134_v55, 0.0  ;;  %v15552_v46 = vmov 0  }
 0x6b6   : > { %v4137_v11 = vadd.f32 %v13247_v35, %v3301_v6  ;;  %v4327_v17 = vmax.f32 %v4135_v29, 0.0 }
 0x6b7   : > { %v4328_v13 = vmax.f32 %v4136_v5, 0.0  ;;  %9624 = vmatmul.mubr.msk.bf16.gmra.mrb[132].mxu0 %vm822_vm1, %v12197_v14  ;;  %v12115_v14 = vld [vmem:[%s15446_s3 + $0x68] sm:$0xff]  }
 0x6b8   : > { %v4329_v31 = vmax.f32 %v4137_v11, 0.0  ;;  %3573 = vmatprep.mubr.bf16.mxu0 %v15457_v2  ;;  %5306 = vmatpush1.bf16.msra.mxu1 %v12115_v14 }
 0x6b9   : > { %v13415_v42 = vpack.c.bf16 %v4328_v13, %v4326_v41  ;;  %5307 = vmatprep.subr.bf16.mxu1 %v15552_v46 }
 0x6ba   : > { %v13419_v53 = vpack.c.bf16 %v4329_v31, %v4327_v17  ;;  %v3305_v55 = vpop.f32.mrb[28].mxu0 }
 0x6bb   : > { %15550 = vst [vmem:[#allocation14_spill] sm:$0xff] %v13415_v42  ;;  %v4138_v1 = vadd.f32 %v13243_v33, %v3305_v55  ;;  %v3307_v5 = vpop.f32.mrb[29].mxu0  ;;  %v12198_v55 = vld [vmem:[%s12329_s28 + $0x130] sm:$0xff]  }
 0x6bc   : > { %15551 = vst [vmem:[#allocation15_spill] sm:$0xff] %v13419_v53  ;;  %v4139_v29 = vadd.f32 %v13247_v35, %v3307_v5  ;;  %v3309_v6 = vpop.f32.mrb[30].mxu0  ;;  %9654 = vmatprep.mubr.msk.bf16.mxu1 %vm4662_vm2, %v13419_v53  ;;  %v13435_v5 = vpop.f32.mrb[36].mxu1 }
 0x6bd   : > { %v4140_v11 = vadd.f32 %v13243_v33, %v3309_v6  ;;  %v3311_v41 = vpop.f32.mrb[31].mxu0  ;;  %4888 = vmatmul.mubr.bf16.gmra.mrb[76].mxu1 %v13415_v42  ;;  %v4330_v17 = vmax.f32 %v4138_v1, 0.0  ;;  %v13438_v6 = vpop.f32.mrb[37].mxu1 }
 0x6be   : > { %v4141_v13 = vadd.f32 %v13247_v35, %v3311_v41  ;;  %v4331_v2 = vmax.f32 %v4139_v29, 0.0  ;;  %v13442_v41 = vpop.f32.mrb[38].mxu1 }
 0x6bf   : > { %v4332_v31 = vmax.f32 %v4140_v11, 0.0  ;;  %9625 = vmatmul.mubr.msk.bf16.gmra.mrb[136].mxu0 %vm822_vm1, %v12198_v55  ;;  %v13447_v55 = vpop.f32.mrb[39].mxu1 }
 0x6c0   : > { %v4333_v53 = vmax.f32 %v4141_v13, 0.0  ;;  %3583 = vmatprep.mubr.bf16.mxu0 %v15552_v46 }
 0x6c1   : > { %v13440_v42 = vpack.c.bf16 %v4332_v31, %v4330_v17 }
 0x6c2   : > { %v13445_v1 = vpack.c.bf16 %v4333_v53, %v4331_v2  ;;  %v3315_v11 = vpop.f32.mrb[32].mxu0 }
 0x6c3   : > { %15553 = vst [vmem:[#allocation16_spill] sm:$0xff] %v13440_v42  ;;  %v4142_v29 = vadd.f32 %v13243_v33, %v3315_v11  ;;  %v3317_v13 = vpop.f32.mrb[33].mxu0  ;;  %v13458_v11 = vpop.f32.mrb[40].mxu1 }
 0x6c4   : > { %15554 = vst [vmem:[#allocation17_spill] sm:$0xff] %v13445_v1  ;;  %v4143_v52 = vadd.f32 %v13247_v35, %v3317_v13  ;;  %v3319_v14 = vpop.f32.mrb[34].mxu0  ;;  %9655 = vmatprep.mubr.msk.bf16.mxu1 %vm4662_vm2, %v13445_v1  ;;  %v13461_v50 = vpop.f32.mrb[41].mxu1 }
 0x6c5   : > { %v4144_v17 = vadd.f32 %v13243_v33, %v3319_v14  ;;  %v3321_v31 = vpop.f32.mrb[35].mxu0  ;;  %4896 = vmatmul.mubr.bf16.gmra.mrb[80].mxu1 %v13440_v42  ;;  %v4334_v53 = vmax.f32 %v4142_v29, 0.0  ;;  %v13465_v14 = vpop.f32.mrb[42].mxu1 }
 0x6c6   : > { %v4145_v2 = vadd.f32 %v13247_v35, %v3321_v31  ;;  %v4335_v48 = vmax.f32 %v4143_v52, 0.0 }
 0x6c7   : > { %v4336_v38 = vmax.f32 %v4144_v17, 0.0  ;;  %9626 = vmatmul.mubr.msk.bf16.gmra.mrb[140].mxu0 %vm822_vm1, %v12199_v61  ;;  %v13469_v17 = vpop.f32.mrb[43].mxu1 }
 0x6c8   : > { %v4337_v13 = vmax.f32 %v4145_v2, 0.0  ;;  %3593 = vmatprep.mubr.bf16.mxu0 %v15552_v46  ;;  %15557 = vst [vmem:[#allocation20_spill] sm:$0xff] %v13469_v17 }
 0x6c9   : > { %v13463_v1 = vpack.c.bf16 %v4336_v38, %v4334_v53 }
 0x6ca   : > { %v13467_v42 = vpack.c.bf16 %v4337_v13, %v4335_v48  ;;  %v3325_v29 = vpop.f32.mrb[36].mxu0 }
 0x6cb   : > { %15555 = vst [vmem:[#allocation18_spill] sm:$0xff] %v13463_v1  ;;  %v4146_v61 = vadd.f32 %v13243_v33, %v3325_v29  ;;  %v3327_v31 = vpop.f32.mrb[37].mxu0  ;;  %v13480_v29 = vpop.f32.mrb[44].mxu1 }
 0x6cc   : > { %15556 = vst [vmem:[#allocation19_spill] sm:$0xff] %v13467_v42  ;;  %v4147_v52 = vadd.f32 %v13247_v35, %v3327_v31  ;;  %v3329_v2 = vpop.f32.mrb[38].mxu0  ;;  %9656 = vmatprep.mubr.msk.bf16.mxu1 %vm4662_vm2, %v13467_v42  ;;  %15558 = vst [vmem:[#allocation21_spill] sm:$0xff] %v13480_v29  ;;  %v13483_v21 = vpop.f32.mrb[45].mxu1 }
 0x6cd   : > { %v4148_v38 = vadd.f32 %v13243_v33, %v3329_v2  ;;  %v3331_v53 = vpop.f32.mrb[39].mxu0  ;;  %4904 = vmatmul.mubr.bf16.gmra.mrb[84].mxu1 %v13463_v1  ;;  %v4338_v13 = vmax.f32 %v4146_v61, 0.0  ;;  %15559 = vst [vmem:[#allocation22_spill] sm:$0xff] %v13483_v21  ;;  %v13487_v2 = vpop.f32.mrb[46].mxu1 }
 0x6ce   : > { %v4149_v48 = vadd.f32 %v13247_v35, %v3331_v53  ;;  %v4339_v19 = vmax.f32 %v4147_v52, 0.0  ;;  %15561 = vst [vmem:[#allocation24_spill] sm:$0xff] %v13487_v2 }
 0x6cf   : > { %v4340_v57 = vmax.f32 %v4148_v38, 0.0  ;;  %9627 = vmatmul.mubr.msk.bf16.gmra.mrb[144].mxu0 %vm822_vm1, %v12200_v58  ;;  %v13491_v38 = vpop.f32.mrb[47].mxu1 }
 0x6d0   : > { %v4341_v31 = vmax.f32 %v4149_v48, 0.0  ;;  %3603 = vmatprep.mubr.bf16.mxu0 %v15552_v46  ;;  %15563 = vst [vmem:[#allocation26_spill] sm:$0xff] %v13491_v38 }
 0x6d1   : > { %v13485_v42 = vpack.c.bf16 %v4340_v57, %v4338_v13 }
 0x6d2   : > { %v13489_v1 = vpack.c.bf16 %v4341_v31, %v4339_v19  ;;  %v3335_v61 = vpop.f32.mrb[40].mxu0 }
 0x6d3   : > { %15560 = vst [vmem:[#allocation23_spill] sm:$0xff] %v13485_v42  ;;  %v4150_v58 = vadd.f32 %v13243_v33, %v3335_v61  ;;  %v3337_v53 = vpop.f32.mrb[41].mxu0  ;;  %v13502_v61 = vpop.f32.mrb[48].mxu1 }
 0x6d4   : > { %15562 = vst [vmem:[#allocation25_spill] sm:$0xff] %v13489_v1  ;;  %v4151_v52 = vadd.f32 %v13247_v35, %v3337_v53  ;;  %v3339_v48 = vpop.f32.mrb[42].mxu0  ;;  %9657 = vmatprep.mubr.msk.bf16.mxu1 %vm4662_vm2, %v13489_v1  ;;  %15564 = vst [vmem:[#allocation27_spill] sm:$0xff] %v13502_v61  ;;  %v13505_v2 = vpop.f32.mrb[49].mxu1 }
 0x6d5   : > { %v4152_v57 = vadd.f32 %v13243_v33, %v3339_v48  ;;  %v3341_v13 = vpop.f32.mrb[43].mxu0  ;;  %4912 = vmatmul.mubr.bf16.gmra.mrb[88].mxu1 %v13485_v42  ;;  %v4342_v31 = vmax.f32 %v4150_v58, 0.0  ;;  %15565 = vst [vmem:[#allocation28_spill] sm:$0xff] %v13505_v2  ;;  %v13509_v48 = vpop.f32.mrb[50].mxu1  ;;  %v12202_v2 = vld [vmem:[%s12329_s28 + $0x150] sm:$0xff]  }
 0x6d6   : > { %v4153_v19 = vadd.f32 %v13247_v35, %v3341_v13  ;;  %v4343_v38 = vmax.f32 %v4151_v52, 0.0  ;;  %15567 = vst [vmem:[#allocation30_spill] sm:$0xff] %v13509_v48 }
 0x6d7   : > { %v4344_v8 = vmax.f32 %v4152_v57, 0.0  ;;  %9628 = vmatmul.mubr.msk.bf16.gmra.mrb[148].mxu0 %vm822_vm1, %v12201_v10  ;;  %v13513_v57 = vpop.f32.mrb[51].mxu1 }
 0x6d8   : > { %v4345_v53 = vmax.f32 %v4153_v19, 0.0  ;;  %3613 = vmatprep.mubr.bf16.mxu0 %v15552_v46  ;;  %15569 = vst [vmem:[#allocation32_spill] sm:$0xff] %v13513_v57 }
 0x6d9   : > { %v13507_v1 = vpack.c.bf16 %v4344_v8, %v4342_v31 }
 0x6da   : > { %v13511_v42 = vpack.c.bf16 %v4345_v53, %v4343_v38  ;;  %v3345_v58 = vpop.f32.mrb[44].mxu0 }
 0x6db   : > { %15566 = vst [vmem:[#allocation29_spill] sm:$0xff] %v13507_v1  ;;  %v4154_v10 = vadd.f32 %v13243_v33, %v3345_v58  ;;  %v3347_v13 = vpop.f32.mrb[45].mxu0 }
 0x6dc   : > { %15568 = vst [vmem:[#allocation31_spill] sm:$0xff] %v13511_v42  ;;  %v4155_v52 = vadd.f32 %v13247_v35, %v3347_v13  ;;  %v3349_v19 = vpop.f32.mrb[46].mxu0  ;;  %9658 = vmatprep.mubr.msk.bf16.mxu1 %vm4662_vm2, %v13511_v42 }
 0x6dd   : > { %v4156_v8 = vadd.f32 %v13243_v33, %v3349_v19  ;;  %v3351_v31 = vpop.f32.mrb[47].mxu0  ;;  %4920 = vmatmul.mubr.bf16.gmra.mrb[92].mxu1 %v13507_v1  ;;  %v4346_v53 = vmax.f32 %v4154_v10, 0.0 }
 0x6de   : > { %v4157_v38 = vadd.f32 %v13247_v35, %v3351_v31  ;;  %v4347_v58 = vmax.f32 %v4155_v52, 0.0 }
 0x6df   : > { %v4348_v48 = vmax.f32 %v4156_v8, 0.0  ;;  %9629 = vmatmul.mubr.msk.bf16.gmra.mrb[152].mxu0 %vm822_vm1, %v12202_v2 }
 0x6e0   : > { %v4349_v57 = vmax.f32 %v4157_v38, 0.0  ;;  %3623 = vmatprep.mubr.bf16.mxu0 %v15552_v46  ;;  %v12203_v38 = vld [vmem:[%s12329_s28 + $0x158] sm:$0xff]  }
 0x6e1   : > { %v13525_v13 = vpack.c.bf16 %v4348_v48, %v4346_v53 }
 0x6e2   : > { %v13527_v42 = vpack.c.bf16 %v4349_v57, %v4347_v58  ;;  %v3355_v19 = vpop.f32.mrb[48].mxu0 }
 0x6e3   : > { %15570 = vst [vmem:[#allocation33_spill] sm:$0xff] %v13525_v13  ;;  %v4158_v61 = vadd.f32 %v13243_v33, %v3355_v19  ;;  %v3357_v1 = vpop.f32.mrb[49].mxu0 }
 0x6e4   : > { %15571 = vst [vmem:[#allocation34_spill] sm:$0xff] %v13527_v42  ;;  %v4159_v31 = vadd.f32 %v13247_v35, %v3357_v1  ;;  %v3359_v10 = vpop.f32.mrb[50].mxu0  ;;  %9659 = vmatprep.mubr.msk.bf16.mxu1 %vm4662_vm2, %v13527_v42 }
 0x6e5   : > { %v4160_v2 = vadd.f32 %v13243_v33, %v3359_v10  ;;  %v3361_v52 = vpop.f32.mrb[51].mxu0  ;;  %4928 = vmatmul.mubr.bf16.gmra.mrb[96].mxu1 %v13525_v13  ;;  %v4350_v8 = vmax.f32 %v4158_v61, 0.0  ;;  %v12116_v13 = vld [vmem:[%s15446_s3 + $0x70] sm:$0xff]  }
 0x6e6   : > { %v4161_v48 = vadd.f32 %v13247_v35, %v3361_v52  ;;  %v4351_v53 = vmax.f32 %v4159_v31, 0.0  ;;  %5308 = vmatpush1.bf16.msra.mxu1 %v12116_v13 }
 0x6e7   : > { %v4352_v57 = vmax.f32 %v4160_v2, 0.0  ;;  %9630 = vmatmul.mubr.msk.bf16.gmra.mrb[156].mxu0 %vm822_vm1, %v12203_v38  ;;  %5309 = vmatprep.subr.bf16.mxu1 %v15552_v46 }
 0x6e8   : > { %v4353_v58 = vmax.f32 %v4161_v48, 0.0  ;;  %3633 = vmatprep.mubr.bf16.mxu0 %v15552_v46 }
 0x6e9   : > { %v13539_v1 = vpack.c.bf16 %v4352_v57, %v4350_v8 }
 0x6ea   : > { %v13541_v19 = vpack.c.bf16 %v4353_v58, %v4351_v53  ;;  %v3365_v10 = vpop.f32.mrb[52].mxu0  ;;  %v12204_v58 = vld [vmem:[%s12329_s28 + $0x160] sm:$0xff]  }
 0x6eb   : > { %15572 = vst [vmem:[#allocation35_spill] sm:$0xff] %v13539_v1  ;;  %v4162_v61 = vadd.f32 %v13243_v33, %v3365_v10  ;;  %v3367_v2 = vpop.f32.mrb[53].mxu0 }
 0x6ec   : > { %15573 = vst [vmem:[#allocation36_spill] sm:$0xff] %v13541_v19  ;;  %v4163_v52 = vadd.f32 %v13247_v35, %v3367_v2  ;;  %v3369_v38 = vpop.f32.mrb[54].mxu0  ;;  %9660 = vmatprep.mubr.msk.bf16.mxu1 %vm4662_vm2, %v13541_v19 }
 0x6ed   : > { %v4164_v31 = vadd.f32 %v13243_v33, %v3369_v38  ;;  %v3371_v48 = vpop.f32.mrb[55].mxu0  ;;  %4936 = vmatmul.mubr.bf16.gmra.mrb[100].mxu1 %v13539_v1  ;;  %v4354_v57 = vmax.f32 %v4162_v61, 0.0 }
 0x6ee   : > { %v4165_v8 = vadd.f32 %v13247_v35, %v3371_v48  ;;  %v4355_v10 = vmax.f32 %v4163_v52, 0.0 }
 0x6ef   : > { %v4356_v53 = vmax.f32 %v4164_v31, 0.0  ;;  %9631 = vmatmul.mubr.msk.bf16.gmra.mrb[160].mxu0 %vm822_vm1, %v12204_v58  ;;  %v12205_v58 = vld [vmem:[%s12329_s28 + $0x168] sm:$0xff]  }
 0x6f0   : > { %v4357_v2 = vmax.f32 %v4165_v8, 0.0  ;;  %3643 = vmatprep.mubr.bf16.mxu0 %v15552_v46 }
 0x6f1   : > { %v13557_v13 = vpack.c.bf16 %v4356_v53, %v4354_v57 }
 0x6f2   : > { %v13559_v38 = vpack.c.bf16 %v4357_v2, %v4355_v10  ;;  %v3375_v19 = vpop.f32.mrb[56].mxu0 }
 0x6f3   : > { %15574 = vst [vmem:[#allocation37_spill] sm:$0xff] %v13557_v13  ;;  %v4166_v1 = vadd.f32 %v13243_v33, %v3375_v19  ;;  %v3377_v42 = vpop.f32.mrb[57].mxu0 }
 0x6f4   : > { %15575 = vst [vmem:[#allocation38_spill] sm:$0xff] %v13559_v38  ;;  %v4167_v48 = vadd.f32 %v13247_v35, %v3377_v42  ;;  %v3379_v61 = vpop.f32.mrb[58].mxu0  ;;  %9661 = vmatprep.mubr.msk.bf16.mxu1 %vm4662_vm2, %v13559_v38 }
 0x6f5   : > { %v4168_v52 = vadd.f32 %v13243_v33, %v3379_v61  ;;  %v3381_v31 = vpop.f32.mrb[59].mxu0  ;;  %4944 = vmatmul.mubr.bf16.gmra.mrb[104].mxu1 %v13557_v13  ;;  %v4358_v57 = vmax.f32 %v4166_v1, 0.0 }
 0x6f6   : > { %v4169_v8 = vadd.f32 %v13247_v35, %v3381_v31  ;;  %v4359_v19 = vmax.f32 %v4167_v48, 0.0 }
 0x6f7   : > { %v4360_v53 = vmax.f32 %v4168_v52, 0.0  ;;  %9632 = vmatmul.mubr.msk.bf16.gmra.mrb[164].mxu0 %vm822_vm1, %v12205_v58  ;;  %v12206_v58 = vld [vmem:[%s12329_s28 + $0x170] sm:$0xff]  }
 0x6f8   : > { %v4361_v10 = vmax.f32 %v4169_v8, 0.0  ;;  %3653 = vmatprep.mubr.bf16.mxu0 %v15552_v46 }
 0x6f9   : > { %v13571_v42 = vpack.c.bf16 %v4360_v53, %v4358_v57 }
 0x6fa   : > { %v13573_v2 = vpack.c.bf16 %v4361_v10, %v4359_v19  ;;  %v3385_v61 = vpop.f32.mrb[60].mxu0 }
 0x6fb   : > { %15576 = vst [vmem:[#allocation39_spill] sm:$0xff] %v13571_v42  ;;  %v4170_v38 = vadd.f32 %v13243_v33, %v3385_v61  ;;  %v3387_v13 = vpop.f32.mrb[61].mxu0 }
 0x6fc   : > { %15577 = vst [vmem:[#allocation40_spill] sm:$0xff] %v13573_v2  ;;  %v4171_v31 = vadd.f32 %v13247_v35, %v3387_v13  ;;  %v3389_v1 = vpop.f32.mrb[62].mxu0  ;;  %9662 = vmatprep.mubr.msk.bf16.mxu1 %vm4662_vm2, %v13573_v2 }
 0x6fd   : > { %v4172_v48 = vadd.f32 %v13243_v33, %v3389_v1  ;;  %v3391_v52 = vpop.f32.mrb[63].mxu0  ;;  %4952 = vmatmul.mubr.bf16.gmra.mrb[108].mxu1 %v13571_v42  ;;  %v4362_v57 = vmax.f32 %v4170_v38, 0.0 }
 0x6fe   : > { %v4173_v8 = vadd.f32 %v13247_v35, %v3391_v52  ;;  %v4363_v19 = vmax.f32 %v4171_v31, 0.0 }
 0x6ff   : > { %v4364_v53 = vmax.f32 %v4172_v48, 0.0  ;;  %9633 = vmatmul.mubr.msk.bf16.gmra.mrb[168].mxu0 %vm822_vm1, %v12206_v58  ;;  %v12207_v58 = vld [vmem:[%s12329_s28 + $0x178] sm:$0xff]  }
 0x700   : > { %v4365_v10 = vmax.f32 %v4173_v8, 0.0  ;;  %3663 = vmatprep.mubr.bf16.mxu0 %v15552_v46 }
 0x701   : > { %v13585_v13 = vpack.c.bf16 %v4364_v53, %v4362_v57 }
 0x702   : > { %v13587_v61 = vpack.c.bf16 %v4365_v10, %v4363_v19  ;;  %v3395_v1 = vpop.f32.mrb[64].mxu0 }
 0x703   : > { %15578 = vst [vmem:[#allocation41_spill] sm:$0xff] %v13585_v13  ;;  %v4174_v2 = vadd.f32 %v13243_v33, %v3395_v1  ;;  %v3397_v42 = vpop.f32.mrb[65].mxu0 }
 0x704   : > { %15579 = vst [vmem:[#allocation42_spill] sm:$0xff] %v13587_v61  ;;  %v4175_v52 = vadd.f32 %v13247_v35, %v3397_v42  ;;  %v3399_v38 = vpop.f32.mrb[66].mxu0  ;;  %9663 = vmatprep.mubr.msk.bf16.mxu1 %vm4662_vm2, %v13587_v61 }
 0x705   : > { %v4176_v31 = vadd.f32 %v13243_v33, %v3399_v38  ;;  %v3401_v48 = vpop.f32.mrb[67].mxu0  ;;  %4960 = vmatmul.mubr.bf16.gmra.mrb[112].mxu1 %v13585_v13  ;;  %v4366_v57 = vmax.f32 %v4174_v2, 0.0 }
 0x706   : > { %v4177_v8 = vadd.f32 %v13247_v35, %v3401_v48  ;;  %v4367_v19 = vmax.f32 %v4175_v52, 0.0 }
 0x707   : > { %v4368_v53 = vmax.f32 %v4176_v31, 0.0  ;;  %9634 = vmatmul.mubr.msk.bf16.gmra.mrb[172].mxu0 %vm822_vm1, %v12207_v58  ;;  %v12208_v58 = vld [vmem:[%s12329_s28 + $0x180] sm:$0xff]  }
 0x708   : > { %v4369_v10 = vmax.f32 %v4177_v8, 0.0  ;;  %3673 = vmatprep.mubr.bf16.mxu0 %v15552_v46 }
 0x709   : > { %v13599_v42 = vpack.c.bf16 %v4368_v53, %v4366_v57 }
 0x70a   : > { %v13601_v1 = vpack.c.bf16 %v4369_v10, %v4367_v19  ;;  %v3405_v38 = vpop.f32.mrb[68].mxu0 }
 0x70b   : > { %15580 = vst [vmem:[#allocation43_spill] sm:$0xff] %v13599_v42  ;;  %v4178_v61 = vadd.f32 %v13243_v33, %v3405_v38  ;;  %v3407_v13 = vpop.f32.mrb[69].mxu0 }
 0x70c   : > { %15581 = vst [vmem:[#allocation44_spill] sm:$0xff] %v13601_v1  ;;  %v4179_v48 = vadd.f32 %v13247_v35, %v3407_v13  ;;  %v3409_v2 = vpop.f32.mrb[70].mxu0  ;;  %9664 = vmatprep.mubr.msk.bf16.mxu1 %vm4662_vm2, %v13601_v1 }
 0x70d   : > { %v4180_v52 = vadd.f32 %v13243_v33, %v3409_v2  ;;  %v3411_v31 = vpop.f32.mrb[71].mxu0  ;;  %4968 = vmatmul.mubr.bf16.gmra.mrb[116].mxu1 %v13599_v42  ;;  %v4370_v57 = vmax.f32 %v4178_v61, 0.0  ;;  %v12117_v42 = vld [vmem:[%s15446_s3 + $0x78] sm:$0xff]  }
 0x70e   : > { %v4181_v8 = vadd.f32 %v13247_v35, %v3411_v31  ;;  %v4371_v19 = vmax.f32 %v4179_v48, 0.0  ;;  %5310 = vmatpush1.bf16.msra.mxu1 %v12117_v42 }
 0x70f   : > { %v4372_v53 = vmax.f32 %v4180_v52, 0.0  ;;  %9635 = vmatmul.mubr.msk.bf16.gmra.mrb[176].mxu0 %vm822_vm1, %v12208_v58  ;;  %5311 = vmatprep.subr.bf16.mxu1 %v15552_v46 }
 0x710   : > { %v4373_v10 = vmax.f32 %v4181_v8, 0.0  ;;  %3683 = vmatprep.mubr.bf16.mxu0 %v15552_v46 }
 0x711   : > { %v13613_v13 = vpack.c.bf16 %v4372_v53, %v4370_v57 }
 0x712   : > { %v13615_v38 = vpack.c.bf16 %v4373_v10, %v4371_v19  ;;  %v3415_v2 = vpop.f32.mrb[72].mxu0  ;;  %v12209_v10 = vld [vmem:[%s12329_s28 + $0x188] sm:$0xff]  }
 0x713   : > { %15582 = vst [vmem:[#allocation45_spill] sm:$0xff] %v13613_v13  ;;  %v4182_v61 = vadd.f32 %v13243_v33, %v3415_v2  ;;  %v3417_v52 = vpop.f32.mrb[73].mxu0 }
 0x714   : > { %15583 = vst [vmem:[#allocation46_spill] sm:$0xff] %v13615_v38  ;;  %v4183_v31 = vadd.f32 %v13247_v35, %v3417_v52  ;;  %v3419_v58 = vpop.f32.mrb[74].mxu0  ;;  %9665 = vmatprep.mubr.msk.bf16.mxu1 %vm4662_vm2, %v13615_v38 }
 0x715   : > { %v4184_v48 = vadd.f32 %v13243_v33, %v3419_v58  ;;  %v3421_v8 = vpop.f32.mrb[75].mxu0  ;;  %4976 = vmatmul.mubr.bf16.gmra.mrb[120].mxu1 %v13613_v13  ;;  %v4374_v53 = vmax.f32 %v4182_v61, 0.0 }
 0x716   : > { %v4185_v57 = vadd.f32 %v13247_v35, %v3421_v8  ;;  %v4375_v2 = vmax.f32 %v4183_v31, 0.0 }
 0x717   : > { %v4376_v19 = vmax.f32 %v4184_v48, 0.0  ;;  %9636 = vmatmul.mubr.msk.bf16.gmra.mrb[180].mxu0 %vm822_vm1, %v12209_v10  ;;  %v12210_v10 = vld [vmem:[%s12329_s28 + $0x190] sm:$0xff]  }
 0x718   : > { %v4377_v52 = vmax.f32 %v4185_v57, 0.0  ;;  %3693 = vmatprep.mubr.bf16.mxu0 %v15552_v46 }
 0x719   : > { %v13631_v42 = vpack.c.bf16 %v4376_v19, %v4374_v53 }
 0x71a   : > { %v13633_v58 = vpack.c.bf16 %v4377_v52, %v4375_v2  ;;  %v3425_v38 = vpop.f32.mrb[76].mxu0 }
 0x71b   : > { %15584 = vst [vmem:[#allocation47_spill] sm:$0xff] %v13631_v42  ;;  %v4186_v13 = vadd.f32 %v13243_v33, %v3425_v38  ;;  %v3427_v1 = vpop.f32.mrb[77].mxu0 }
 0x71c   : > { %15585 = vst [vmem:[#allocation48_spill] sm:$0xff] %v13633_v58  ;;  %v4187_v8 = vadd.f32 %v13247_v35, %v3427_v1  ;;  %v3429_v61 = vpop.f32.mrb[78].mxu0  ;;  %9666 = vmatprep.mubr.msk.bf16.mxu1 %vm4662_vm2, %v13633_v58 }
 0x71d   : > { %v4188_v31 = vadd.f32 %v13243_v33, %v3429_v61  ;;  %v3431_v48 = vpop.f32.mrb[79].mxu0  ;;  %4984 = vmatmul.mubr.bf16.gmra.mrb[124].mxu1 %v13631_v42  ;;  %v4378_v53 = vmax.f32 %v4186_v13, 0.0 }
 0x71e   : > { %v4189_v57 = vadd.f32 %v13247_v35, %v3431_v48  ;;  %v4379_v38 = vmax.f32 %v4187_v8, 0.0 }
 0x71f   : > { %v4380_v19 = vmax.f32 %v4188_v31, 0.0  ;;  %9637 = vmatmul.mubr.msk.bf16.gmra.mrb[184].mxu0 %vm822_vm1, %v12210_v10  ;;  %v12211_v10 = vld [vmem:[%s12329_s28 + $0x198] sm:$0xff]  }
 0x720   : > { %v4381_v2 = vmax.f32 %v4189_v57, 0.0  ;;  %3703 = vmatprep.mubr.bf16.mxu0 %v15552_v46 }
 0x721   : > { %v13645_v1 = vpack.c.bf16 %v4380_v19, %v4378_v53 }
 0x722   : > { %v13647_v52 = vpack.c.bf16 %v4381_v2, %v4379_v38  ;;  %v3435_v61 = vpop.f32.mrb[80].mxu0 }
 0x723   : > { %15586 = vst [vmem:[#allocation49_spill] sm:$0xff] %v13645_v1  ;;  %v4190_v58 = vadd.f32 %v13243_v33, %v3435_v61  ;;  %v3437_v42 = vpop.f32.mrb[81].mxu0 }
 0x724   : > { %15587 = vst [vmem:[#allocation50_spill] sm:$0xff] %v13647_v52  ;;  %v4191_v48 = vadd.f32 %v13247_v35, %v3437_v42  ;;  %v3439_v13 = vpop.f32.mrb[82].mxu0  ;;  %9667 = vmatprep.mubr.msk.bf16.mxu1 %vm4662_vm2, %v13647_v52 }
 0x725   : > { %v4192_v8 = vadd.f32 %v13243_v33, %v3439_v13  ;;  %v3441_v31 = vpop.f32.mrb[83].mxu0  ;;  %4992 = vmatmul.mubr.bf16.gmra.mrb[128].mxu1 %v13645_v1  ;;  %v4382_v53 = vmax.f32 %v4190_v58, 0.0 }
 0x726   : > { %v4193_v57 = vadd.f32 %v13247_v35, %v3441_v31  ;;  %v4383_v38 = vmax.f32 %v4191_v48, 0.0 }
 0x727   : > { %v4384_v19 = vmax.f32 %v4192_v8, 0.0  ;;  %9638 = vmatmul.mubr.msk.bf16.gmra.mrb[188].mxu0 %vm822_vm1, %v12211_v10 }
 0x728   : > { %v4385_v2 = vmax.f32 %v4193_v57, 0.0 }
 0x729   : > { %v13658_v61 = vpack.c.bf16 %v4384_v19, %v4382_v53 }
 0x72a   : > { %v13660_v42 = vpack.c.bf16 %v4385_v2, %v4383_v38  ;;  %v3445_v21 = vpop.f32.mrb[84].mxu0 }
 0x72b   : > { %15588 = vst [vmem:[#allocation51_spill] sm:$0xff] %v13658_v61  ;;  %v4194_v52 = vadd.f32 %v13243_v33, %v3445_v21  ;;  %v3447_v13 = vpop.f32.mrb[85].mxu0 }
 0x72c   : > { %15589 = vst [vmem:[#allocation52_spill] sm:$0xff] %v13660_v42  ;;  %v4195_v29 = vadd.f32 %v13247_v35, %v3447_v13  ;;  %v3449_v1 = vpop.f32.mrb[86].mxu0  ;;  %9668 = vmatprep.mubr.msk.bf16.mxu1 %vm4662_vm2, %v13660_v42 }
 0x72d   : > { %v4196_v58 = vadd.f32 %v13243_v33, %v3449_v1  ;;  %v3451_v8 = vpop.f32.mrb[87].mxu0  ;;  %5000 = vmatmul.mubr.bf16.gmra.mrb[132].mxu1 %v13658_v61  ;;  %v4386_v31 = vmax.f32 %v4194_v52, 0.0 }
 0x72e   : > { %v4197_v48 = vadd.f32 %v13247_v35, %v3451_v8  ;;  %v4387_v53 = vmax.f32 %v4195_v29, 0.0 }
 0x72f   : > { %v4388_v57 = vmax.f32 %v4196_v58, 0.0 }
 0x730   : > { %v4389_v19 = vmax.f32 %v4197_v48, 0.0 }
 0x731   : > { %v13669_v10 = vpack.c.bf16 %v4388_v57, %v4386_v31 }
 0x732   : > { %v13671_v21 = vpack.c.bf16 %v4389_v19, %v4387_v53  ;;  %v3455_v38 = vpop.f32.mrb[88].mxu0 }
 0x733   : > { %15590 = vst [vmem:[#allocation53_spill] sm:$0xff] %v13669_v10  ;;  %v4198_v2 = vadd.f32 %v13243_v33, %v3455_v38  ;;  %v3457_v13 = vpop.f32.mrb[89].mxu0 }
 0x734   : > { %15591 = vst [vmem:[#allocation54_spill] sm:$0xff] %v13671_v21  ;;  %v4199_v42 = vadd.f32 %v13247_v35, %v3457_v13  ;;  %v3459_v1 = vpop.f32.mrb[90].mxu0  ;;  %9669 = vmatprep.mubr.msk.bf16.mxu1 %vm4662_vm2, %v13671_v21 }
 0x735   : > { %v4200_v8 = vadd.f32 %v13243_v33, %v3459_v1  ;;  %v3461_v52 = vpop.f32.mrb[91].mxu0  ;;  %5008 = vmatmul.mubr.bf16.gmra.mrb[136].mxu1 %v13669_v10  ;;  %v4390_v58 = vmax.f32 %v4198_v2, 0.0 }
 0x736   : > { %v4201_v29 = vadd.f32 %v13247_v35, %v3461_v52  ;;  %v4391_v31 = vmax.f32 %v4199_v42, 0.0 }
 0x737   : > { %v4392_v48 = vmax.f32 %v4200_v8, 0.0 }
 0x738   : > { %v4393_v57 = vmax.f32 %v4201_v29, 0.0 }
 0x739   : > { %v13680_v53 = vpack.c.bf16 %v4392_v48, %v4390_v58 }
 0x73a   : > { %v13682_v19 = vpack.c.bf16 %v4393_v57, %v4391_v31  ;;  %v3465_v38 = vpop.f32.mrb[92].mxu0  ;;  %v12118_v31 = vld [vmem:[%s15446_s3 + $0x80] sm:$0xff]  }
 0x73b   : > { %15592 = vst [vmem:[#allocation55_spill] sm:$0xff] %v13680_v53  ;;  %v4202_v13 = vadd.f32 %v13243_v33, %v3465_v38  ;;  %v3467_v61 = vpop.f32.mrb[93].mxu0  ;;  %5312 = vmatpush1.bf16.msra.mxu1 %v12118_v31 }
 0x73c   : > { %15593 = vst [vmem:[#allocation56_spill] sm:$0xff] %v13682_v19  ;;  %v4203_v21 = vadd.f32 %v13247_v35, %v3467_v61  ;;  %v3469_v1 = vpop.f32.mrb[94].mxu0  ;;  %9670 = vmatprep.mubr.msk.bf16.mxu1 %vm4662_vm2, %v13682_v19  ;;  %5313 = vmatprep.subr.bf16.mxu1 %v15552_v46 }
 0x73d   : > { %v4204_v52 = vadd.f32 %v13243_v33, %v3469_v1  ;;  %v3471_v2 = vpop.f32.mrb[95].mxu0  ;;  %5016 = vmatmul.mubr.bf16.gmra.mrb[140].mxu1 %v13680_v53  ;;  %v4394_v8 = vmax.f32 %v4202_v13, 0.0 }
 0x73e   : > { %v4205_v42 = vadd.f32 %v13247_v35, %v3471_v2  ;;  %v4395_v58 = vmax.f32 %v4203_v21, 0.0 }
 0x73f   : > { %v4396_v29 = vmax.f32 %v4204_v52, 0.0 }
 0x740   : > { %v4397_v48 = vmax.f32 %v4205_v42, 0.0 }
 0x741   : > { %v13694_v61 = vpack.c.bf16 %v4396_v29, %v4394_v8 }
 0x742   : > { %v13696_v57 = vpack.c.bf16 %v4397_v48, %v4395_v58  ;;  %v3475_v38 = vpop.f32.mrb[96].mxu0 }
 0x743   : > { %15594 = vst [vmem:[#allocation57_spill] sm:$0xff] %v13694_v61  ;;  %v4206_v1 = vadd.f32 %v13243_v33, %v3475_v38  ;;  %v3477_v19 = vpop.f32.mrb[97].mxu0 }
 0x744   : > { %15595 = vst [vmem:[#allocation58_spill] sm:$0xff] %v13696_v57  ;;  %v4207_v13 = vadd.f32 %v13247_v35, %v3477_v19  ;;  %v3479_v52 = vpop.f32.mrb[98].mxu0  ;;  %9671 = vmatprep.mubr.msk.bf16.mxu1 %vm4662_vm2, %v13696_v57 }
 0x745   : > { %v4208_v21 = vadd.f32 %v13243_v33, %v3479_v52  ;;  %v3481_v2 = vpop.f32.mrb[99].mxu0  ;;  %5024 = vmatmul.mubr.bf16.gmra.mrb[144].mxu1 %v13694_v61  ;;  %v4398_v8 = vmax.f32 %v4206_v1, 0.0 }
 0x746   : > { %v4209_v42 = vadd.f32 %v13247_v35, %v3481_v2  ;;  %v4399_v58 = vmax.f32 %v4207_v13, 0.0 }
 0x747   : > { %v4400_v29 = vmax.f32 %v4208_v21, 0.0 }
 0x748   : > { %v4401_v48 = vmax.f32 %v4209_v42, 0.0 }
 0x749   : > { %v13706_v31 = vpack.c.bf16 %v4400_v29, %v4398_v8 }
 0x74a   : > { %v13708_v46 = vpack.c.bf16 %v4401_v48, %v4399_v58  ;;  %v3485_v19 = vpop.f32.mrb[100].mxu0 }
 0x74b   : > { %15596 = vst [vmem:[#allocation59_spill] sm:$0xff] %v13706_v31  ;;  %v4210_v38 = vadd.f32 %v13243_v33, %v3485_v19  ;;  %v3487_v53 = vpop.f32.mrb[101].mxu0 }
 0x74c   : > { %15597 = vst [vmem:[#allocation60_spill] sm:$0xff] %v13708_v46  ;;  %v4211_v57 = vadd.f32 %v13247_v35, %v3487_v53  ;;  %v3489_v52 = vpop.f32.mrb[102].mxu0  ;;  %9672 = vmatprep.mubr.msk.bf16.mxu1 %vm4662_vm2, %v13708_v46 }
 0x74d   : > { %v4212_v2 = vadd.f32 %v13243_v33, %v3489_v52  ;;  %v3491_v1 = vpop.f32.mrb[103].mxu0  ;;  %5032 = vmatmul.mubr.bf16.gmra.mrb[148].mxu1 %v13706_v31  ;;  %v4402_v21 = vmax.f32 %v4210_v38, 0.0 }
 0x74e   : > { %v4213_v13 = vadd.f32 %v13247_v35, %v3491_v1  ;;  %v4403_v8 = vmax.f32 %v4211_v57, 0.0 }
 0x74f   : > { %v4404_v42 = vmax.f32 %v4212_v2, 0.0 }
 0x750   : > { %v4405_v29 = vmax.f32 %v4213_v13, 0.0 }
 0x751   : > { %v13717_v58 = vpack.c.bf16 %v4404_v42, %v4402_v21 }
 0x752   : > { %v13719_v48 = vpack.c.bf16 %v4405_v29, %v4403_v8  ;;  %v3495_v53 = vpop.f32.mrb[104].mxu0 }
 0x753   : > { %15598 = vst [vmem:[#allocation61_spill] sm:$0xff] %v13717_v58  ;;  %v4214_v19 = vadd.f32 %v13243_v33, %v3495_v53  ;;  %v3497_v61 = vpop.f32.mrb[105].mxu0 }
 0x754   : > { %15599 = vst [vmem:[#allocation62_spill] sm:$0xff] %v13719_v48  ;;  %v4215_v46 = vadd.f32 %v13247_v35, %v3497_v61  ;;  %v3499_v52 = vpop.f32.mrb[106].mxu0  ;;  %9673 = vmatprep.mubr.msk.bf16.mxu1 %vm4662_vm2, %v13719_v48 }
 0x755   : > { %v4216_v1 = vadd.f32 %v13243_v33, %v3499_v52  ;;  %v3501_v38 = vpop.f32.mrb[107].mxu0  ;;  %5040 = vmatmul.mubr.bf16.gmra.mrb[152].mxu1 %v13717_v58  ;;  %v4406_v2 = vmax.f32 %v4214_v19, 0.0 }
 0x756   : > { %v4217_v57 = vadd.f32 %v13247_v35, %v3501_v38  ;;  %v4407_v21 = vmax.f32 %v4215_v46, 0.0 }
 0x757   : > { %v4408_v13 = vmax.f32 %v4216_v1, 0.0 }
 0x758   : > { %v4409_v42 = vmax.f32 %v4217_v57, 0.0 }
 0x759   : > { %v13728_v8 = vpack.c.bf16 %v4408_v13, %v4406_v2 }
 0x75a   : > { %v13730_v29 = vpack.c.bf16 %v4409_v42, %v4407_v21  ;;  %v3505_v61 = vpop.f32.mrb[108].mxu0 }
 0x75b   : > { %15600 = vst [vmem:[#allocation63_spill] sm:$0xff] %v13728_v8  ;;  %v4218_v53 = vadd.f32 %v13243_v33, %v3505_v61  ;;  %v3507_v31 = vpop.f32.mrb[109].mxu0 }
 0x75c   : > { %15601 = vst [vmem:[#allocation64_spill] sm:$0xff] %v13730_v29  ;;  %v4219_v48 = vadd.f32 %v13247_v35, %v3507_v31  ;;  %v3509_v52 = vpop.f32.mrb[110].mxu0  ;;  %9674 = vmatprep.mubr.msk.bf16.mxu1 %vm4662_vm2, %v13730_v29 }
 0x75d   : > { %v4220_v38 = vadd.f32 %v13243_v33, %v3509_v52  ;;  %v3511_v19 = vpop.f32.mrb[111].mxu0  ;;  %5048 = vmatmul.mubr.bf16.gmra.mrb[156].mxu1 %v13728_v8  ;;  %v4410_v1 = vmax.f32 %v4218_v53, 0.0 }
 0x75e   : > { %v4221_v46 = vadd.f32 %v13247_v35, %v3511_v19  ;;  %v4411_v2 = vmax.f32 %v4219_v48, 0.0 }
 0x75f   : > { %v4412_v57 = vmax.f32 %v4220_v38, 0.0 }
 0x760   : > { %v4413_v13 = vmax.f32 %v4221_v46, 0.0  ;;  %v13739_v21 = vpop.f32.mrb[52].mxu1 }
 0x761   : > { %15602 = vst [vmem:[#allocation65_spill] sm:$0xff] %v13739_v21  ;;  %v13741_v42 = vpack.c.bf16 %v4412_v57, %v4410_v1  ;;  %v4843_v31 = vpop.f32.mrb[53].mxu1 }
 0x762   : > { %v13743_v61 = vpack.c.bf16 %v4413_v13, %v4411_v2  ;;  %v3515_v58 = vpop.f32.mrb[112].mxu0  ;;  %v13745_v29 = vpop.f32.mrb[54].mxu1 }
 0x763   : > { %15603 = vst [vmem:[#allocation66_spill] sm:$0xff] %v13741_v42  ;;  %15605 = vst [vmem:[#allocation68_spill] sm:$0xff] %v13745_v29  ;;  %v4222_v52 = vadd.f32 %v13243_v33, %v3515_v58  ;;  %v3517_v10 = vpop.f32.mrb[113].mxu0  ;;  %v4846_v8 = vpop.f32.mrb[55].mxu1 }
 0x764   : > { %15604 = vst [vmem:[#allocation67_spill] sm:$0xff] %v13743_v61  ;;  %v4223_v19 = vadd.f32 %v13247_v35, %v3517_v10  ;;  %v3519_v53 = vpop.f32.mrb[114].mxu0  ;;  %9675 = vmatprep.mubr.msk.bf16.mxu1 %vm4662_vm2, %v13743_v61 }
 0x765   : > { %v4224_v48 = vadd.f32 %v13243_v33, %v3519_v53  ;;  %v3521_v38 = vpop.f32.mrb[115].mxu0  ;;  %5056 = vmatmul.mubr.bf16.gmra.mrb[160].mxu1 %v13741_v42  ;;  %v4414_v1 = vmax.f32 %v4222_v52, 0.0 }
 0x766   : > { %v4225_v46 = vadd.f32 %v13247_v35, %v3521_v38  ;;  %v4415_v2 = vmax.f32 %v4223_v19, 0.0  ;;  %v12119_v19 = vld [vmem:[%s15446_s3 + $0x88] sm:$0xff]  }
 0x767   : > { %v4416_v57 = vmax.f32 %v4224_v48, 0.0  ;;  %5314 = vmatpush1.bf16.msra.mxu1 %v12119_v19 }
 0x768   : > { %v4417_v13 = vmax.f32 %v4225_v46, 0.0  ;;  %v13754_v58 = vpop.f32.mrb[56].mxu1 }
 0x769   : > { %15606 = vst [vmem:[#allocation69_spill] sm:$0xff] %v13754_v58  ;;  %v13756_v8 = vpack.c.bf16 %v4416_v57, %v4414_v1  ;;  %v4851_v10 = vpop.f32.mrb[57].mxu1 }
 0x76a   : > { %v13758_v31 = vpack.c.bf16 %v4417_v13, %v4415_v2  ;;  %v3525_v29 = vpop.f32.mrb[116].mxu0  ;;  %v13760_v21 = vpop.f32.mrb[58].mxu1 }
 0x76b   : > { %15607 = vst [vmem:[#allocation70_spill] sm:$0xff] %v13756_v8  ;;  %15609 = vst [vmem:[#allocation72_spill] sm:$0xff] %v13760_v21  ;;  %v4226_v53 = vadd.f32 %v13243_v33, %v3525_v29  ;;  %v3527_v61 = vpop.f32.mrb[117].mxu0  ;;  %v4854_v42 = vpop.f32.mrb[59].mxu1 }
 0x76c   : > { %15608 = vst [vmem:[#allocation71_spill] sm:$0xff] %v13758_v31  ;;  %v4227_v38 = vadd.f32 %v13247_v35, %v3527_v61  ;;  %v3529_v52 = vpop.f32.mrb[118].mxu0  ;;  %9676 = vmatprep.mubr.msk.bf16.mxu1 %vm4662_vm2, %v13758_v31 }
 0x76d   : > { %v4228_v48 = vadd.f32 %v13243_v33, %v3529_v52  ;;  %v3531_v46 = vpop.f32.mrb[119].mxu0  ;;  %5064 = vmatmul.mubr.bf16.gmra.mrb[164].mxu1 %v13756_v8  ;;  %v4418_v29 = vmax.f32 %v4226_v53, 0.0 }
 0x76e   : > { %v4229_v1 = vadd.f32 %v13247_v35, %v3531_v46  ;;  %v4419_v57 = vmax.f32 %v4227_v38, 0.0 }
 0x76f   : > { %v4420_v42 = vmax.f32 %v4228_v48, 0.0 }
 0x770   : > { %v4421_v61 = vmax.f32 %v4229_v1, 0.0  ;;  %v13772_v2 = vpop.f32.mrb[60].mxu1 }
 0x771   : > { %15610 = vst [vmem:[#allocation73_spill] sm:$0xff] %v13772_v2  ;;  %v13774_v13 = vpack.c.bf16 %v4420_v42, %v4418_v29  ;;  %v4859_v10 = vpop.f32.mrb[61].mxu1 }
 0x772   : > { %v13776_v21 = vpack.c.bf16 %v4421_v61, %v4419_v57  ;;  %v3535_v58 = vpop.f32.mrb[120].mxu0  ;;  %v13778_v31 = vpop.f32.mrb[62].mxu1 }
 0x773   : > { %15611 = vst [vmem:[#allocation74_spill] sm:$0xff] %v13774_v13  ;;  %15613 = vst [vmem:[#allocation76_spill] sm:$0xff] %v13778_v31  ;;  %v4230_v52 = vadd.f32 %v13243_v33, %v3535_v58  ;;  %v3537_v8 = vpop.f32.mrb[121].mxu0  ;;  %v4862_v17 = vpop.f32.mrb[63].mxu1 }
 0x774   : > { %15612 = vst [vmem:[#allocation75_spill] sm:$0xff] %v13776_v21  ;;  %v4231_v19 = vadd.f32 %v13247_v35, %v3537_v8  ;;  %v3539_v53 = vpop.f32.mrb[122].mxu0  ;;  %9677 = vmatprep.mubr.msk.bf16.mxu1 %vm4662_vm2, %v13776_v21 }
 0x775   : > { %v4232_v38 = vadd.f32 %v13243_v33, %v3539_v53  ;;  %v3541_v48 = vpop.f32.mrb[123].mxu0  ;;  %5072 = vmatmul.mubr.bf16.gmra.mrb[168].mxu1 %v13774_v13  ;;  %v4422_v1 = vmax.f32 %v4230_v52, 0.0 }
 0x776   : > { %v4233_v46 = vadd.f32 %v13247_v35, %v3541_v48  ;;  %v4423_v42 = vmax.f32 %v4231_v19, 0.0 }
 0x777   : > { %v4424_v29 = vmax.f32 %v4232_v38, 0.0 }
 0x778   : > { %v4425_v57 = vmax.f32 %v4233_v46, 0.0  ;;  %v13787_v58 = vpop.f32.mrb[64].mxu1 }
 0x779   : > { %15614 = vst [vmem:[#allocation77_spill] sm:$0xff] %v13787_v58  ;;  %v13789_v17 = vpack.c.bf16 %v4424_v29, %v4422_v1  ;;  %v4867_v8 = vpop.f32.mrb[65].mxu1 }
 0x77a   : > { %v13791_v61 = vpack.c.bf16 %v4425_v57, %v4423_v42  ;;  %v3545_v10 = vpop.f32.mrb[124].mxu0  ;;  %v13793_v31 = vpop.f32.mrb[66].mxu1 }
 0x77b   : > { %15615 = vst [vmem:[#allocation78_spill] sm:$0xff] %v13789_v17  ;;  %15617 = vst [vmem:[#allocation80_spill] sm:$0xff] %v13793_v31  ;;  %v4234_v53 = vadd.f32 %v13243_v33, %v3545_v10  ;;  %v3547_v2 = vpop.f32.mrb[125].mxu0  ;;  %v4870_v13 = vpop.f32.mrb[67].mxu1 }
 0x77c   : > { %15616 = vst [vmem:[#allocation79_spill] sm:$0xff] %v13791_v61  ;;  %v4235_v48 = vadd.f32 %v13247_v35, %v3547_v2  ;;  %v3549_v52 = vpop.f32.mrb[126].mxu0  ;;  %9678 = vmatprep.mubr.msk.bf16.mxu1 %vm4662_vm2, %v13791_v61 }
 0x77d   : > { %v4236_v19 = vadd.f32 %v13243_v33, %v3549_v52  ;;  %v3551_v38 = vpop.f32.mrb[127].mxu0  ;;  %5080 = vmatmul.mubr.bf16.gmra.mrb[172].mxu1 %v13789_v17  ;;  %v4426_v1 = vmax.f32 %v4234_v53, 0.0 }
 0x77e   : > { %v4237_v46 = vadd.f32 %v13247_v35, %v3551_v38  ;;  %v4427_v42 = vmax.f32 %v4235_v48, 0.0 }
 0x77f   : > { %v4428_v29 = vmax.f32 %v4236_v19, 0.0 }
 0x780   : > { %v4429_v57 = vmax.f32 %v4237_v46, 0.0  ;;  %v13802_v8 = vpop.f32.mrb[68].mxu1 }
 0x781   : > { %15618 = vst [vmem:[#allocation81_spill] sm:$0xff] %v13802_v8  ;;  %v13804_v13 = vpack.c.bf16 %v4428_v29, %v4426_v1  ;;  %v4875_v2 = vpop.f32.mrb[69].mxu1 }
 0x782   : > { %v13806_v10 = vpack.c.bf16 %v4429_v57, %v4427_v42  ;;  %v3555_v31 = vpop.f32.mrb[128].mxu0  ;;  %v13808_v58 = vpop.f32.mrb[70].mxu1 }
 0x783   : > { %15619 = vst [vmem:[#allocation82_spill] sm:$0xff] %v13804_v13  ;;  %15621 = vst [vmem:[#allocation84_spill] sm:$0xff] %v13808_v58  ;;  %v4238_v52 = vadd.f32 %v13243_v33, %v3555_v31  ;;  %v3557_v61 = vpop.f32.mrb[129].mxu0  ;;  %v4878_v17 = vpop.f32.mrb[71].mxu1 }
 0x784   : > { %15620 = vst [vmem:[#allocation83_spill] sm:$0xff] %v13806_v10  ;;  %v4239_v38 = vadd.f32 %v13247_v35, %v3557_v61  ;;  %v3559_v53 = vpop.f32.mrb[130].mxu0  ;;  %9679 = vmatprep.mubr.msk.bf16.mxu1 %vm4662_vm2, %v13806_v10 }
 0x785   : > { %v4240_v48 = vadd.f32 %v13243_v33, %v3559_v53  ;;  %v3561_v19 = vpop.f32.mrb[131].mxu0  ;;  %5088 = vmatmul.mubr.bf16.gmra.mrb[176].mxu1 %v13804_v13  ;;  %v4430_v1 = vmax.f32 %v4238_v52, 0.0 }
 0x786   : > { %v4241_v46 = vadd.f32 %v13247_v35, %v3561_v19  ;;  %v4431_v42 = vmax.f32 %v4239_v38, 0.0 }
 0x787   : > { %v4432_v29 = vmax.f32 %v4240_v48, 0.0 }
 0x788   : > { %v4433_v57 = vmax.f32 %v4241_v46, 0.0  ;;  %v13817_v31 = vpop.f32.mrb[72].mxu1 }
 0x789   : > { %15622 = vst [vmem:[#allocation85_spill] sm:$0xff] %v13817_v31  ;;  %v13819_v17 = vpack.c.bf16 %v4432_v29, %v4430_v1  ;;  %v4883_v61 = vpop.f32.mrb[73].mxu1 }
 0x78a   : > { %v13821_v2 = vpack.c.bf16 %v4433_v57, %v4431_v42  ;;  %v3565_v58 = vpop.f32.mrb[132].mxu0  ;;  %v13823_v8 = vpop.f32.mrb[74].mxu1 }
 0x78b   : > { %15623 = vst [vmem:[#allocation86_spill] sm:$0xff] %v13819_v17  ;;  %15625 = vst [vmem:[#allocation88_spill] sm:$0xff] %v13823_v8  ;;  %v4242_v53 = vadd.f32 %v13243_v33, %v3565_v58  ;;  %v3567_v10 = vpop.f32.mrb[133].mxu0  ;;  %v4886_v13 = vpop.f32.mrb[75].mxu1 }
 0x78c   : > { %15624 = vst [vmem:[#allocation87_spill] sm:$0xff] %v13821_v2  ;;  %v4243_v19 = vadd.f32 %v13247_v35, %v3567_v10  ;;  %v3569_v52 = vpop.f32.mrb[134].mxu0  ;;  %9680 = vmatprep.mubr.msk.bf16.mxu1 %vm4662_vm2, %v13821_v2 }
 0x78d   : > { %v4244_v38 = vadd.f32 %v13243_v33, %v3569_v52  ;;  %v3571_v48 = vpop.f32.mrb[135].mxu0  ;;  %5096 = vmatmul.mubr.bf16.gmra.mrb[180].mxu1 %v13819_v17  ;;  %v4434_v1 = vmax.f32 %v4242_v53, 0.0  ;;  %v13844_v53 = vld [vmem:[%s15447_s4 + $0x24] sm:$0xff]  }
 0x78e   : > { %v4245_v46 = vadd.f32 %v13247_v35, %v3571_v48  ;;  %v4435_v42 = vmax.f32 %v4243_v19, 0.0  ;;  %10409 = vmatprep.subr.bf16.mxu1 %v13844_v53 }
 0x78f   : > { %v4436_v29 = vmax.f32 %v4244_v38, 0.0 }
 0x790   : > { %v4437_v57 = vmax.f32 %v4245_v46, 0.0  ;;  %v13832_v58 = vpop.f32.mrb[76].mxu1 }
 0x791   : > { %15626 = vst [vmem:[#allocation89_spill] sm:$0xff] %v13832_v58  ;;  %v13834_v13 = vpack.c.bf16 %v4436_v29, %v4434_v1  ;;  %v4891_v10 = vpop.f32.mrb[77].mxu1 }
 0x792   : > { %v13836_v61 = vpack.c.bf16 %v4437_v57, %v4435_v42  ;;  %v3575_v8 = vpop.f32.mrb[136].mxu0  ;;  %v13838_v31 = vpop.f32.mrb[78].mxu1 }
 0x793   : > { %15627 = vst [vmem:[#allocation90_spill] sm:$0xff] %v13834_v13  ;;  %15629 = vst [vmem:[#allocation92_spill] sm:$0xff] %v13838_v31  ;;  %v4246_v52 = vadd.f32 %v13243_v33, %v3575_v8  ;;  %v3577_v2 = vpop.f32.mrb[137].mxu0  ;;  %v4894_v17 = vpop.f32.mrb[79].mxu1 }
 0x794   : > { %15628 = vst [vmem:[#allocation91_spill] sm:$0xff] %v13836_v61  ;;  %v4247_v19 = vadd.f32 %v13247_v35, %v3577_v2  ;;  %v3579_v38 = vpop.f32.mrb[138].mxu0  ;;  %9681 = vmatprep.mubr.msk.bf16.mxu1 %vm4662_vm2, %v13836_v61 }
 0x795   : > { %v4248_v48 = vadd.f32 %v13243_v33, %v3579_v38  ;;  %v3581_v46 = vpop.f32.mrb[139].mxu0  ;;  %5104 = vmatmul.mubr.bf16.gmra.mrb[184].mxu1 %v13834_v13  ;;  %v4438_v17 = vmax.f32 %v4246_v52, 0.0 }
 0x796   : > { %v4249_v8 = vadd.f32 %v13247_v35, %v3581_v46  ;;  %v4439_v29 = vmax.f32 %v4247_v19, 0.0 }
 0x797   : > { %v4440_v1 = vmax.f32 %v4248_v48, 0.0 }
 0x798   : > { %v4441_v42 = vmax.f32 %v4249_v8, 0.0  ;;  %v13853_v57 = vpop.f32.mrb[80].mxu1 }
 0x799   : > { %v13855_v2 = vpack.c.bf16 %v4440_v1, %v4438_v17  ;;  %v4899_v10 = vpop.f32.mrb[81].mxu1 }
 0x79a   : > { %v13857_v31 = vpack.c.bf16 %v4441_v42, %v4439_v29  ;;  %v3585_v58 = vpop.f32.mrb[140].mxu0  ;;  %v13859_v38 = vpop.f32.mrb[82].mxu1 }
 0x79b   : > { %15630 = vst [vmem:[#allocation93_spill] sm:$0xff] %v13855_v2  ;;  %15631 = vst [vmem:[#allocation94_spill] sm:$0xff] %v13859_v38  ;;  %v10979_v13 = vadd.f32 %v3585_v58, %v13229_v25  ;;  %v3587_v61 = vpop.f32.mrb[141].mxu0  ;;  %v4902_v21 = vpop.f32.mrb[83].mxu1 }
 0x79c   : > { %v10980_v46 = vadd.f32 %v3587_v61, %v13232_v26  ;;  %v3589_v52 = vpop.f32.mrb[142].mxu0  ;;  %9682 = vmatprep.mubr.msk.bf16.mxu1 %vm4662_vm2, %v13857_v31 }
 0x79d   : > { %v4250_v19 = vadd.f32 %v10979_v13, %v13243_v33  ;;  %v10981_v48 = vadd.f32 %v3589_v52, %v13234_v27  ;;  %v3591_v8 = vpop.f32.mrb[143].mxu0  ;;  %5112 = vmatmul.mubr.bf16.gmra.mrb[188].mxu1 %v13855_v2 }
 0x79e   : > { %v4251_v17 = vadd.f32 %v10980_v46, %v13247_v35  ;;  %v10982_v1 = vadd.f32 %v3591_v8, %v13236_v28 }
 0x79f   : > { %v4252_v25 = vadd.f32 %v10981_v48, %v13243_v33  ;;  %v4442_v58 = vmax.f32 %v4250_v19, 0.0 }
 0x7a0   : > { %v4253_v21 = vadd.f32 %v10982_v1, %v13247_v35  ;;  %v13872_v26 = vpop.f32.mrb[84].mxu1  ;;  %v4443_v42 = vmax.f32 %v4251_v17, 0.0 }
 0x7a1   : > { %v4444_v61 = vmax.f32 %v4252_v25, 0.0  ;;  %v4907_v29 = vpop.f32.mrb[85].mxu1 }
 0x7a2   : > { %v4445_v13 = vmax.f32 %v4253_v21, 0.0  ;;  %v3595_v10 = vpop.f32.mrb[144].mxu0  ;;  %v13874_v27 = vpop.f32.mrb[86].mxu1 }
 0x7a3   : > { %v10983_v52 = vadd.f32 %v3595_v10, %v13245_v34  ;;  %v3597_v2 = vpop.f32.mrb[145].mxu0  ;;  %v4910_v46 = vpop.f32.mrb[87].mxu1  ;;  %v13877_v38 = vpack.c.bf16 %v4444_v61, %v4442_v58 }
 0x7a4   : > { %v13879_v28 = vpack.c.bf16 %v4445_v13, %v4443_v42  ;;  %v10984_v48 = vadd.f32 %v3597_v2, %v13250_v36  ;;  %v3599_v8 = vpop.f32.mrb[146].mxu0 }
 0x7a5   : > { %v4254_v19 = vadd.f32 %v10983_v52, %v13243_v33  ;;  %v10985_v1 = vadd.f32 %v3599_v8, %v13252_v37  ;;  %v3601_v17 = vpop.f32.mrb[147].mxu0 }
 0x7a6   : > { %v4255_v25 = vadd.f32 %v10984_v48, %v13247_v35  ;;  %v10986_v21 = vadd.f32 %v3601_v17, %v13254_v39  ;;  %9683 = vmatprep.mubr.msk.bf16.mxu1 %vm4662_vm2, %v13879_v28 }
 0x7a7   : > { %v4256_v34 = vadd.f32 %v10985_v1, %v13243_v33  ;;  %5120 = vmatmul.mubr.bf16.gmra.mrb[192].mxu1 %v13877_v38  ;;  %v4446_v2 = vmax.f32 %v4254_v19, 0.0 }
 0x7a8   : > { %v4257_v58 = vadd.f32 %v10986_v21, %v13247_v35  ;;  %v13891_v36 = vpop.f32.mrb[88].mxu1  ;;  %v4447_v37 = vmax.f32 %v4255_v25, 0.0 }
 0x7a9   : > { %v4448_v61 = vmax.f32 %v4256_v34, 0.0  ;;  %v4915_v29 = vpop.f32.mrb[89].mxu1 }
 0x7aa   : > { %v4449_v42 = vmax.f32 %v4257_v58, 0.0  ;;  %v3605_v13 = vpop.f32.mrb[148].mxu0  ;;  %v13893_v10 = vpop.f32.mrb[90].mxu1 }
 0x7ab   : > { %v10987_v39 = vadd.f32 %v3605_v13, %v13262_v4  ;;  %v3607_v52 = vpop.f32.mrb[149].mxu0  ;;  %v4918_v46 = vpop.f32.mrb[91].mxu1  ;;  %v13896_v48 = vpack.c.bf16 %v4448_v61, %v4446_v2 }
 0x7ac   : > { %v13898_v8 = vpack.c.bf16 %v4449_v42, %v4447_v37  ;;  %v10988_v1 = vadd.f32 %v3607_v52, %v13265_v7  ;;  %v3609_v17 = vpop.f32.mrb[150].mxu0 }
 0x7ad   : > { %v4258_v19 = vadd.f32 %v10987_v39, %v13243_v33  ;;  %v10989_v21 = vadd.f32 %v3609_v17, %v13269_v9  ;;  %v3611_v25 = vpop.f32.mrb[151].mxu0 }
 0x7ae   : > { %v4259_v34 = vadd.f32 %v10988_v1, %v13247_v35  ;;  %v10990_v58 = vadd.f32 %v3611_v25, %v13276_v12  ;;  %9684 = vmatprep.mubr.msk.bf16.mxu1 %vm4662_vm2, %v13898_v8 }
 0x7af   : > { %v4260_v4 = vadd.f32 %v10989_v21, %v13243_v33  ;;  %5128 = vmatmul.mubr.bf16.gmra.mrb[196].mxu1 %v13896_v48  ;;  %v4450_v61 = vmax.f32 %v4258_v19, 0.0 }
 0x7b0   : > { %v4261_v2 = vadd.f32 %v10990_v58, %v13247_v35  ;;  %v13910_v7 = vpop.f32.mrb[92].mxu1  ;;  %v4451_v9 = vmax.f32 %v4259_v34, 0.0 }
 0x7b1   : > { %v4452_v29 = vmax.f32 %v4260_v4, 0.0  ;;  %v4923_v37 = vpop.f32.mrb[93].mxu1 }
 0x7b2   : > { %v4453_v42 = vmax.f32 %v4261_v2, 0.0  ;;  %v3615_v13 = vpop.f32.mrb[152].mxu0  ;;  %v13912_v39 = vpop.f32.mrb[94].mxu1 }
 0x7b3   : > { %v10991_v12 = vadd.f32 %v3615_v13, %v13291_v62  ;;  %v3617_v52 = vpop.f32.mrb[153].mxu0  ;;  %v4926_v46 = vpop.f32.mrb[95].mxu1  ;;  %v13915_v1 = vpack.c.bf16 %v4452_v29, %v4450_v61 }
 0x7b4   : > { %v13917_v17 = vpack.c.bf16 %v4453_v42, %v4451_v9  ;;  %v10992_v21 = vadd.f32 %v3617_v52, %v13294_v18  ;;  %v3619_v25 = vpop.f32.mrb[154].mxu0 }
 0x7b5   : > { %v4262_v19 = vadd.f32 %v10991_v12, %v13243_v33  ;;  %v10993_v58 = vadd.f32 %v3619_v25, %v13298_v20  ;;  %v3621_v34 = vpop.f32.mrb[155].mxu0 }
 0x7b6   : > { %v4263_v4 = vadd.f32 %v10992_v21, %v13247_v35  ;;  %v10994_v2 = vadd.f32 %v3621_v34, %v13305_v43  ;;  %9685 = vmatprep.mubr.msk.bf16.mxu1 %vm4662_vm2, %v13917_v17 }
 0x7b7   : > { %v4264_v62 = vadd.f32 %v10993_v58, %v13243_v33  ;;  %5136 = vmatmul.mubr.bf16.gmra.mrb[200].mxu1 %v13915_v1  ;;  %v4454_v29 = vmax.f32 %v4262_v19, 0.0 }
 0x7b8   : > { %v4265_v61 = vadd.f32 %v10994_v2, %v13247_v35  ;;  %v13929_v18 = vpop.f32.mrb[96].mxu1  ;;  %v4455_v20 = vmax.f32 %v4263_v4, 0.0 }
 0x7b9   : > { %v4456_v37 = vmax.f32 %v4264_v62, 0.0  ;;  %v4931_v9 = vpop.f32.mrb[97].mxu1 }
 0x7ba   : > { %v4457_v42 = vmax.f32 %v4265_v61, 0.0  ;;  %v3625_v13 = vpop.f32.mrb[156].mxu0  ;;  %v13931_v12 = vpop.f32.mrb[98].mxu1 }
 0x7bb   : > { %v10995_v43 = vadd.f32 %v3625_v13, %v13321_v30  ;;  %v3627_v52 = vpop.f32.mrb[157].mxu0  ;;  %v4934_v46 = vpop.f32.mrb[99].mxu1  ;;  %v13934_v21 = vpack.c.bf16 %v4456_v37, %v4454_v29 }
 0x7bc   : > { %v13936_v25 = vpack.c.bf16 %v4457_v42, %v4455_v20  ;;  %v10996_v58 = vadd.f32 %v3627_v52, %v13324_v56  ;;  %v3629_v34 = vpop.f32.mrb[158].mxu0 }
 0x7bd   : > { %v4266_v19 = vadd.f32 %v10995_v43, %v13243_v33  ;;  %v10997_v2 = vadd.f32 %v3629_v34, %v13328_v40  ;;  %v3631_v4 = vpop.f32.mrb[159].mxu0 }
 0x7be   : > { %v4267_v62 = vadd.f32 %v10996_v58, %v13247_v35  ;;  %v10998_v61 = vadd.f32 %v3631_v4, %v13332_v60  ;;  %9686 = vmatprep.mubr.msk.bf16.mxu1 %vm4662_vm2, %v13936_v25 }
 0x7bf   : > { %v4268_v30 = vadd.f32 %v10997_v2, %v13243_v33  ;;  %5144 = vmatmul.mubr.bf16.gmra.mrb[204].mxu1 %v13934_v21  ;;  %v4458_v37 = vmax.f32 %v4266_v19, 0.0 }
 0x7c0   : > { %v4269_v29 = vadd.f32 %v10998_v61, %v13247_v35  ;;  %v13948_v56 = vpop.f32.mrb[100].mxu1  ;;  %v4459_v40 = vmax.f32 %v4267_v62, 0.0 }
 0x7c1   : > { %v4460_v9 = vmax.f32 %v4268_v30, 0.0  ;;  %v4939_v20 = vpop.f32.mrb[101].mxu1 }
 0x7c2   : > { %v4461_v42 = vmax.f32 %v4269_v29, 0.0  ;;  %v3635_v13 = vpop.f32.mrb[160].mxu0  ;;  %v13950_v43 = vpop.f32.mrb[102].mxu1 }
 0x7c3   : > { %v10999_v60 = vadd.f32 %v3635_v13, %v13344_v16  ;;  %v3637_v52 = vpop.f32.mrb[161].mxu0  ;;  %v4942_v46 = vpop.f32.mrb[103].mxu1  ;;  %v13953_v58 = vpack.c.bf16 %v4460_v9, %v4458_v37 }
 0x7c4   : > { %v13955_v34 = vpack.c.bf16 %v4461_v42, %v4459_v40  ;;  %v11000_v2 = vadd.f32 %v3637_v52, %v13347_v47  ;;  %v3639_v4 = vpop.f32.mrb[162].mxu0 }
 0x7c5   : > { %v4270_v19 = vadd.f32 %v10999_v60, %v13243_v33  ;;  %v11001_v61 = vadd.f32 %v3639_v4, %v13351_v49  ;;  %v3641_v62 = vpop.f32.mrb[163].mxu0 }
 0x7c6   : > { %v4271_v30 = vadd.f32 %v11000_v2, %v13247_v35  ;;  %v11002_v29 = vadd.f32 %v3641_v62, %v13355_v0  ;;  %9687 = vmatprep.mubr.msk.bf16.mxu1 %vm4662_vm2, %v13955_v34 }
 0x7c7   : > { %v4272_v16 = vadd.f32 %v11001_v61, %v13243_v33  ;;  %5152 = vmatmul.mubr.bf16.gmra.mrb[208].mxu1 %v13953_v58  ;;  %v4462_v9 = vmax.f32 %v4270_v19, 0.0 }
 0x7c8   : > { %v4273_v37 = vadd.f32 %v11002_v29, %v13247_v35  ;;  %v13967_v47 = vpop.f32.mrb[104].mxu1  ;;  %v4463_v49 = vmax.f32 %v4271_v30, 0.0 }
 0x7c9   : > { %v4464_v20 = vmax.f32 %v4272_v16, 0.0  ;;  %v4947_v40 = vpop.f32.mrb[105].mxu1 }
 0x7ca   : > { %v4465_v42 = vmax.f32 %v4273_v37, 0.0  ;;  %v3645_v13 = vpop.f32.mrb[164].mxu0  ;;  %v13969_v60 = vpop.f32.mrb[106].mxu1 }
 0x7cb   : > { %v11003_v0 = vadd.f32 %v3645_v13, %v13366_v23  ;;  %v3647_v52 = vpop.f32.mrb[165].mxu0  ;;  %v4950_v46 = vpop.f32.mrb[107].mxu1  ;;  %v13972_v2 = vpack.c.bf16 %v4464_v20, %v4462_v9 }
 0x7cc   : > { %v13974_v4 = vpack.c.bf16 %v4465_v42, %v4463_v49  ;;  %v11004_v61 = vadd.f32 %v3647_v52, %v13369_v32  ;;  %v3649_v62 = vpop.f32.mrb[166].mxu0 }
 0x7cd   : > { %v4274_v19 = vadd.f32 %v11003_v0, %v13243_v33  ;;  %v11005_v29 = vadd.f32 %v3649_v62, %v13373_v59  ;;  %v3651_v30 = vpop.f32.mrb[167].mxu0 }
 0x7ce   : > { %v4275_v16 = vadd.f32 %v11004_v61, %v13247_v35  ;;  %v11006_v37 = vadd.f32 %v3651_v30, %v13377_v3  ;;  %9688 = vmatprep.mubr.msk.bf16.mxu1 %vm4662_vm2, %v13974_v4 }
 0x7cf   : > { %v4276_v23 = vadd.f32 %v11005_v29, %v13243_v33  ;;  %5160 = vmatmul.mubr.bf16.gmra.mrb[212].mxu1 %v13972_v2  ;;  %v4466_v20 = vmax.f32 %v4274_v19, 0.0 }
 0x7d0   : > { %v4277_v9 = vadd.f32 %v11006_v37, %v13247_v35  ;;  %v13986_v32 = vpop.f32.mrb[108].mxu1  ;;  %v4467_v59 = vmax.f32 %v4275_v16, 0.0 }
 0x7d1   : > { %v4468_v40 = vmax.f32 %v4276_v23, 0.0  ;;  %v4955_v49 = vpop.f32.mrb[109].mxu1 }
 0x7d2   : > { %v4469_v42 = vmax.f32 %v4277_v9, 0.0  ;;  %v3655_v13 = vpop.f32.mrb[168].mxu0  ;;  %v13988_v0 = vpop.f32.mrb[110].mxu1 }
 0x7d3   : > { %v11007_v3 = vadd.f32 %v3655_v13, %v13388_v22  ;;  %v3657_v52 = vpop.f32.mrb[169].mxu0  ;;  %v4958_v46 = vpop.f32.mrb[111].mxu1  ;;  %v13991_v61 = vpack.c.bf16 %v4468_v40, %v4466_v20 }
 0x7d4   : > { %v13993_v62 = vpack.c.bf16 %v4469_v42, %v4467_v59  ;;  %v11008_v29 = vadd.f32 %v3657_v52, %v13391_v45  ;;  %v3659_v30 = vpop.f32.mrb[170].mxu0 }
 0x7d5   : > { %v4278_v19 = vadd.f32 %v11007_v3, %v13243_v33  ;;  %v11009_v37 = vadd.f32 %v3659_v30, %v13395_v51  ;;  %v3661_v16 = vpop.f32.mrb[171].mxu0 }
 0x7d6   : > { %v4279_v23 = vadd.f32 %v11008_v29, %v13247_v35  ;;  %v11010_v9 = vadd.f32 %v3661_v16, %v13399_v54  ;;  %9689 = vmatprep.mubr.msk.bf16.mxu1 %vm4662_vm2, %v13993_v62 }
 0x7d7   : > { %v4280_v22 = vadd.f32 %v11009_v37, %v13243_v33  ;;  %5168 = vmatmul.mubr.bf16.gmra.mrb[216].mxu1 %v13991_v61  ;;  %v4470_v40 = vmax.f32 %v4278_v19, 0.0 }
 0x7d8   : > { %v4281_v20 = vadd.f32 %v11010_v9, %v13247_v35  ;;  %v14005_v45 = vpop.f32.mrb[112].mxu1  ;;  %v4471_v51 = vmax.f32 %v4279_v23, 0.0 }
 0x7d9   : > { %v4472_v49 = vmax.f32 %v4280_v22, 0.0  ;;  %v4963_v59 = vpop.f32.mrb[113].mxu1 }
 0x7da   : > { %v4473_v42 = vmax.f32 %v4281_v20, 0.0  ;;  %v3665_v13 = vpop.f32.mrb[172].mxu0  ;;  %v14007_v3 = vpop.f32.mrb[114].mxu1 }
 0x7db   : > { %v11011_v54 = vadd.f32 %v3665_v13, %v13410_v15  ;;  %v3667_v52 = vpop.f32.mrb[173].mxu0  ;;  %v4966_v46 = vpop.f32.mrb[115].mxu1  ;;  %v14010_v29 = vpack.c.bf16 %v4472_v49, %v4470_v40 }
 0x7dc   : > { %v14012_v30 = vpack.c.bf16 %v4473_v42, %v4471_v51  ;;  %v11012_v37 = vadd.f32 %v3667_v52, %v13413_v63  ;;  %v3669_v16 = vpop.f32.mrb[174].mxu0 }
 0x7dd   : > { %v4282_v19 = vadd.f32 %v11011_v54, %v13243_v33  ;;  %v11013_v9 = vadd.f32 %v3669_v16, %v13417_v44  ;;  %v3671_v23 = vpop.f32.mrb[175].mxu0 }
 0x7de   : > { %v4283_v22 = vadd.f32 %v11012_v37, %v13247_v35  ;;  %v11014_v20 = vadd.f32 %v3671_v23, %v13421_v24  ;;  %9690 = vmatprep.mubr.msk.bf16.mxu1 %vm4662_vm2, %v14012_v30 }
 0x7df   : > { %v4284_v15 = vadd.f32 %v11013_v9, %v13243_v33  ;;  %5176 = vmatmul.mubr.bf16.gmra.mrb[220].mxu1 %v14010_v29  ;;  %v4474_v49 = vmax.f32 %v4282_v19, 0.0 }
 0x7e0   : > { %v4285_v40 = vadd.f32 %v11014_v20, %v13247_v35  ;;  %v14024_v63 = vpop.f32.mrb[116].mxu1  ;;  %v4475_v44 = vmax.f32 %v4283_v22, 0.0 }
 0x7e1   : > { %v4476_v59 = vmax.f32 %v4284_v15, 0.0  ;;  %v4971_v51 = vpop.f32.mrb[117].mxu1 }
 0x7e2   : > { %v4477_v42 = vmax.f32 %v4285_v40, 0.0  ;;  %v3675_v13 = vpop.f32.mrb[176].mxu0  ;;  %v14026_v54 = vpop.f32.mrb[118].mxu1 }
 0x7e3   : > { %v11015_v24 = vadd.f32 %v3675_v13, %v13435_v5  ;;  %v3677_v52 = vpop.f32.mrb[177].mxu0  ;;  %v4974_v46 = vpop.f32.mrb[119].mxu1  ;;  %v14029_v37 = vpack.c.bf16 %v4476_v59, %v4474_v49 }
 0x7e4   : > { %v14031_v16 = vpack.c.bf16 %v4477_v42, %v4475_v44  ;;  %v11016_v9 = vadd.f32 %v3677_v52, %v13438_v6  ;;  %v3679_v23 = vpop.f32.mrb[178].mxu0 }
 0x7e5   : > { %v4286_v19 = vadd.f32 %v11015_v24, %v13243_v33  ;;  %v11017_v20 = vadd.f32 %v3679_v23, %v13442_v41  ;;  %v3681_v22 = vpop.f32.mrb[179].mxu0 }
 0x7e6   : > { %v4287_v15 = vadd.f32 %v11016_v9, %v13247_v35  ;;  %v11018_v40 = vadd.f32 %v3681_v22, %v13447_v55  ;;  %9691 = vmatprep.mubr.msk.bf16.mxu1 %vm4662_vm2, %v14031_v16 }
 0x7e7   : > { %v4288_v5 = vadd.f32 %v11017_v20, %v13243_v33  ;;  %5184 = vmatmul.mubr.bf16.gmra.mrb[224].mxu1 %v14029_v37  ;;  %v4478_v59 = vmax.f32 %v4286_v19, 0.0 }
 0x7e8   : > { %v4289_v49 = vadd.f32 %v11018_v40, %v13247_v35  ;;  %v14043_v6 = vpop.f32.mrb[120].mxu1  ;;  %v4479_v41 = vmax.f32 %v4287_v15, 0.0 }
 0x7e9   : > { %v4480_v51 = vmax.f32 %v4288_v5, 0.0  ;;  %v4979_v44 = vpop.f32.mrb[121].mxu1 }
 0x7ea   : > { %v4481_v42 = vmax.f32 %v4289_v49, 0.0  ;;  %v3685_v13 = vpop.f32.mrb[180].mxu0  ;;  %v14045_v24 = vpop.f32.mrb[122].mxu1  ;;  %v15634_v49 = vld [vmem:[#allocation20_spill] sm:$0xff] }
 0x7eb   : > { %15632 = vst [vmem:[#allocation95_spill] sm:$0xff] %v14045_v24  ;;  %v11019_v55 = vadd.f32 %v3685_v13, %v13458_v11  ;;  %v3687_v52 = vpop.f32.mrb[181].mxu0  ;;  %v4982_v46 = vpop.f32.mrb[123].mxu1  ;;  %v14048_v9 = vpack.c.bf16 %v4480_v51, %v4478_v59 }
 0x7ec   : > { %v14050_v23 = vpack.c.bf16 %v4481_v42, %v4479_v41  ;;  %v11020_v20 = vadd.f32 %v3687_v52, %v13461_v50  ;;  %v3689_v22 = vpop.f32.mrb[182].mxu0  ;;  %v15637_v46 = vld [vmem:[#allocation21_spill] sm:$0xff] }
 0x7ed   : > { %15633 = vst [vmem:[#allocation96_spill] sm:$0xff] %v14048_v9  ;;  %v4290_v19 = vadd.f32 %v11019_v55, %v13243_v33  ;;  %v11021_v40 = vadd.f32 %v3689_v22, %v13465_v14  ;;  %v3691_v15 = vpop.f32.mrb[183].mxu0 }
 0x7ee   : > { %v4291_v5 = vadd.f32 %v11020_v20, %v13247_v35  ;;  %v11022_v44 = vadd.f32 %v3691_v15, %v15634_v49  ;;  %9692 = vmatprep.mubr.msk.bf16.mxu1 %vm4662_vm2, %v14050_v23 }
 0x7ef   : > { %v4292_v11 = vadd.f32 %v11021_v40, %v13243_v33  ;;  %5192 = vmatmul.mubr.bf16.gmra.mrb[228].mxu1 %v14048_v9  ;;  %v4482_v51 = vmax.f32 %v4290_v19, 0.0  ;;  %v15640_v9 = vld [vmem:[#allocation22_spill] sm:$0xff] }
 0x7f0   : > { %v4293_v59 = vadd.f32 %v11022_v44, %v13247_v35  ;;  %v14062_v50 = vpop.f32.mrb[124].mxu1  ;;  %v4483_v14 = vmax.f32 %v4291_v5, 0.0 }
 0x7f1   : > { %15635 = vst [vmem:[#allocation20_spill] sm:$0xff] %v14062_v50  ;;  %v4484_v41 = vmax.f32 %v4292_v11, 0.0  ;;  %v4987_v42 = vpop.f32.mrb[125].mxu1  ;;  %v15641_v11 = vld [vmem:[#allocation24_spill] sm:$0xff]  ;;  %v15642_v50 = vld [vmem:[#allocation26_spill] sm:$0xff] }
 0x7f2   : > { %v4485_v13 = vmax.f32 %v4293_v59, 0.0  ;;  %v3695_v55 = vpop.f32.mrb[184].mxu0  ;;  %v14064_v52 = vpop.f32.mrb[126].mxu1 }
 0x7f3   : > { %15636 = vst [vmem:[#allocation97_spill] sm:$0xff] %v14064_v52  ;;  %v11023_v20 = vadd.f32 %v3695_v55, %v15637_v46  ;;  %v3697_v22 = vpop.f32.mrb[185].mxu0  ;;  %v4990_v15 = vpop.f32.mrb[127].mxu1  ;;  %v14067_v49 = vpack.c.bf16 %v4484_v41, %v4482_v51 }
 0x7f4   : > { %v14069_v40 = vpack.c.bf16 %v4485_v13, %v4483_v14  ;;  %v11024_v44 = vadd.f32 %v3697_v22, %v15640_v9  ;;  %v3699_v24 = vpop.f32.mrb[186].mxu0 }
 0x7f5   : > { %15638 = vst [vmem:[#allocation21_spill] sm:$0xff] %v14067_v49  ;;  %v4294_v19 = vadd.f32 %v11023_v20, %v13243_v33  ;;  %v11025_v42 = vadd.f32 %v3699_v24, %v15641_v11  ;;  %v3701_v5 = vpop.f32.mrb[187].mxu0 }
 0x7f6   : > { %15639 = vst [vmem:[#allocation98_spill] sm:$0xff] %v14069_v40  ;;  %v4295_v59 = vadd.f32 %v11024_v44, %v13247_v35  ;;  %v11026_v52 = vadd.f32 %v3701_v5, %v15642_v50  ;;  %9693 = vmatprep.mubr.msk.bf16.mxu1 %vm4662_vm2, %v14069_v40  ;;  %v15645_v50 = vld [vmem:[#allocation27_spill] sm:$0xff] }
 0x7f7   : > { %v4296_v51 = vadd.f32 %v11025_v42, %v13243_v33  ;;  %5200 = vmatmul.mubr.bf16.gmra.mrb[232].mxu1 %v14067_v49  ;;  %v4486_v14 = vmax.f32 %v4294_v19, 0.0  ;;  %v15647_v49 = vld [vmem:[#allocation28_spill] sm:$0xff] }
 0x7f8   : > { %v4297_v41 = vadd.f32 %v11026_v52, %v13247_v35  ;;  %v14081_v9 = vpop.f32.mrb[128].mxu1  ;;  %v4487_v24 = vmax.f32 %v4295_v59, 0.0 }
 0x7f9   : > { %15643 = vst [vmem:[#allocation22_spill] sm:$0xff] %v14081_v9  ;;  %v4488_v13 = vmax.f32 %v4296_v51, 0.0  ;;  %v4995_v55 = vpop.f32.mrb[129].mxu1  ;;  %v15648_v51 = vld [vmem:[#allocation30_spill] sm:$0xff]  ;;  %v15649_v9 = vld [vmem:[#allocation32_spill] sm:$0xff] }
 0x7fa   : > { %v4489_v46 = vmax.f32 %v4297_v41, 0.0  ;;  %v3705_v20 = vpop.f32.mrb[188].mxu0  ;;  %v14083_v22 = vpop.f32.mrb[130].mxu1 }
 0x7fb   : > { %15644 = vst [vmem:[#allocation24_spill] sm:$0xff] %v14083_v22  ;;  %v11027_v15 = vadd.f32 %v3705_v20, %v15645_v50  ;;  %v3707_v44 = vpop.f32.mrb[189].mxu0  ;;  %v4998_v11 = vpop.f32.mrb[131].mxu1  ;;  %v14086_v5 = vpack.c.bf16 %v4488_v13, %v4486_v14 }
 0x7fc   : > { %v14088_v42 = vpack.c.bf16 %v4489_v46, %v4487_v24  ;;  %v11028_v52 = vadd.f32 %v3707_v44, %v15647_v49  ;;  %v3709_v40 = vpop.f32.mrb[190].mxu0 }
 0x7fd   : > { %15646 = vst [vmem:[#allocation26_spill] sm:$0xff] %v14086_v5  ;;  %v4298_v19 = vadd.f32 %v11027_v15, %v13243_v33  ;;  %v11029_v55 = vadd.f32 %v3709_v40, %v15648_v51  ;;  %v3711_v59 = vpop.f32.mrb[191].mxu0  ;;  %v12121_v51 = vld [vmem:[%s15447_s4 + $0x2c] sm:$0xff]  }
 0x7fe   : > { %v4299_v41 = vadd.f32 %v11028_v52, %v13247_v35  ;;  %v11030_v22 = vadd.f32 %v3711_v59, %v15649_v9  ;;  %9694 = vmatprep.mubr.msk.bf16.mxu1 %vm4662_vm2, %v14088_v42 }
 0x7ff   : > { %v4300_v14 = vadd.f32 %v11029_v55, %v13243_v33  ;;  %5208 = vmatmul.mubr.bf16.gmra.mrb[236].mxu1 %v14086_v5  ;;  %v4490_v24 = vmax.f32 %v4298_v19, 0.0  ;;  %v15657_v55 = vld [vmem:[#allocation2_spill] sm:$0xff] }
 0x800   : > { %v4301_v13 = vadd.f32 %v11030_v22, %v13247_v35  ;;  %v14100_v49 = vpop.f32.mrb[132].mxu1  ;;  %v4491_v40 = vmax.f32 %v4299_v41, 0.0  ;;  %v15655_v35 = vld [vmem:[#allocation3_spill] sm:$0xff]  ;;  %v15659_v41 = vld [vmem:[#allocation5_spill] sm:$0xff] }
 0x801   : > { %15650 = vst [vmem:[#allocation27_spill] sm:$0xff] %v14100_v49  ;;  %v4492_v46 = vmax.f32 %v4300_v14, 0.0  ;;  %v5003_v20 = vpop.f32.mrb[133].mxu1 }
 0x802   : > { %v4493_v50 = vmax.f32 %v4301_v13, 0.0  ;;  %v14102_v15 = vpop.f32.mrb[134].mxu1 }
 0x803   : > { %15651 = vst [vmem:[#allocation28_spill] sm:$0xff] %v14102_v15  ;;  %v5006_v44 = vpop.f32.mrb[135].mxu1  ;;  %v14104_v9 = vpack.c.bf16 %v4492_v46, %v4490_v24  ;;  %v15661_v46 = vld [vmem:[#allocation4_spill] sm:$0xff] }
 0x804   : > { %v14106_v11 = vpack.c.bf16 %v4493_v50, %v4491_v40  ;;  %v15663_v40 = vld [vmem:[#allocation7_spill] sm:$0xff] }
 0x805   : > { %15652 = vst [vmem:[#allocation30_spill] sm:$0xff] %v14104_v9 }
 0x806   : > { %15653 = vst [vmem:[#allocation32_spill] sm:$0xff] %v14106_v11  ;;  %9695 = vmatprep.mubr.msk.bf16.mxu1 %vm4662_vm2, %v14106_v11  ;;  %v15787_v11 = vld [vmem:[#allocation85_spill] sm:$0xff] }
 0x807   : > { %5216 = vmatmul.mubr.bf16.gmra.mrb[240].mxu1 %v14104_v9  ;;  %v15769_v9 = vld [vmem:[#allocation70_spill] sm:$0xff] }
 0x808   : > { %v14111_v33 = vpop.f32.mrb[136].mxu1  ;;  %9723 = vmatprep.mubr.msk.bf16.mxu1 %vm4662_vm2, %v15655_v35 }
 0x809   : > { %15654 = vst [vmem:[#allocation99_spill] sm:$0xff] %v14111_v33  ;;  %v5011_v22 = vpop.f32.mrb[137].mxu1 }
 0x80a   : > { %v14115_v52 = vpop.f32.mrb[138].mxu1  ;;  %v15665_v22 = vld [vmem:[#allocation6_spill] sm:$0xff] }
 0x80b   : > { %15656 = vst [vmem:[#allocation3_spill] sm:$0xff] %v14115_v52  ;;  %v5014_v19 = vpop.f32.mrb[139].mxu1  ;;  %v15768_v52 = vld [vmem:[#allocation72_spill] sm:$0xff] }
 0x80c   : > { %v15667_v19 = vld [vmem:[#allocation9_spill] sm:$0xff] }
 0x80f   : > { %5330 = vmatmul.mubr.bf16.vlgmr.msra.gmra.mrb[244].mxu1 %v15657_v55 }
 0x810   : > { %v14121_v59 = vpop.f32.mrb[140].mxu1  ;;  %9724 = vmatprep.mubr.msk.bf16.mxu1 %vm4662_vm2, %v15659_v41  ;;  %10410 = vmatpush3.bf16.msra.mxu1 %v13844_v53 }
 0x811   : > { %15658 = vst [vmem:[#allocation2_spill] sm:$0xff] %v14121_v59  ;;  %v5019_v14 = vpop.f32.mrb[141].mxu1  ;;  %10411 = vmatprep.subr.bf16.mxu1 %v12121_v51 }
 0x812   : > { %v14126_v13 = vpop.f32.mrb[142].mxu1  ;;  %v15669_v14 = vld [vmem:[#allocation8_spill] sm:$0xff] }
 0x813   : > { %15660 = vst [vmem:[#allocation5_spill] sm:$0xff] %v14126_v13  ;;  %v5022_v24 = vpop.f32.mrb[143].mxu1 }
 0x814   : > { %10412 = vmatpush3.bf16.msra.mxu1 %v12121_v51 }
 0x817   : > { %5338 = vmatmul.mubr.bf16.gmra.mrb[248].mxu1 %v15661_v46  ;;  %v15671_v46 = vld [vmem:[#allocation11_spill] sm:$0xff] }
 0x818   : > { %v14129_v20 = vpop.f32.mrb[144].mxu1  ;;  %9725 = vmatprep.mubr.msk.bf16.mxu1 %vm4662_vm2, %v15663_v40 }
 0x819   : > { %15662 = vst [vmem:[#allocation4_spill] sm:$0xff] %v14129_v20  ;;  %v5027_v50 = vpop.f32.mrb[145].mxu1 }
 0x81a   : > { %v14133_v44 = vpop.f32.mrb[146].mxu1 }
 0x81b   : > { %15664 = vst [vmem:[#allocation7_spill] sm:$0xff] %v14133_v44  ;;  %v5030_v35 = vpop.f32.mrb[147].mxu1 }
 0x81f   : > { %5346 = vmatmul.mubr.bf16.gmra.mrb[252].mxu1 %v15665_v22  ;;  %v12122_v22 = vld [vmem:[%s15447_s4 + $0x34] sm:$0xff]  }
 0x820   : > { %v14136_v53 = vpop.f32.mrb[148].mxu1  ;;  %9726 = vmatprep.mubr.msk.bf16.mxu1 %vm4662_vm2, %v15667_v19  ;;  %v15673_v19 = vld [vmem:[#allocation10_spill] sm:$0xff]  ;;  %10413 = vmatprep.subr.bf16.mxu1 %v12122_v22 }
 0x821   : > { %15666 = vst [vmem:[#allocation6_spill] sm:$0xff] %v14136_v53  ;;  %v5035_v55 = vpop.f32.mrb[149].mxu1  ;;  %10414 = vmatpush3.bf16.msra.mxu1 %v12122_v22  ;;  %v15683_v22 = vld [vmem:[#allocation17_spill] sm:$0xff] }
 0x822   : > { %v14140_v51 = vpop.f32.mrb[150].mxu1 }
 0x823   : > { %15668 = vst [vmem:[#allocation9_spill] sm:$0xff] %v14140_v51  ;;  %v5038_v41 = vpop.f32.mrb[151].mxu1 }
 0x824   : > { %v15675_v41 = vld [vmem:[#allocation13_spill] sm:$0xff] }
 0x827   : > { %5354 = vmatmul.mubr.bf16.gmra.mrb[0].mxu1 %v15669_v14 }
 0x828   : > { %v14143_v24 = vpop.f32.mrb[152].mxu1  ;;  %9727 = vmatprep.mubr.msk.bf16.mxu1 %vm4662_vm2, %v15671_v46 }
 0x829   : > { %15670 = vst [vmem:[#allocation8_spill] sm:$0xff] %v14143_v24  ;;  %v5043_v40 = vpop.f32.mrb[153].mxu1 }
 0x82a   : > { %v14147_v50 = vpop.f32.mrb[154].mxu1  ;;  %v15677_v40 = vld [vmem:[#allocation12_spill] sm:$0xff] }
 0x82b   : > { %15672 = vst [vmem:[#allocation11_spill] sm:$0xff] %v14147_v50  ;;  %v5046_v35 = vpop.f32.mrb[155].mxu1  ;;  %v15679_v50 = vld [vmem:[#allocation15_spill] sm:$0xff] }
 0x82f   : > { %5362 = vmatmul.mubr.bf16.gmra.mrb[4].mxu1 %v15673_v19 }
 0x830   : > { %v14153_v55 = vpop.f32.mrb[156].mxu1  ;;  %9728 = vmatprep.mubr.msk.bf16.mxu1 %vm4662_vm2, %v15675_v41 }
 0x831   : > { %15674 = vst [vmem:[#allocation10_spill] sm:$0xff] %v14153_v55  ;;  %v5051_v14 = vpop.f32.mrb[157].mxu1  ;;  %v15681_v55 = vld [vmem:[#allocation14_spill] sm:$0xff] }
 0x832   : > { %v14157_v24 = vpop.f32.mrb[158].mxu1 }
 0x833   : > { %15676 = vst [vmem:[#allocation13_spill] sm:$0xff] %v14157_v24  ;;  %v5054_v46 = vpop.f32.mrb[159].mxu1  ;;  %v15721_v24 = vld [vmem:[#allocation43_spill] sm:$0xff] }
 0x837   : > { %5370 = vmatmul.mubr.bf16.gmra.mrb[8].mxu1 %v15677_v40  ;;  %v15685_v40 = vld [vmem:[#allocation16_spill] sm:$0xff] }
 0x838   : > { %v14160_v35 = vpop.f32.mrb[160].mxu1  ;;  %9729 = vmatprep.mubr.msk.bf16.mxu1 %vm4662_vm2, %v15679_v50  ;;  %v15687_v50 = vld [vmem:[#allocation19_spill] sm:$0xff] }
 0x839   : > { %15678 = vst [vmem:[#allocation12_spill] sm:$0xff] %v14160_v35  ;;  %v5059_v51 = vpop.f32.mrb[161].mxu1 }
 0x83a   : > { %v14164_v19 = vpop.f32.mrb[162].mxu1 }
 0x83b   : > { %15680 = vst [vmem:[#allocation15_spill] sm:$0xff] %v14164_v19  ;;  %v5062_v53 = vpop.f32.mrb[163].mxu1  ;;  %v15689_v19 = vld [vmem:[#allocation18_spill] sm:$0xff] }
 0x83f   : > { %5378 = vmatmul.mubr.bf16.gmra.mrb[12].mxu1 %v15681_v55 }
 0x840   : > { %v14167_v44 = vpop.f32.mrb[164].mxu1  ;;  %9730 = vmatprep.mubr.msk.bf16.mxu1 %vm4662_vm2, %v15683_v22  ;;  %v15691_v22 = vld [vmem:[#allocation25_spill] sm:$0xff] }
 0x841   : > { %15682 = vst [vmem:[#allocation14_spill] sm:$0xff] %v14167_v44  ;;  %v5067_v41 = vpop.f32.mrb[165].mxu1 }
 0x842   : > { %v14171_v14 = vpop.f32.mrb[166].mxu1 }
 0x843   : > { %15684 = vst [vmem:[#allocation17_spill] sm:$0xff] %v14171_v14  ;;  %v5070_v46 = vpop.f32.mrb[167].mxu1  ;;  %v15693_v14 = vld [vmem:[#allocation23_spill] sm:$0xff] }
 0x847   : > { %5386 = vmatmul.mubr.bf16.gmra.mrb[16].mxu1 %v15685_v40 }
 0x848   : > { %v14174_v35 = vpop.f32.mrb[168].mxu1  ;;  %9731 = vmatprep.mubr.msk.bf16.mxu1 %vm4662_vm2, %v15687_v50  ;;  %v15695_v50 = vld [vmem:[#allocation31_spill] sm:$0xff] }
 0x849   : > { %15686 = vst [vmem:[#allocation16_spill] sm:$0xff] %v14174_v35  ;;  %v5075_v51 = vpop.f32.mrb[169].mxu1 }
 0x84a   : > { %v14178_v53 = vpop.f32.mrb[170].mxu1 }
 0x84b   : > { %15688 = vst [vmem:[#allocation19_spill] sm:$0xff] %v14178_v53  ;;  %v5078_v55 = vpop.f32.mrb[171].mxu1  ;;  %v15697_v53 = vld [vmem:[#allocation29_spill] sm:$0xff] }
 0x84f   : > { %5394 = vmatmul.mubr.bf16.gmra.mrb[20].mxu1 %v15689_v19 }
 0x850   : > { %v14181_v44 = vpop.f32.mrb[172].mxu1  ;;  %9732 = vmatprep.mubr.msk.bf16.mxu1 %vm4662_vm2, %v15691_v22  ;;  %v15699_v22 = vld [vmem:[#allocation34_spill] sm:$0xff] }
 0x851   : > { %15690 = vst [vmem:[#allocation18_spill] sm:$0xff] %v14181_v44  ;;  %v5083_v41 = vpop.f32.mrb[173].mxu1 }
 0x852   : > { %v14185_v46 = vpop.f32.mrb[174].mxu1 }
 0x853   : > { %15692 = vst [vmem:[#allocation25_spill] sm:$0xff] %v14185_v46  ;;  %v5086_v40 = vpop.f32.mrb[175].mxu1  ;;  %v15701_v46 = vld [vmem:[#allocation33_spill] sm:$0xff] }
 0x857   : > { %5402 = vmatmul.mubr.bf16.gmra.mrb[24].mxu1 %v15693_v14 }
 0x858   : > { %v14188_v35 = vpop.f32.mrb[176].mxu1  ;;  %9733 = vmatprep.mubr.msk.bf16.mxu1 %vm4662_vm2, %v15695_v50  ;;  %v15703_v50 = vld [vmem:[#allocation36_spill] sm:$0xff] }
 0x859   : > { %15694 = vst [vmem:[#allocation23_spill] sm:$0xff] %v14188_v35  ;;  %v5091_v51 = vpop.f32.mrb[177].mxu1 }
 0x85a   : > { %v14192_v55 = vpop.f32.mrb[178].mxu1 }
 0x85b   : > { %15696 = vst [vmem:[#allocation31_spill] sm:$0xff] %v14192_v55  ;;  %v5094_v19 = vpop.f32.mrb[179].mxu1  ;;  %v15705_v55 = vld [vmem:[#allocation35_spill] sm:$0xff] }
 0x85f   : > { %5410 = vmatmul.mubr.bf16.gmra.mrb[28].mxu1 %v15697_v53 }
 0x860   : > { %v14195_v44 = vpop.f32.mrb[180].mxu1  ;;  %9734 = vmatprep.mubr.msk.bf16.mxu1 %vm4662_vm2, %v15699_v22  ;;  %v15707_v22 = vld [vmem:[#allocation38_spill] sm:$0xff] }
 0x861   : > { %15698 = vst [vmem:[#allocation29_spill] sm:$0xff] %v14195_v44  ;;  %v5099_v41 = vpop.f32.mrb[181].mxu1 }
 0x862   : > { %v14199_v40 = vpop.f32.mrb[182].mxu1 }
 0x863   : > { %15700 = vst [vmem:[#allocation34_spill] sm:$0xff] %v14199_v40  ;;  %v5102_v14 = vpop.f32.mrb[183].mxu1  ;;  %v15709_v40 = vld [vmem:[#allocation37_spill] sm:$0xff] }
 0x867   : > { %5418 = vmatmul.mubr.bf16.gmra.mrb[32].mxu1 %v15701_v46 }
 0x868   : > { %v14202_v35 = vpop.f32.mrb[184].mxu1  ;;  %9735 = vmatprep.mubr.msk.bf16.mxu1 %vm4662_vm2, %v15703_v50 }
 0x869   : > { %15702 = vst [vmem:[#allocation33_spill] sm:$0xff] %v14202_v35  ;;  %v5107_v51 = vpop.f32.mrb[185].mxu1  ;;  %v15710_v35 = vld [vmem:[#allocation40_spill] sm:$0xff] }
 0x86a   : > { %v14206_v19 = vpop.f32.mrb[186].mxu1 }
 0x86b   : > { %15704 = vst [vmem:[#allocation36_spill] sm:$0xff] %v14206_v19  ;;  %v5110_v53 = vpop.f32.mrb[187].mxu1 }
 0x86f   : > { %5426 = vmatmul.mubr.bf16.gmra.mrb[36].mxu1 %v15705_v55 }
 0x870   : > { %v14209_v44 = vpop.f32.mrb[188].mxu1  ;;  %9736 = vmatprep.mubr.msk.bf16.mxu1 %vm4662_vm2, %v15707_v22  ;;  %v15713_v22 = vld [vmem:[#allocation39_spill] sm:$0xff] }
 0x871   : > { %15706 = vst [vmem:[#allocation35_spill] sm:$0xff] %v14209_v44  ;;  %v5115_v41 = vpop.f32.mrb[189].mxu1  ;;  %v12123_v44 = vld [vmem:[%s15447_s4 + $0x3c] sm:$0xff]  }
 0x872   : > { %v14213_v14 = vpop.f32.mrb[190].mxu1  ;;  %10415 = vmatprep.subr.bf16.mxu1 %v12123_v44  ;;  %v15714_v41 = vld [vmem:[#allocation42_spill] sm:$0xff] }
 0x873   : > { %15708 = vst [vmem:[#allocation38_spill] sm:$0xff] %v14213_v14  ;;  %v5118_v46 = vpop.f32.mrb[191].mxu1  ;;  %10416 = vmatpush3.bf16.msra.mxu1 %v12123_v44  ;;  %v15722_v44 = vld [vmem:[#allocation46_spill] sm:$0xff] }
 0x877   : > { %5434 = vmatmul.mubr.bf16.gmra.mrb[40].mxu1 %v15709_v40 }
 0x878   : > { %9737 = vmatprep.mubr.msk.bf16.mxu1 %vm4662_vm2, %v15710_v35 }
 0x87a   : > { %v14218_v50 = vpop.f32.mrb[192].mxu1 }
 0x87b   : > { %15711 = vst [vmem:[#allocation37_spill] sm:$0xff] %v14218_v50  ;;  %v5123_v51 = vpop.f32.mrb[193].mxu1  ;;  %v15717_v50 = vld [vmem:[#allocation41_spill] sm:$0xff] }
 0x87c   : > { %v14220_v53 = vpop.f32.mrb[194].mxu1 }
 0x87d   : > { %15712 = vst [vmem:[#allocation40_spill] sm:$0xff] %v14220_v53  ;;  %v5126_v55 = vpop.f32.mrb[195].mxu1 }
 0x87e   : > { %v15718_v55 = vld [vmem:[#allocation44_spill] sm:$0xff] }
 0x87f   : > { %5442 = vmatmul.mubr.bf16.gmra.mrb[44].mxu1 %v15713_v22 }
 0x880   : > { %9738 = vmatprep.mubr.msk.bf16.mxu1 %vm4662_vm2, %v15714_v41 }
 0x882   : > { %v14228_v40 = vpop.f32.mrb[196].mxu1 }
 0x883   : > { %15715 = vst [vmem:[#allocation39_spill] sm:$0xff] %v14228_v40  ;;  %v5131_v35 = vpop.f32.mrb[197].mxu1  ;;  %v15757_v40 = vld [vmem:[#allocation61_spill] sm:$0xff] }
 0x884   : > { %v14230_v46 = vpop.f32.mrb[198].mxu1 }
 0x885   : > { %15716 = vst [vmem:[#allocation42_spill] sm:$0xff] %v14230_v46  ;;  %v5134_v51 = vpop.f32.mrb[199].mxu1  ;;  %v15725_v46 = vld [vmem:[#allocation45_spill] sm:$0xff] }
 0x887   : > { %5450 = vmatmul.mubr.bf16.gmra.mrb[48].mxu1 %v15717_v50 }
 0x888   : > { %9739 = vmatprep.mubr.msk.bf16.mxu1 %vm4662_vm2, %v15718_v55  ;;  %v15726_v55 = vld [vmem:[#allocation48_spill] sm:$0xff] }
 0x88a   : > { %v14235_v53 = vpop.f32.mrb[200].mxu1 }
 0x88b   : > { %15719 = vst [vmem:[#allocation41_spill] sm:$0xff] %v14235_v53  ;;  %v5139_v14 = vpop.f32.mrb[201].mxu1  ;;  %v15729_v53 = vld [vmem:[#allocation47_spill] sm:$0xff] }
 0x88c   : > { %v14237_v22 = vpop.f32.mrb[202].mxu1 }
 0x88d   : > { %15720 = vst [vmem:[#allocation44_spill] sm:$0xff] %v14237_v22  ;;  %v5142_v19 = vpop.f32.mrb[203].mxu1 }
 0x88f   : > { %5458 = vmatmul.mubr.bf16.gmra.mrb[52].mxu1 %v15721_v24 }
 0x890   : > { %9740 = vmatprep.mubr.msk.bf16.mxu1 %vm4662_vm2, %v15722_v44  ;;  %v15730_v44 = vld [vmem:[#allocation50_spill] sm:$0xff] }
 0x892   : > { %v14242_v41 = vpop.f32.mrb[204].mxu1 }
 0x893   : > { %15723 = vst [vmem:[#allocation43_spill] sm:$0xff] %v14242_v41  ;;  %v5147_v35 = vpop.f32.mrb[205].mxu1  ;;  %v15733_v41 = vld [vmem:[#allocation49_spill] sm:$0xff] }
 0x894   : > { %v14244_v51 = vpop.f32.mrb[206].mxu1 }
 0x895   : > { %15724 = vst [vmem:[#allocation46_spill] sm:$0xff] %v14244_v51  ;;  %v5150_v50 = vpop.f32.mrb[207].mxu1 }
 0x897   : > { %5466 = vmatmul.mubr.bf16.gmra.mrb[56].mxu1 %v15725_v46 }
 0x898   : > { %9741 = vmatprep.mubr.msk.bf16.mxu1 %vm4662_vm2, %v15726_v55  ;;  %v15734_v55 = vld [vmem:[#allocation52_spill] sm:$0xff] }
 0x89a   : > { %v14249_v14 = vpop.f32.mrb[208].mxu1 }
 0x89b   : > { %15727 = vst [vmem:[#allocation45_spill] sm:$0xff] %v14249_v14  ;;  %v5155_v22 = vpop.f32.mrb[209].mxu1  ;;  %v15737_v14 = vld [vmem:[#allocation51_spill] sm:$0xff] }
 0x89c   : > { %v14251_v19 = vpop.f32.mrb[210].mxu1 }
 0x89d   : > { %15728 = vst [vmem:[#allocation48_spill] sm:$0xff] %v14251_v19  ;;  %v5158_v24 = vpop.f32.mrb[211].mxu1 }
 0x89f   : > { %5474 = vmatmul.mubr.bf16.gmra.mrb[60].mxu1 %v15729_v53 }
 0x8a0   : > { %9742 = vmatprep.mubr.msk.bf16.mxu1 %vm4662_vm2, %v15730_v44  ;;  %v15738_v44 = vld [vmem:[#allocation54_spill] sm:$0xff] }
 0x8a2   : > { %v14256_v35 = vpop.f32.mrb[212].mxu1 }
 0x8a3   : > { %15731 = vst [vmem:[#allocation47_spill] sm:$0xff] %v14256_v35  ;;  %v5163_v51 = vpop.f32.mrb[213].mxu1  ;;  %v15741_v35 = vld [vmem:[#allocation53_spill] sm:$0xff] }
 0x8a4   : > { %v14258_v50 = vpop.f32.mrb[214].mxu1 }
 0x8a5   : > { %15732 = vst [vmem:[#allocation50_spill] sm:$0xff] %v14258_v50  ;;  %v5166_v46 = vpop.f32.mrb[215].mxu1 }
 0x8a7   : > { %5482 = vmatmul.mubr.bf16.gmra.mrb[64].mxu1 %v15733_v41 }
 0x8a8   : > { %9743 = vmatprep.mubr.msk.bf16.mxu1 %vm4662_vm2, %v15734_v55  ;;  %v15742_v55 = vld [vmem:[#allocation56_spill] sm:$0xff] }
 0x8aa   : > { %v14263_v22 = vpop.f32.mrb[216].mxu1 }
 0x8ab   : > { %15735 = vst [vmem:[#allocation49_spill] sm:$0xff] %v14263_v22  ;;  %v5171_v19 = vpop.f32.mrb[217].mxu1  ;;  %v15745_v22 = vld [vmem:[#allocation55_spill] sm:$0xff] }
 0x8ac   : > { %v14265_v24 = vpop.f32.mrb[218].mxu1 }
 0x8ad   : > { %15736 = vst [vmem:[#allocation52_spill] sm:$0xff] %v14265_v24  ;;  %v5174_v53 = vpop.f32.mrb[219].mxu1 }
 0x8af   : > { %5490 = vmatmul.mubr.bf16.gmra.mrb[68].mxu1 %v15737_v14 }
 0x8b0   : > { %9744 = vmatprep.mubr.msk.bf16.mxu1 %vm4662_vm2, %v15738_v44  ;;  %v15746_v44 = vld [vmem:[#allocation58_spill] sm:$0xff] }
 0x8b2   : > { %v14270_v51 = vpop.f32.mrb[220].mxu1 }
 0x8b3   : > { %15739 = vst [vmem:[#allocation51_spill] sm:$0xff] %v14270_v51  ;;  %v5179_v50 = vpop.f32.mrb[221].mxu1  ;;  %v15749_v51 = vld [vmem:[#allocation57_spill] sm:$0xff] }
 0x8b4   : > { %v14272_v46 = vpop.f32.mrb[222].mxu1 }
 0x8b5   : > { %15740 = vst [vmem:[#allocation54_spill] sm:$0xff] %v14272_v46  ;;  %v5182_v41 = vpop.f32.mrb[223].mxu1 }
 0x8b7   : > { %5498 = vmatmul.mubr.bf16.gmra.mrb[72].mxu1 %v15741_v35 }
 0x8b8   : > { %9745 = vmatprep.mubr.msk.bf16.mxu1 %vm4662_vm2, %v15742_v55  ;;  %v15750_v55 = vld [vmem:[#allocation60_spill] sm:$0xff] }
 0x8ba   : > { %v14277_v19 = vpop.f32.mrb[224].mxu1 }
 0x8bb   : > { %15743 = vst [vmem:[#allocation53_spill] sm:$0xff] %v14277_v19  ;;  %v5187_v24 = vpop.f32.mrb[225].mxu1 }
 0x8bc   : > { %v14279_v53 = vpop.f32.mrb[226].mxu1  ;;  %v12124_v24 = vld [vmem:[%s15447_s4 + $0x44] ss:$0 sps:$4 sm:$0xff]  }
 0x8bd   : > { %15744 = vst [vmem:[#allocation56_spill] sm:$0xff] %v14279_v53  ;;  %v5190_v14 = vpop.f32.mrb[227].mxu1  ;;  %11999 = vmatprep.subr.msk.bf16.mxu1 %vm6085_vm3, %v12124_v24 }
 0x8bf   : > { %5506 = vmatmul.mubr.bf16.gmra.mrb[76].mxu1 %v15745_v22  ;;  %v6087_v22 = vsel %vm6085_vm3, %v12124_v24, 0  ;;  %v15758_v24 = vld [vmem:[#allocation64_spill] sm:$0xff] }
 0x8c0   : > { %9746 = vmatprep.mubr.msk.bf16.mxu1 %vm4662_vm2, %v15746_v44  ;;  %10418 = vmatpush3.bf16.msra.mxu1 %v6087_v22 }
 0x8c2   : > { %v14284_v50 = vpop.f32.mrb[228].mxu1 }
 0x8c3   : > { %15747 = vst [vmem:[#allocation55_spill] sm:$0xff] %v14284_v50  ;;  %v5195_v46 = vpop.f32.mrb[229].mxu1 }
 0x8c4   : > { %v14286_v41 = vpop.f32.mrb[230].mxu1 }
 0x8c5   : > { %15748 = vst [vmem:[#allocation58_spill] sm:$0xff] %v14286_v41  ;;  %v5198_v35 = vpop.f32.mrb[231].mxu1  ;;  %v15754_v41 = vld [vmem:[#allocation62_spill] sm:$0xff] }
 0x8c7   : > { %5514 = vmatmul.mubr.bf16.gmra.mrb[80].mxu1 %v15749_v51  ;;  %v15753_v51 = vld [vmem:[#allocation59_spill] sm:$0xff] }
 0x8c8   : > { %9747 = vmatprep.mubr.msk.bf16.mxu1 %vm4662_vm2, %v15750_v55 }
 0x8ca   : > { %v14296_v14 = vpop.f32.mrb[232].mxu1 }
 0x8cb   : > { %15751 = vst [vmem:[#allocation57_spill] sm:$0xff] %v14296_v14  ;;  %v5203_v46 = vpop.f32.mrb[233].mxu1 }
 0x8cc   : > { %v14298_v44 = vpop.f32.mrb[234].mxu1 }
 0x8cd   : > { %15752 = vst [vmem:[#allocation60_spill] sm:$0xff] %v14298_v44  ;;  %v5206_v35 = vpop.f32.mrb[235].mxu1  ;;  %v15761_v44 = vld [vmem:[#allocation63_spill] sm:$0xff] }
 0x8cf   : > { %5522 = vmatmul.mubr.bf16.gmra.mrb[84].mxu1 %v15753_v51 }
 0x8d0   : > { %9748 = vmatprep.mubr.msk.bf16.mxu1 %vm4662_vm2, %v15754_v41  ;;  %v15762_v41 = vld [vmem:[#allocation67_spill] sm:$0xff] }
 0x8d2   : > { %v14303_v50 = vpop.f32.mrb[236].mxu1 }
 0x8d3   : > { %15755 = vst [vmem:[#allocation59_spill] sm:$0xff] %v14303_v50  ;;  %v5211_v53 = vpop.f32.mrb[237].mxu1  ;;  %v15763_v50 = vld [vmem:[#allocation65_spill] sm:$0xff] }
 0x8d4   : > { %v14305_v55 = vpop.f32.mrb[238].mxu1 }
 0x8d5   : > { %15756 = vst [vmem:[#allocation62_spill] sm:$0xff] %v14305_v55  ;;  %v5214_v19 = vpop.f32.mrb[239].mxu1 }
 0x8d7   : > { %5530 = vmatmul.mubr.bf16.gmra.mrb[88].mxu1 %v15757_v40  ;;  %v15764_v40 = vld [vmem:[#allocation68_spill] sm:$0xff] }
 0x8d8   : > { %9749 = vmatprep.mubr.msk.bf16.mxu1 %vm4662_vm2, %v15758_v24  ;;  %v15765_v24 = vld [vmem:[#allocation66_spill] sm:$0xff] }
 0x8da   : > { %v14310_v22 = vpop.f32.mrb[240].mxu1 }
 0x8db   : > { %15759 = vst [vmem:[#allocation61_spill] sm:$0xff] %v14310_v22  ;;  %v5219_v46 = vpop.f32.mrb[241].mxu1  ;;  %v15766_v22 = vld [vmem:[#allocation71_spill] sm:$0xff] }
 0x8dc   : > { %v14312_v35 = vpop.f32.mrb[242].mxu1 }
 0x8dd   : > { %15760 = vst [vmem:[#allocation64_spill] sm:$0xff] %v14312_v35  ;;  %v5222_v51 = vpop.f32.mrb[243].mxu1 }
 0x8de   : > { %v15767_v51 = vld [vmem:[#allocation69_spill] sm:$0xff] }
 0x8df   : > { %5538 = vmatmul.mubr.bf16.gmra.mrb[92].mxu1 %v15761_v44 }
 0x8e0   : > { %9750 = vmatprep.mubr.msk.bf16.mxu1 %vm4662_vm2, %v15762_v41 }
 0x8e2   : > { %v5331_v53 = vpop.f32.mrb[244].mxu1 }
 0x8e3   : > { %v5714_v55 = vmax.f32 %v15763_v50, %v5331_v53  ;;  %v5333_v19 = vpop.f32.mrb[245].mxu1  ;;  %v15770_v50 = vld [vmem:[#allocation75_spill] sm:$0xff] }
 0x8e4   : > { %v5334_v14 = vpop.f32.mrb[246].mxu1 }
 0x8e5   : > { %v5715_v20 = vmax.f32 %v15764_v40, %v5334_v14  ;;  %v5336_v13 = vpop.f32.mrb[247].mxu1 }
 0x8e6   : > { %v15771_v13 = vld [vmem:[#allocation73_spill] sm:$0xff] }
 0x8e7   : > { %5546 = vmatmul.mubr.bf16.gmra.mrb[96].mxu1 %v15765_v24 }
 0x8e8   : > { %9751 = vmatprep.mubr.msk.bf16.mxu1 %vm4662_vm2, %v15766_v22  ;;  %v15773_v22 = vld [vmem:[#allocation76_spill] sm:$0xff] }
 0x8ea   : > { %v5339_v46 = vpop.f32.mrb[248].mxu1 }
 0x8eb   : > { %v5716_v35 = vmax.f32 %v15767_v51, %v5339_v46  ;;  %v5341_v44 = vpop.f32.mrb[249].mxu1 }
 0x8ec   : > { %v5342_v59 = vpop.f32.mrb[250].mxu1  ;;  %v15775_v44 = vld [vmem:[#allocation74_spill] sm:$0xff] }
 0x8ed   : > { %v5717_v41 = vmax.f32 %v15768_v52, %v5342_v59  ;;  %v5344_v33 = vpop.f32.mrb[251].mxu1  ;;  %v15777_v59 = vld [vmem:[#allocation77_spill] sm:$0xff] }
 0x8ee   : > { %v15776_v33 = vld [vmem:[#allocation79_spill] sm:$0xff] }
 0x8ef   : > { %5554 = vmatmul.mubr.bf16.gmra.mrb[100].mxu1 %v15769_v9 }
 0x8f0   : > { %9752 = vmatprep.mubr.msk.bf16.mxu1 %vm4662_vm2, %v15770_v50 }
 0x8f2   : > { %v5347_v14 = vpop.f32.mrb[252].mxu1 }
 0x8f3   : > { %v5718_v53 = vmax.f32 %v15771_v13, %v5347_v14  ;;  %v5349_v19 = vpop.f32.mrb[253].mxu1 }
 0x8f4   : > { %v5350_v40 = vpop.f32.mrb[254].mxu1  ;;  %v15779_v19 = vld [vmem:[#allocation80_spill] sm:$0xff] }
 0x8f5   : > { %v14328_v24 = vmax.f32 %v5714_v55, %v5718_v53  ;;  %v5719_v15 = vmax.f32 %v15773_v22, %v5350_v40  ;;  %v5352_v46 = vpop.f32.mrb[255].mxu1 }
 0x8f6   : > { %v15781_v46 = vld [vmem:[#allocation78_spill] sm:$0xff] }
 0x8f7   : > { %15772 = vst [vmem:[#allocation63_spill] sm:$0xff] %v14328_v24  ;;  %v14331_v51 = vmax.f32 %v5715_v20, %v5719_v15  ;;  %5562 = vmatmul.mubr.bf16.gmra.mrb[104].mxu1 %v15775_v44  ;;  %v15782_v44 = vld [vmem:[#allocation83_spill] sm:$0xff]  ;;  %v15783_v24 = vld [vmem:[#allocation81_spill] sm:$0xff] }
 0x8f8   : > { %9753 = vmatprep.mubr.msk.bf16.mxu1 %vm4662_vm2, %v15776_v33 }
 0x8f9   : > { %15774 = vst [vmem:[#allocation67_spill] sm:$0xff] %v14331_v51  ;;  %v15784_v51 = vld [vmem:[#allocation84_spill] sm:$0xff] }
 0x8fa   : > { %v5355_v52 = vpop.f32.mrb[0].mxu1 }
 0x8fb   : > { %v5720_v50 = vmax.f32 %v15777_v59, %v5355_v52  ;;  %v5357_v14 = vpop.f32.mrb[1].mxu1 }
 0x8fc   : > { %v5358_v13 = vpop.f32.mrb[2].mxu1 }
 0x8fd   : > { %v14339_v55 = vmax.f32 %v5716_v35, %v5720_v50  ;;  %v5721_v40 = vmax.f32 %v15779_v19, %v5358_v13  ;;  %v5360_v22 = vpop.f32.mrb[3].mxu1 }
 0x8fe   : > { %v15786_v22 = vld [vmem:[#allocation87_spill] sm:$0xff] }
 0x8ff   : > { %15778 = vst [vmem:[#allocation65_spill] sm:$0xff] %v14339_v55  ;;  %v14342_v20 = vmax.f32 %v5717_v41, %v5721_v40  ;;  %5570 = vmatmul.mubr.bf16.gmra.mrb[108].mxu1 %v15781_v46  ;;  %v15785_v41 = vld [vmem:[#allocation82_spill] sm:$0xff] }
 0x900   : > { %9754 = vmatprep.mubr.msk.bf16.mxu1 %vm4662_vm2, %v15782_v44 }
 0x901   : > { %15780 = vst [vmem:[#allocation68_spill] sm:$0xff] %v14342_v20 }
 0x902   : > { %v5363_v9 = vpop.f32.mrb[4].mxu1 }
 0x903   : > { %v5722_v52 = vmax.f32 %v15783_v24, %v5363_v9  ;;  %v5365_v59 = vpop.f32.mrb[5].mxu1  ;;  %v15788_v9 = vld [vmem:[#allocation88_spill] sm:$0xff] }
 0x904   : > { %v5366_v14 = vpop.f32.mrb[6].mxu1 }
 0x905   : > { %v5814_v35 = vmax.f32 %v5718_v53, %v5722_v52  ;;  %v5723_v49 = vmax.f32 %v15784_v51, %v5366_v14  ;;  %v5368_v13 = vpop.f32.mrb[7].mxu1  ;;  %v15789_v51 = vld [vmem:[#allocation86_spill] sm:$0xff] }
 0x907   : > { %v5815_v19 = vmax.f32 %v5719_v15, %v5723_v49  ;;  %5578 = vmatmul.mubr.bf16.gmra.mrb[112].mxu1 %v15785_v41  ;;  %v15790_v15 = vld [vmem:[#allocation91_spill] sm:$0xff] }
 0x908   : > { %9755 = vmatprep.mubr.msk.bf16.mxu1 %vm4662_vm2, %v15786_v22 }
 0x909   : > { %v14354_v46 = vpack.c.bf16 %v5815_v19, %v5814_v35  ;;  %v15791_v35 = vld [vmem:[#allocation89_spill] sm:$0xff] }
 0x90a   : > { %v5371_v44 = vpop.f32.mrb[8].mxu1 }
 0x90b   : > { %v5724_v33 = vmax.f32 %v15787_v11, %v5371_v44  ;;  %v5373_v55 = vpop.f32.mrb[9].mxu1 }
 0x90c   : > { %v5374_v20 = vpop.f32.mrb[10].mxu1  ;;  %v15792_v55 = vld [vmem:[#allocation92_spill] sm:$0xff] }
 0x90d   : > { %v5816_v24 = vmax.f32 %v5720_v50, %v5724_v33  ;;  %v5725_v59 = vmax.f32 %v15788_v9, %v5374_v20  ;;  %v5376_v53 = vpop.f32.mrb[11].mxu1  ;;  %v15793_v9 = vld [vmem:[#allocation90_spill] sm:$0xff] }
 0x90f   : > { %v5817_v5 = vmax.f32 %v5721_v40, %v5725_v59  ;;  %5586 = vmatmul.mubr.bf16.gmra.mrb[116].mxu1 %v15789_v51  ;;  %v14368_v40 = vld [vmem:[%s15447_s4 + $0x6c] sm:$0xff]  }
 0x910   : > { %9756 = vmatprep.mubr.msk.bf16.mxu1 %vm4662_vm2, %v15790_v15  ;;  %10479 = vmatprep.subr.bf16.mxu1 %v14368_v40 }
 0x911   : > { %v14361_v14 = vpack.c.bf16 %v5817_v5, %v5816_v24 }
 0x912   : > { %v5379_v13 = vpop.f32.mrb[12].mxu1 }
 0x913   : > { %v5726_v19 = vmax.f32 %v15791_v35, %v5379_v13  ;;  %v5381_v41 = vpop.f32.mrb[13].mxu1  ;;  %v15794_v13 = vld [vmem:[#allocation94_spill] sm:$0xff] }
 0x914   : > { %v5382_v22 = vpop.f32.mrb[14].mxu1 }
 0x915   : > { %v5818_v11 = vmax.f32 %v5722_v52, %v5726_v19  ;;  %v5727_v44 = vmax.f32 %v15792_v55, %v5382_v22  ;;  %v5384_v50 = vpop.f32.mrb[15].mxu1 }
 0x917   : > { %v5819_v20 = vmax.f32 %v5723_v49, %v5727_v44  ;;  %5594 = vmatmul.mubr.bf16.gmra.mrb[120].mxu1 %v15793_v9  ;;  %v15795_v49 = vld [vmem:[#allocation93_spill] sm:$0xff] }
 0x918   : > { %9757 = vmatprep.mubr.msk.bf16.mxu1 %vm4662_vm2, %v13857_v31 }
 0x919   : > { %v14374_v5 = vpack.c.bf16 %v5819_v20, %v5818_v11 }
 0x91a   : > { %v5387_v24 = vpop.f32.mrb[16].mxu1 }
 0x91b   : > { %v5728_v52 = vmax.f32 %v13853_v57, %v5387_v24  ;;  %v5389_v53 = vpop.f32.mrb[17].mxu1 }
 0x91c   : > { %v5390_v51 = vpop.f32.mrb[18].mxu1 }
 0x91d   : > { %v5820_v15 = vmax.f32 %v5724_v33, %v5728_v52  ;;  %v5729_v35 = vmax.f32 %v15794_v13, %v5390_v51  ;;  %v5392_v41 = vpop.f32.mrb[19].mxu1 }
 0x91f   : > { %v5821_v22 = vmax.f32 %v5725_v59, %v5729_v35  ;;  %5602 = vmatmul.mubr.bf16.gmra.mrb[124].mxu1 %v15795_v49 }
 0x920   : > { %9758 = vmatprep.mubr.msk.bf16.mxu1 %vm4662_vm2, %v13879_v28 }
 0x921   : > { %v14381_v55 = vpack.c.bf16 %v5821_v22, %v5820_v15 }
 0x922   : > { %v5395_v31 = vpop.f32.mrb[20].mxu1 }
 0x923   : > { %v5730_v11 = vmax.f32 %v13872_v26, %v5395_v31  ;;  %v5397_v50 = vpop.f32.mrb[21].mxu1 }
 0x924   : > { %v5398_v20 = vpop.f32.mrb[22].mxu1 }
 0x925   : > { %v5822_v57 = vmax.f32 %v5726_v19, %v5730_v11  ;;  %v5731_v9 = vmax.f32 %v13874_v27, %v5398_v20  ;;  %v5400_v33 = vpop.f32.mrb[23].mxu1 }
 0x927   : > { %v5823_v24 = vmax.f32 %v5727_v44, %v5731_v9  ;;  %5610 = vmatmul.mubr.bf16.gmra.mrb[128].mxu1 %v13877_v38 }
 0x928   : > { %9759 = vmatprep.mubr.msk.bf16.mxu1 %vm4662_vm2, %v13898_v8 }
 0x929   : > { %v14388_v59 = vpack.c.bf16 %v5823_v24, %v5822_v57 }
 0x92a   : > { %v5403_v28 = vpop.f32.mrb[24].mxu1 }
 0x92b   : > { %v5732_v53 = vmax.f32 %v13891_v36, %v5403_v28  ;;  %v5405_v51 = vpop.f32.mrb[25].mxu1 }
 0x92c   : > { %v5406_v15 = vpop.f32.mrb[26].mxu1 }
 0x92d   : > { %v5824_v26 = vmax.f32 %v5728_v52, %v5732_v53  ;;  %v5733_v13 = vmax.f32 %v13893_v10, %v5406_v15  ;;  %v5408_v19 = vpop.f32.mrb[27].mxu1 }
 0x92f   : > { %v5825_v41 = vmax.f32 %v5729_v35, %v5733_v13  ;;  %5618 = vmatmul.mubr.bf16.gmra.mrb[132].mxu1 %v13896_v48 }
 0x930   : > { %9760 = vmatprep.mubr.msk.bf16.mxu1 %vm4662_vm2, %v13917_v17 }
 0x931   : > { %v14395_v38 = vpack.c.bf16 %v5825_v41, %v5824_v26 }
 0x932   : > { %v5411_v27 = vpop.f32.mrb[28].mxu1 }
 0x933   : > { %v5734_v8 = vmax.f32 %v13910_v7, %v5411_v27  ;;  %v5413_v44 = vpop.f32.mrb[29].mxu1 }
 0x934   : > { %v5414_v22 = vpop.f32.mrb[30].mxu1 }
 0x935   : > { %v5826_v36 = vmax.f32 %v5730_v11, %v5734_v8  ;;  %v5735_v49 = vmax.f32 %v13912_v39, %v5414_v22  ;;  %v5416_v52 = vpop.f32.mrb[31].mxu1 }
 0x937   : > { %v5827_v31 = vmax.f32 %v5731_v9, %v5735_v49  ;;  %5626 = vmatmul.mubr.bf16.gmra.mrb[136].mxu1 %v13915_v1 }
 0x938   : > { %9761 = vmatprep.mubr.msk.bf16.mxu1 %vm4662_vm2, %v13936_v25 }
 0x939   : > { %v14402_v10 = vpack.c.bf16 %v5827_v31, %v5826_v36 }
 0x93a   : > { %v5419_v48 = vpop.f32.mrb[32].mxu1 }
 0x93b   : > { %v5736_v17 = vmax.f32 %v13929_v18, %v5419_v48  ;;  %v5421_v35 = vpop.f32.mrb[33].mxu1 }
 0x93c   : > { %v5422_v50 = vpop.f32.mrb[34].mxu1 }
 0x93d   : > { %v5828_v7 = vmax.f32 %v5732_v53, %v5736_v17  ;;  %v5737_v20 = vmax.f32 %v13931_v12, %v5422_v50  ;;  %v5424_v11 = vpop.f32.mrb[35].mxu1 }
 0x93f   : > { %v5829_v57 = vmax.f32 %v5733_v13, %v5737_v20  ;;  %5634 = vmatmul.mubr.bf16.gmra.mrb[140].mxu1 %v13934_v21 }
 0x940   : > { %9762 = vmatprep.mubr.msk.bf16.mxu1 %vm4662_vm2, %v13955_v34 }
 0x941   : > { %v14409_v39 = vpack.c.bf16 %v5829_v57, %v5828_v7 }
 0x942   : > { %v5427_v1 = vpop.f32.mrb[36].mxu1 }
 0x943   : > { %v5738_v25 = vmax.f32 %v13948_v56, %v5427_v1  ;;  %v5429_v9 = vpop.f32.mrb[37].mxu1  ;;  %v15796_v1 = vld [vmem:[#allocation95_spill] sm:$0xff] }
 0x944   : > { %v5430_v33 = vpop.f32.mrb[38].mxu1 }
 0x945   : > { %v5830_v18 = vmax.f32 %v5734_v8, %v5738_v25  ;;  %v5739_v24 = vmax.f32 %v13950_v43, %v5430_v33  ;;  %v5432_v28 = vpop.f32.mrb[39].mxu1 }
 0x947   : > { %v5831_v53 = vmax.f32 %v5735_v49, %v5739_v24  ;;  %5642 = vmatmul.mubr.bf16.gmra.mrb[144].mxu1 %v13953_v58 }
 0x948   : > { %9763 = vmatprep.mubr.msk.bf16.mxu1 %vm4662_vm2, %v13974_v4 }
 0x949   : > { %v14416_v12 = vpack.c.bf16 %v5831_v53, %v5830_v18  ;;  %v15798_v18 = vld [vmem:[#allocation98_spill] sm:$0xff] }
 0x94a   : > { %v5435_v21 = vpop.f32.mrb[40].mxu1 }
 0x94b   : > { %v5740_v34 = vmax.f32 %v13967_v47, %v5435_v21  ;;  %v5437_v51 = vpop.f32.mrb[41].mxu1 }
 0x94c   : > { %v5438_v15 = vpop.f32.mrb[42].mxu1 }
 0x94d   : > { %v5832_v56 = vmax.f32 %v5736_v17, %v5740_v34  ;;  %v5741_v26 = vmax.f32 %v13969_v60, %v5438_v15  ;;  %v5440_v13 = vpop.f32.mrb[43].mxu1 }
 0x94f   : > { %v5833_v19 = vmax.f32 %v5737_v20, %v5741_v26  ;;  %5650 = vmatmul.mubr.bf16.gmra.mrb[148].mxu1 %v13972_v2 }
 0x950   : > { %9764 = vmatprep.mubr.msk.bf16.mxu1 %vm4662_vm2, %v13993_v62 }
 0x951   : > { %v14423_v43 = vpack.c.bf16 %v5833_v19, %v5832_v56 }
 0x952   : > { %v5443_v58 = vpop.f32.mrb[44].mxu1 }
 0x953   : > { %v5742_v4 = vmax.f32 %v13986_v32, %v5443_v58  ;;  %v5445_v41 = vpop.f32.mrb[45].mxu1  ;;  %v15802_v58 = vld [vmem:[#allocation22_spill] sm:$0xff] }
 0x954   : > { %v5446_v27 = vpop.f32.mrb[46].mxu1 }
 0x955   : > { %v5834_v47 = vmax.f32 %v5738_v25, %v5742_v4  ;;  %v5743_v8 = vmax.f32 %v13988_v0, %v5446_v27  ;;  %v5448_v44 = vpop.f32.mrb[47].mxu1 }
 0x957   : > { %v5835_v22 = vmax.f32 %v5739_v24, %v5743_v8  ;;  %5658 = vmatmul.mubr.bf16.gmra.mrb[152].mxu1 %v13991_v61  ;;  %v15799_v24 = vld [vmem:[#allocation20_spill] sm:$0xff] }
 0x958   : > { %9765 = vmatprep.mubr.msk.bf16.mxu1 %vm4662_vm2, %v14012_v30 }
 0x959   : > { %v14430_v60 = vpack.c.bf16 %v5835_v22, %v5834_v47 }
 0x95a   : > { %v5451_v2 = vpop.f32.mrb[48].mxu1 }
 0x95b   : > { %v5744_v62 = vmax.f32 %v14005_v45, %v5451_v2  ;;  %v5453_v36 = vpop.f32.mrb[49].mxu1 }
 0x95c   : > { %v5454_v49 = vpop.f32.mrb[50].mxu1  ;;  %v15805_v36 = vld [vmem:[#allocation32_spill] sm:$0xff] }
 0x95d   : > { %v5836_v32 = vmax.f32 %v5740_v34, %v5744_v62  ;;  %v5745_v52 = vmax.f32 %v14007_v3, %v5454_v49  ;;  %v5456_v31 = vpop.f32.mrb[51].mxu1  ;;  %v15800_v34 = vld [vmem:[#allocation97_spill] sm:$0xff] }
 0x95f   : > { %v5837_v48 = vmax.f32 %v5741_v26, %v5745_v52  ;;  %5666 = vmatmul.mubr.bf16.gmra.mrb[156].mxu1 %v14010_v29  ;;  %v15801_v26 = vld [vmem:[#allocation21_spill] sm:$0xff] }
 0x960   : > { %9766 = vmatprep.mubr.msk.bf16.mxu1 %vm4662_vm2, %v14031_v16 }
 0x961   : > { %v14437_v0 = vpack.c.bf16 %v5837_v48, %v5836_v32  ;;  %v15806_v32 = vld [vmem:[#allocation27_spill] sm:$0xff] }
 0x962   : > { %v5459_v61 = vpop.f32.mrb[52].mxu1 }
 0x963   : > { %v5746_v30 = vmax.f32 %v14024_v63, %v5459_v61  ;;  %v5461_v17 = vpop.f32.mrb[53].mxu1 }
 0x964   : > { %v5462_v35 = vpop.f32.mrb[54].mxu1 }
 0x965   : > { %v5838_v45 = vmax.f32 %v5742_v4, %v5746_v30  ;;  %v5747_v50 = vmax.f32 %v14026_v54, %v5462_v35  ;;  %v5464_v7 = vpop.f32.mrb[55].mxu1  ;;  %v15797_v54 = vld [vmem:[#allocation96_spill] sm:$0xff] }
 0x967   : > { %v5839_v20 = vmax.f32 %v5743_v8, %v5747_v50  ;;  %5674 = vmatmul.mubr.bf16.gmra.mrb[160].mxu1 %v14029_v37  ;;  %v15803_v8 = vld [vmem:[#allocation24_spill] sm:$0xff] }
 0x968   : > { %9767 = vmatprep.mubr.msk.bf16.mxu1 %vm4662_vm2, %v14050_v23 }
 0x969   : > { %v14444_v3 = vpack.c.bf16 %v5839_v20, %v5838_v45 }
 0x96a   : > { %v5467_v29 = vpop.f32.mrb[56].mxu1 }
 0x96b   : > { %v5748_v16 = vmax.f32 %v14043_v6, %v5467_v29  ;;  %v5469_v11 = vpop.f32.mrb[57].mxu1  ;;  %v15809_v29 = vld [vmem:[#allocation99_spill] sm:$0xff] }
 0x96c   : > { %v5470_v57 = vpop.f32.mrb[58].mxu1 }
 0x96d   : > { %v5840_v63 = vmax.f32 %v5744_v62, %v5748_v16  ;;  %v5749_v25 = vmax.f32 %v15796_v1, %v5470_v57  ;;  %v5472_v9 = vpop.f32.mrb[59].mxu1  ;;  %v15804_v62 = vld [vmem:[#allocation26_spill] sm:$0xff]  ;;  %v15810_v1 = vld [vmem:[#allocation3_spill] sm:$0xff] }
 0x96f   : > { %v5841_v33 = vmax.f32 %v5745_v52, %v5749_v25  ;;  %5682 = vmatmul.mubr.bf16.gmra.mrb[164].mxu1 %v15797_v54 }
 0x970   : > { %9768 = vmatprep.mubr.msk.bf16.mxu1 %vm4662_vm2, %v15798_v18 }
 0x971   : > { %v14451_v37 = vpack.c.bf16 %v5841_v33, %v5840_v63  ;;  %v12126_v33 = vld [vmem:[%s15447_s4 + $0x74] sm:$0xff]  }
 0x972   : > { %v5475_v23 = vpop.f32.mrb[60].mxu1 }
 0x973   : > { %v5750_v28 = vmax.f32 %v15799_v24, %v5475_v23  ;;  %v5477_v53 = vpop.f32.mrb[61].mxu1  ;;  %v12127_v23 = vld [vmem:[%s15447_s4 + $0x7c] sm:$0xff]  }
 0x974   : > { %v5478_v21 = vpop.f32.mrb[62].mxu1 }
 0x975   : > { %v5842_v6 = vmax.f32 %v5746_v30, %v5750_v28  ;;  %v5751_v51 = vmax.f32 %v15800_v34, %v5478_v21  ;;  %v5480_v15 = vpop.f32.mrb[63].mxu1  ;;  %v15807_v30 = vld [vmem:[#allocation28_spill] sm:$0xff] }
 0x977   : > { %v5843_v56 = vmax.f32 %v5747_v50, %v5751_v51  ;;  %5690 = vmatmul.mubr.bf16.gmra.mrb[168].mxu1 %v15801_v26  ;;  %v15808_v50 = vld [vmem:[#allocation30_spill] sm:$0xff] }
 0x978   : > { %9769 = vmatprep.mubr.msk.bf16.mxu1 %vm4662_vm2, %v14088_v42 }
 0x979   : > { %v14458_v13 = vpack.c.bf16 %v5843_v56, %v5842_v6 }
 0x97a   : > { %v5483_v19 = vpop.f32.mrb[64].mxu1 }
 0x97b   : > { %v5752_v4 = vmax.f32 %v15802_v58, %v5483_v19  ;;  %v5485_v41 = vpop.f32.mrb[65].mxu1  ;;  %v12129_v58 = vld [vmem:[%s15447_s4 + $0x8c] ss:$0 sps:$4 sm:$0xff]  }
 0x97c   : > { %v5486_v27 = vpop.f32.mrb[66].mxu1  ;;  %v15813_v41 = vld [vmem:[#allocation4_spill] sm:$0xff] }
 0x97d   : > { %v5844_v47 = vmax.f32 %v5748_v16, %v5752_v4  ;;  %v5753_v44 = vmax.f32 %v15803_v8, %v5486_v27  ;;  %v5488_v22 = vpop.f32.mrb[67].mxu1 }
 0x97e   : > { %v15814_v22 = vld [vmem:[#allocation7_spill] sm:$0xff] }
 0x97f   : > { %v5845_v2 = vmax.f32 %v5749_v25, %v5753_v44  ;;  %5698 = vmatmul.mubr.bf16.gmra.mrb[172].mxu1 %v15804_v62 }
 0x980   : > { %9770 = vmatprep.mubr.msk.bf16.mxu1 %vm4662_vm2, %v15805_v36  ;;  %v6434_v36 = vsel %vm6085_vm3, %v12129_v58, 0 }
 0x981   : > { %v14465_v49 = vpack.c.bf16 %v5845_v2, %v5844_v47 }
 0x982   : > { %v5491_v42 = vpop.f32.mrb[68].mxu1 }
 0x983   : > { %v5754_v52 = vmax.f32 %v15806_v32, %v5491_v42  ;;  %v5493_v31 = vpop.f32.mrb[69].mxu1  ;;  %v14510_v42 = vld [vmem:[%s15447_s4 + $0x90] sm:$0xff]  }
 0x984   : > { %v5494_v48 = vpop.f32.mrb[70].mxu1 }
 0x985   : > { %v5846_v61 = vmax.f32 %v5750_v28, %v5754_v52  ;;  %v5755_v17 = vmax.f32 %v15807_v30, %v5494_v48  ;;  %v5496_v35 = vpop.f32.mrb[71].mxu1  ;;  %v15811_v28 = vld [vmem:[#allocation2_spill] sm:$0xff] }
 0x986   : > { %v15815_v48 = vld [vmem:[#allocation6_spill] sm:$0xff] }
 0x987   : > { %v5847_v45 = vmax.f32 %v5751_v51, %v5755_v17  ;;  %5706 = vmatmul.mubr.bf16.gmra.mrb[176].mxu1 %v15808_v50  ;;  %v15812_v51 = vld [vmem:[#allocation5_spill] sm:$0xff] }
 0x988   : > { %10419 = vmatprep.mubr.msk.bf16.mxu1 %vm5994_vm4, %v14374_v5 }
 0x989   : > { %v14472_v7 = vpack.c.bf16 %v5847_v45, %v5846_v61  ;;  %v15816_v45 = vld [vmem:[#allocation9_spill] sm:$0xff] }
 0x98a   : > { %v5499_v20 = vpop.f32.mrb[72].mxu1 }
 0x98b   : > { %v5756_v16 = vmax.f32 %v15809_v29, %v5499_v20  ;;  %v5501_v11 = vpop.f32.mrb[73].mxu1 }
 0x98c   : > { %v5502_v57 = vpop.f32.mrb[74].mxu1 }
 0x98d   : > { %v5848_v63 = vmax.f32 %v5752_v4, %v5756_v16  ;;  %v5757_v25 = vmax.f32 %v15810_v1, %v5502_v57  ;;  %v5504_v9 = vpop.f32.mrb[75].mxu1  ;;  %v15817_v57 = vld [vmem:[#allocation8_spill] sm:$0xff] }
 0x98f   : > { %v5849_v54 = vmax.f32 %v5753_v44, %v5757_v25  ;;  %10420 = vmatmul.mubr.msk.bf16.vlgmr.msra.gmra.mrb[180].mxu1 %vm5994_vm4, %v14381_v55 }
 0x990   : > { %10423 = vmatprep.mubr.msk.bf16.mxu1 %vm5994_vm4, %v14388_v59  ;;  %10480 = vmatpush3.bf16.msra.mxu1 %v14368_v40  ;;  %v12128_v40 = vld [vmem:[%s15447_s4 + $0x84] sm:$0xff]  }
 0x991   : > { %v14484_v18 = vpack.c.bf16 %v5849_v54, %v5848_v63  ;;  %10481 = vmatprep.subr.bf16.mxu1 %v12126_v33 }
 0x992   : > { %v5507_v24 = vpop.f32.mrb[76].mxu1 }
 0x993   : > { %v5758_v53 = vmax.f32 %v15811_v28, %v5507_v24  ;;  %v5509_v21 = vpop.f32.mrb[77].mxu1 }
 0x994   : > { %v5510_v6 = vpop.f32.mrb[78].mxu1  ;;  %10482 = vmatpush3.bf16.msra.mxu1 %v12126_v33  ;;  %v15818_v33 = vld [vmem:[#allocation11_spill] sm:$0xff]  ;;  %v15819_v21 = vld [vmem:[#allocation10_spill] sm:$0xff] }
 0x995   : > { %v5850_v34 = vmax.f32 %v5754_v52, %v5758_v53  ;;  %v5759_v15 = vmax.f32 %v15812_v51, %v5510_v6  ;;  %v5512_v56 = vpop.f32.mrb[79].mxu1  ;;  %10483 = vmatprep.subr.bf16.mxu1 %v12127_v23 }
 0x996   : > { %v15820_v56 = vld [vmem:[#allocation13_spill] sm:$0xff] }
 0x997   : > { %v5851_v26 = vmax.f32 %v5755_v17, %v5759_v15  ;;  %10424 = vmatmul.mubr.msk.bf16.gmra.mrb[184].mxu1 %vm5994_vm4, %v14395_v38 }
 0x998   : > { %10427 = vmatprep.mubr.msk.bf16.mxu1 %vm5994_vm4, %v14402_v10  ;;  %10484 = vmatpush3.bf16.msra.mxu1 %v12127_v23 }
 0x999   : > { %v14498_v19 = vpack.c.bf16 %v5851_v26, %v5850_v34  ;;  %10485 = vmatprep.subr.bf16.mxu1 %v12128_v40 }
 0x99a   : > { %v5515_v4 = vpop.f32.mrb[80].mxu1 }
 0x99b   : > { %v5760_v27 = vmax.f32 %v15813_v41, %v5515_v4  ;;  %v5517_v47 = vpop.f32.mrb[81].mxu1 }
 0x99c   : > { %v5518_v8 = vpop.f32.mrb[82].mxu1  ;;  %10486 = vmatpush3.bf16.msra.mxu1 %v12128_v40 }
 0x99d   : > { %v5852_v44 = vmax.f32 %v5756_v16, %v5760_v27  ;;  %v5761_v2 = vmax.f32 %v15814_v22, %v5518_v8  ;;  %v5520_v62 = vpop.f32.mrb[83].mxu1  ;;  %12000 = vmatprep.subr.msk.bf16.mxu1 %vm6085_vm3, %v12129_v58 }
 0x99f   : > { %v5853_v32 = vmax.f32 %v5757_v25, %v5761_v2  ;;  %10428 = vmatmul.mubr.msk.bf16.gmra.mrb[188].mxu1 %vm5994_vm4, %v14409_v39 }
 0x9a0   : > { %10431 = vmatprep.mubr.msk.bf16.mxu1 %vm5994_vm4, %v14416_v12  ;;  %10488 = vmatpush3.bf16.msra.mxu1 %v6434_v36 }
 0x9a1   : > { %v14516_v52 = vpack.c.bf16 %v5853_v32, %v5852_v44  ;;  %10549 = vmatprep.subr.bf16.mxu1 %v14510_v42 }
 0x9a2   : > { %v5523_v31 = vpop.f32.mrb[84].mxu1 }
 0x9a3   : > { %v5762_v61 = vmax.f32 %v15815_v48, %v5523_v31  ;;  %v5525_v30 = vpop.f32.mrb[85].mxu1 }
 0x9a4   : > { %v5526_v17 = vpop.f32.mrb[86].mxu1 }
 0x9a5   : > { %v5854_v35 = vmax.f32 %v5758_v53, %v5762_v61  ;;  %v5763_v50 = vmax.f32 %v15816_v45, %v5526_v17  ;;  %v5528_v20 = vpop.f32.mrb[87].mxu1 }
 0x9a7   : > { %v5855_v29 = vmax.f32 %v5759_v15, %v5763_v50  ;;  %10432 = vmatmul.mubr.msk.bf16.gmra.mrb[192].mxu1 %vm5994_vm4, %v14423_v43 }
 0x9a8   : > { %10435 = vmatprep.mubr.msk.bf16.mxu1 %vm5994_vm4, %v14430_v60 }
 0x9a9   : > { %v14525_v16 = vpack.c.bf16 %v5855_v29, %v5854_v35 }
 0x9aa   : > { %v5531_v11 = vpop.f32.mrb[88].mxu1 }
 0x9ab   : > { %v5764_v63 = vmax.f32 %v15817_v57, %v5531_v11  ;;  %v5533_v1 = vpop.f32.mrb[89].mxu1 }
 0x9ac   : > { %v5534_v25 = vpop.f32.mrb[90].mxu1 }
 0x9ad   : > { %v5856_v9 = vmax.f32 %v5760_v27, %v5764_v63  ;;  %v5765_v54 = vmax.f32 %v15818_v33, %v5534_v25  ;;  %v5536_v23 = vpop.f32.mrb[91].mxu1  ;;  %v15821_v27 = vld [vmem:[#allocation12_spill] sm:$0xff] }
 0x9ae   : > { %v15825_v25 = vld [vmem:[#allocation16_spill] sm:$0xff] }
 0x9af   : > { %v5857_v24 = vmax.f32 %v5761_v2, %v5765_v54  ;;  %10436 = vmatmul.mubr.msk.bf16.gmra.mrb[196].mxu1 %vm5994_vm4, %v14437_v0  ;;  %v15822_v2 = vld [vmem:[#allocation15_spill] sm:$0xff] }
 0x9b0   : > { %10439 = vmatprep.mubr.msk.bf16.mxu1 %vm5994_vm4, %v14444_v3 }
 0x9b1   : > { %v14533_v28 = vpack.c.bf16 %v5857_v24, %v5856_v9  ;;  %v15826_v24 = vld [vmem:[#allocation19_spill] sm:$0xff] }
 0x9b2   : > { %v5539_v53 = vpop.f32.mrb[92].mxu1 }
 0x9b3   : > { %v5766_v6 = vmax.f32 %v15819_v21, %v5539_v53  ;;  %v5541_v34 = vpop.f32.mrb[93].mxu1 }
 0x9b4   : > { %v5542_v51 = vpop.f32.mrb[94].mxu1 }
 0x9b5   : > { %v5858_v15 = vmax.f32 %v5762_v61, %v5766_v6  ;;  %v5767_v40 = vmax.f32 %v15820_v56, %v5542_v51  ;;  %v5544_v26 = vpop.f32.mrb[95].mxu1  ;;  %v15823_v61 = vld [vmem:[#allocation14_spill] sm:$0xff] }
 0x9b6   : > { %v15827_v51 = vld [vmem:[#allocation18_spill] sm:$0xff] }
 0x9b7   : > { %v5859_v58 = vmax.f32 %v5763_v50, %v5767_v40  ;;  %10440 = vmatmul.mubr.msk.bf16.gmra.mrb[200].mxu1 %vm5994_vm4, %v14451_v37  ;;  %v15824_v50 = vld [vmem:[#allocation17_spill] sm:$0xff] }
 0x9b8   : > { %10443 = vmatprep.mubr.msk.bf16.mxu1 %vm5994_vm4, %v14458_v13 }
 0x9b9   : > { %v14541_v4 = vpack.c.bf16 %v5859_v58, %v5858_v15  ;;  %v15828_v58 = vld [vmem:[#allocation25_spill] sm:$0xff] }
 0x9ba   : > { %v5547_v41 = vpop.f32.mrb[96].mxu1 }
 0x9bb   : > { %v5768_v47 = vmax.f32 %v15821_v27, %v5547_v41  ;;  %v5549_v8 = vpop.f32.mrb[97].mxu1 }
 0x9bc   : > { %v5550_v44 = vpop.f32.mrb[98].mxu1 }
 0x9bd   : > { %v5860_v22 = vmax.f32 %v5764_v63, %v5768_v47  ;;  %v5769_v62 = vmax.f32 %v15822_v2, %v5550_v44  ;;  %v5552_v36 = vpop.f32.mrb[99].mxu1 }
 0x9bf   : > { %v5861_v32 = vmax.f32 %v5765_v54, %v5769_v62  ;;  %10444 = vmatmul.mubr.msk.bf16.gmra.mrb[204].mxu1 %vm5994_vm4, %v14465_v49 }
 0x9c0   : > { %10447 = vmatprep.mubr.msk.bf16.mxu1 %vm5994_vm4, %v14472_v7 }
 0x9c1   : > { %v14549_v31 = vpack.c.bf16 %v5861_v32, %v5860_v22  ;;  %v15829_v22 = vld [vmem:[#allocation23_spill] sm:$0xff] }
 0x9c2   : > { %v5555_v48 = vpop.f32.mrb[100].mxu1 }
 0x9c3   : > { %v5770_v30 = vmax.f32 %v15823_v61, %v5555_v48  ;;  %v5557_v17 = vpop.f32.mrb[101].mxu1  ;;  %v15830_v48 = vld [vmem:[#allocation31_spill] sm:$0xff] }
 0x9c4   : > { %v5558_v35 = vpop.f32.mrb[102].mxu1 }
 0x9c5   : > { %v5862_v45 = vmax.f32 %v5766_v6, %v5770_v30  ;;  %v5771_v20 = vmax.f32 %v15824_v50, %v5558_v35  ;;  %v5560_v29 = vpop.f32.mrb[103].mxu1  ;;  %v15831_v50 = vld [vmem:[#allocation29_spill] sm:$0xff] }
 0x9c7   : > { %v5863_v11 = vmax.f32 %v5767_v40, %v5771_v20  ;;  %10448 = vmatmul.mubr.msk.bf16.gmra.mrb[208].mxu1 %vm5994_vm4, %v14484_v18 }
 0x9c8   : > { %10451 = vmatprep.mubr.msk.bf16.mxu1 %vm5994_vm4, %v14498_v19 }
 0x9c9   : > { %v14557_v57 = vpack.c.bf16 %v5863_v11, %v5862_v45 }
 0x9ca   : > { %v5563_v63 = vpop.f32.mrb[104].mxu1 }
 0x9cb   : > { %v5565_v1 = vpop.f32.mrb[105].mxu1  ;;  %v5772_v9 = vmax.f32 %v15825_v25, %v5563_v63 }
 0x9cc   : > { %v5566_v33 = vpop.f32.mrb[106].mxu1  ;;  %v15832_v1 = vld [vmem:[#allocation34_spill] sm:$0xff] }
 0x9cd   : > { %v5568_v54 = vpop.f32.mrb[107].mxu1  ;;  %v5864_v23 = vmax.f32 %v5768_v47, %v5772_v9  ;;  %v5773_v53 = vmax.f32 %v15826_v24, %v5566_v33  ;;  %v15833_v24 = vld [vmem:[#allocation33_spill] sm:$0xff] }
 0x9cf   : > { %10452 = vmatmul.mubr.msk.bf16.gmra.mrb[212].mxu1 %vm5994_vm4, %v14516_v52  ;;  %v5865_v21 = vmax.f32 %v5769_v62, %v5773_v53 }
 0x9d0   : > { %10455 = vmatprep.mubr.msk.bf16.mxu1 %vm5994_vm4, %v14525_v16 }
 0x9d1   : > { %v14565_v6 = vpack.c.bf16 %v5865_v21, %v5864_v23 }
 0x9d2   : > { %v5571_v34 = vpop.f32.mrb[108].mxu1 }
 0x9d3   : > { %v5774_v15 = vmax.f32 %v15827_v51, %v5571_v34  ;;  %v5573_v56 = vpop.f32.mrb[109].mxu1 }
 0x9d4   : > { %v5574_v40 = vpop.f32.mrb[110].mxu1  ;;  %v15834_v56 = vld [vmem:[#allocation36_spill] sm:$0xff] }
 0x9d5   : > { %v5866_v26 = vmax.f32 %v5770_v30, %v5774_v15  ;;  %v5775_v41 = vmax.f32 %v15828_v58, %v5574_v40  ;;  %v5576_v27 = vpop.f32.mrb[111].mxu1 }
 0x9d6   : > { %v15835_v27 = vld [vmem:[#allocation35_spill] sm:$0xff] }
 0x9d7   : > { %v5867_v47 = vmax.f32 %v5771_v20, %v5775_v41  ;;  %10456 = vmatmul.mubr.msk.bf16.gmra.mrb[216].mxu1 %vm5994_vm4, %v14533_v28 }
 0x9d8   : > { %10459 = vmatprep.mubr.msk.bf16.mxu1 %vm5994_vm4, %v14541_v4 }
 0x9d9   : > { %v14573_v8 = vpack.c.bf16 %v5867_v47, %v5866_v26 }
 0x9da   : > { %v5579_v44 = vpop.f32.mrb[112].mxu1 }
 0x9db   : > { %v5776_v2 = vmax.f32 %v15829_v22, %v5579_v44  ;;  %v5581_v62 = vpop.f32.mrb[113].mxu1 }
 0x9dc   : > { %v5582_v36 = vpop.f32.mrb[114].mxu1 }
 0x9dd   : > { %v5868_v32 = vmax.f32 %v5772_v9, %v5776_v2  ;;  %v5777_v61 = vmax.f32 %v15830_v48, %v5582_v36  ;;  %v5584_v30 = vpop.f32.mrb[115].mxu1  ;;  %v15836_v36 = vld [vmem:[#allocation38_spill] sm:$0xff] }
 0x9df   : > { %v5869_v17 = vmax.f32 %v5773_v53, %v5777_v61  ;;  %10460 = vmatmul.mubr.msk.bf16.gmra.mrb[220].mxu1 %vm5994_vm4, %v14549_v31 }
 0x9e0   : > { %10463 = vmatprep.mubr.msk.bf16.mxu1 %vm5994_vm4, %v14557_v57 }
 0x9e1   : > { %v14581_v35 = vpack.c.bf16 %v5869_v17, %v5868_v32  ;;  %v15837_v17 = vld [vmem:[#allocation37_spill] sm:$0xff] }
 0x9e2   : > { %v5587_v45 = vpop.f32.mrb[116].mxu1 }
 0x9e3   : > { %v5778_v20 = vmax.f32 %v15831_v50, %v5587_v45  ;;  %v5589_v29 = vpop.f32.mrb[117].mxu1 }
 0x9e4   : > { %v5590_v11 = vpop.f32.mrb[118].mxu1 }
 0x9e5   : > { %v5870_v63 = vmax.f32 %v5774_v15, %v5778_v20  ;;  %v5779_v25 = vmax.f32 %v15832_v1, %v5590_v11  ;;  %v5592_v9 = vpop.f32.mrb[119].mxu1 }
 0x9e7   : > { %v5871_v33 = vmax.f32 %v5775_v41, %v5779_v25  ;;  %10464 = vmatmul.mubr.msk.bf16.gmra.mrb[224].mxu1 %vm5994_vm4, %v14565_v6 }
 0x9e8   : > { %10467 = vmatprep.mubr.msk.bf16.mxu1 %vm5994_vm4, %v14573_v8 }
 0x9e9   : > { %v14589_v54 = vpack.c.bf16 %v5871_v33, %v5870_v63  ;;  %v15838_v63 = vld [vmem:[#allocation40_spill] sm:$0xff] }
 0x9ea   : > { %v5595_v23 = vpop.f32.mrb[120].mxu1 }
 0x9eb   : > { %v5780_v53 = vmax.f32 %v15833_v24, %v5595_v23  ;;  %v5597_v21 = vpop.f32.mrb[121].mxu1  ;;  %v15839_v23 = vld [vmem:[#allocation39_spill] sm:$0xff] }
 0x9ec   : > { %v5598_v34 = vpop.f32.mrb[122].mxu1 }
 0x9ed   : > { %v5872_v51 = vmax.f32 %v5776_v2, %v5780_v53  ;;  %v5781_v15 = vmax.f32 %v15834_v56, %v5598_v34  ;;  %v5600_v40 = vpop.f32.mrb[123].mxu1  ;;  %v15840_v56 = vld [vmem:[#allocation42_spill] sm:$0xff] }
 0x9ef   : > { %v5873_v26 = vmax.f32 %v5777_v61, %v5781_v15  ;;  %10468 = vmatmul.mubr.msk.bf16.gmra.mrb[228].mxu1 %vm5994_vm4, %v14581_v35 }
 0x9f0   : > { %10471 = vmatprep.mubr.msk.bf16.mxu1 %vm5994_vm4, %v14589_v54 }
 0x9f1   : > { %v14597_v58 = vpack.c.bf16 %v5873_v26, %v5872_v51 }
 0x9f2   : > { %v5603_v41 = vpop.f32.mrb[124].mxu1 }
 0x9f3   : > { %v5782_v47 = vmax.f32 %v15835_v27, %v5603_v41  ;;  %v5605_v44 = vpop.f32.mrb[125].mxu1 }
 0x9f4   : > { %v5606_v22 = vpop.f32.mrb[126].mxu1  ;;  %v15841_v44 = vld [vmem:[#allocation41_spill] sm:$0xff] }
 0x9f5   : > { %v5874_v62 = vmax.f32 %v5778_v20, %v5782_v47  ;;  %v5783_v2 = vmax.f32 %v15836_v36, %v5606_v22  ;;  %v5608_v32 = vpop.f32.mrb[127].mxu1 }
 0x9f7   : > { %v5875_v48 = vmax.f32 %v5779_v25, %v5783_v2  ;;  %10472 = vmatmul.mubr.msk.bf16.gmra.mrb[232].mxu1 %vm5994_vm4, %v14597_v58 }
 0x9f9   : > { %v14603_v61 = vpack.c.bf16 %v5875_v48, %v5874_v62 }
 0x9fa   : > { %v5611_v30 = vpop.f32.mrb[128].mxu1 }
 0x9fb   : > { %v5784_v45 = vmax.f32 %v15837_v17, %v5611_v30  ;;  %v5613_v50 = vpop.f32.mrb[129].mxu1  ;;  %10475 = vmatprep.mubr.msk.bf16.mxu1 %vm5994_vm4, %v14603_v61  ;;  %v12132_v30 = vld [vmem:[%s15447_s4 + $0xa0] sm:$0xff]  }
 0x9fc   : > { %v5614_v29 = vpop.f32.mrb[130].mxu1 }
 0x9fd   : > { %v5876_v11 = vmax.f32 %v5780_v53, %v5784_v45  ;;  %v5785_v20 = vmax.f32 %v15838_v63, %v5614_v29  ;;  %v5616_v1 = vpop.f32.mrb[131].mxu1  ;;  %v12133_v29 = vld [vmem:[%s15447_s4 + $0xa8] sm:$0xff]  }
 0x9ff   : > { %v5877_v9 = vmax.f32 %v5781_v15, %v5785_v20  ;;  %v12131_v15 = vld [vmem:[%s15447_s4 + $0x98] sm:$0xff]  }
 0xa01   : > { %v14609_v33 = vpack.c.bf16 %v5877_v9, %v5876_v11  ;;  %v15844_v9 = vld [vmem:[#allocation46_spill] sm:$0xff] }
 0xa02   : > { %v5619_v25 = vpop.f32.mrb[132].mxu1 }
 0xa03   : > { %v5786_v24 = vmax.f32 %v15839_v23, %v5619_v25  ;;  %v5621_v21 = vpop.f32.mrb[133].mxu1  ;;  %10476 = vmatmul.mubr.msk.bf16.gmra.mrb[236].mxu1 %vm5994_vm4, %v14609_v33 }
 0xa04   : > { %v5622_v34 = vpop.f32.mrb[134].mxu1  ;;  %10489 = vmatprep.mubr.msk.bf16.mxu1 %vm5994_vm4, %v14430_v60  ;;  %v12134_v21 = vld [vmem:[%s15447_s4 + $0xb0] ss:$0 sps:$4 sm:$0xff]  }
 0xa05   : > { %v5878_v51 = vmax.f32 %v5782_v47, %v5786_v24  ;;  %v5787_v53 = vmax.f32 %v15840_v56, %v5622_v34  ;;  %v5624_v40 = vpop.f32.mrb[135].mxu1  ;;  %v6759_v56 = vsel %vm6085_vm3, %v12134_v21, 0 }
 0xa07   : > { %v5879_v26 = vmax.f32 %v5783_v2, %v5787_v53  ;;  %v15842_v2 = vld [vmem:[#allocation44_spill] sm:$0xff] }
 0xa09   : > { %v14617_v41 = vpack.c.bf16 %v5879_v26, %v5878_v51  ;;  %v15845_v26 = vld [vmem:[#allocation45_spill] sm:$0xff] }
 0xa0a   : > { %v5627_v27 = vpop.f32.mrb[136].mxu1 }
 0xa0b   : > { %v5788_v22 = vmax.f32 %v15841_v44, %v5627_v27  ;;  %v5629_v62 = vpop.f32.mrb[137].mxu1  ;;  %10490 = vmatmul.mubr.msk.bf16.vlgmr.msra.gmra.mrb[180].mxu1 %vm5994_vm4, %v14437_v0 }
 0xa0c   : > { %v5630_v36 = vpop.f32.mrb[138].mxu1  ;;  %10493 = vmatprep.mubr.msk.bf16.mxu1 %vm5994_vm4, %v14444_v3  ;;  %10550 = vmatpush3.bf16.msra.mxu1 %v14510_v42  ;;  %v15843_v42 = vld [vmem:[#allocation43_spill] sm:$0xff]  ;;  %v15846_v62 = vld [vmem:[#allocation48_spill] sm:$0xff] }
 0xa0d   : > { %v5880_v47 = vmax.f32 %v5784_v45, %v5788_v22  ;;  %v5789_v32 = vmax.f32 %v15842_v2, %v5630_v36  ;;  %v5632_v48 = vpop.f32.mrb[139].mxu1  ;;  %10551 = vmatprep.subr.bf16.mxu1 %v12131_v15 }
 0xa0f   : > { %v5881_v17 = vmax.f32 %v5785_v20, %v5789_v32 }
 0xa10   : > { %10552 = vmatpush3.bf16.msra.mxu1 %v12131_v15 }
 0xa11   : > { %v14632_v50 = vpack.c.bf16 %v5881_v17, %v5880_v47  ;;  %10553 = vmatprep.subr.bf16.mxu1 %v12132_v30  ;;  %v15847_v17 = vld [vmem:[#allocation47_spill] sm:$0xff] }
 0xa12   : > { %v5635_v11 = vpop.f32.mrb[140].mxu1 }
 0xa13   : > { %v5790_v45 = vmax.f32 %v15843_v42, %v5635_v11  ;;  %v5637_v63 = vpop.f32.mrb[141].mxu1  ;;  %10494 = vmatmul.mubr.msk.bf16.gmra.mrb[184].mxu1 %vm5994_vm4, %v14451_v37 }
 0xa14   : > { %v5638_v1 = vpop.f32.mrb[142].mxu1  ;;  %10497 = vmatprep.mubr.msk.bf16.mxu1 %vm5994_vm4, %v14458_v13  ;;  %10554 = vmatpush3.bf16.msra.mxu1 %v12132_v30  ;;  %v15848_v63 = vld [vmem:[#allocation50_spill] sm:$0xff] }
 0xa15   : > { %v5882_v20 = vmax.f32 %v5786_v24, %v5790_v45  ;;  %v5791_v25 = vmax.f32 %v15844_v9, %v5638_v1  ;;  %v5640_v23 = vpop.f32.mrb[143].mxu1  ;;  %10555 = vmatprep.subr.bf16.mxu1 %v12133_v29  ;;  %v14653_v24 = vld [vmem:[%s15447_s4] sm:$0xff]  }
 0xa17   : > { %v5883_v34 = vmax.f32 %v5787_v53, %v5791_v25 }
 0xa18   : > { %10556 = vmatpush3.bf16.msra.mxu1 %v12133_v29 }
 0xa19   : > { %v14646_v51 = vpack.c.bf16 %v5883_v34, %v5882_v20  ;;  %12001 = vmatprep.subr.msk.bf16.mxu1 %vm6085_vm3, %v12134_v21  ;;  %v15849_v21 = vld [vmem:[#allocation49_spill] sm:$0xff] }
 0xa1a   : > { %v5643_v40 = vpop.f32.mrb[144].mxu1 }
 0xa1b   : > { %v5792_v15 = vmax.f32 %v15845_v26, %v5643_v40  ;;  %v5645_v27 = vpop.f32.mrb[145].mxu1  ;;  %10498 = vmatmul.mubr.msk.bf16.gmra.mrb[188].mxu1 %vm5994_vm4, %v14465_v49 }
 0xa1c   : > { %v5646_v53 = vpop.f32.mrb[146].mxu1  ;;  %10501 = vmatprep.mubr.msk.bf16.mxu1 %vm5994_vm4, %v14472_v7  ;;  %10558 = vmatpush3.bf16.msra.mxu1 %v6759_v56  ;;  %v15850_v27 = vld [vmem:[#allocation52_spill] sm:$0xff] }
 0xa1d   : > { %v5884_v44 = vmax.f32 %v5788_v22, %v5792_v15  ;;  %v5793_v36 = vmax.f32 %v15846_v62, %v5646_v53  ;;  %v5648_v47 = vpop.f32.mrb[147].mxu1  ;;  %10619 = vmatprep.subr.bf16.mxu1 %v14653_v24 }
 0xa1e   : > { %v15851_v47 = vld [vmem:[#allocation51_spill] sm:$0xff] }
 0xa1f   : > { %v5885_v2 = vmax.f32 %v5789_v32, %v5793_v36 }
 0xa21   : > { %v14662_v48 = vpack.c.bf16 %v5885_v2, %v5884_v44 }
 0xa22   : > { %v5651_v30 = vpop.f32.mrb[148].mxu1 }
 0xa23   : > { %v5794_v29 = vmax.f32 %v15847_v17, %v5651_v30  ;;  %v5653_v11 = vpop.f32.mrb[149].mxu1  ;;  %10502 = vmatmul.mubr.msk.bf16.gmra.mrb[192].mxu1 %vm5994_vm4, %v14484_v18 }
 0xa24   : > { %v5654_v42 = vpop.f32.mrb[150].mxu1  ;;  %10505 = vmatprep.mubr.msk.bf16.mxu1 %vm5994_vm4, %v14498_v19 }
 0xa25   : > { %v5886_v22 = vmax.f32 %v5790_v45, %v5794_v29  ;;  %v5795_v1 = vmax.f32 %v15848_v63, %v5654_v42  ;;  %v5656_v20 = vpop.f32.mrb[151].mxu1  ;;  %v15852_v42 = vld [vmem:[#allocation54_spill] sm:$0xff] }
 0xa27   : > { %v5887_v9 = vmax.f32 %v5791_v25, %v5795_v1 }
 0xa29   : > { %v14670_v23 = vpack.c.bf16 %v5887_v9, %v5886_v22  ;;  %v15853_v9 = vld [vmem:[#allocation53_spill] sm:$0xff] }
 0xa2a   : > { %v5659_v32 = vpop.f32.mrb[152].mxu1 }
 0xa2b   : > { %v5796_v34 = vmax.f32 %v15849_v21, %v5659_v32  ;;  %v5661_v56 = vpop.f32.mrb[153].mxu1  ;;  %10506 = vmatmul.mubr.msk.bf16.gmra.mrb[196].mxu1 %vm5994_vm4, %v14516_v52 }
 0xa2c   : > { %v5662_v40 = vpop.f32.mrb[154].mxu1  ;;  %10509 = vmatprep.mubr.msk.bf16.mxu1 %vm5994_vm4, %v14525_v16 }
 0xa2d   : > { %v5888_v26 = vmax.f32 %v5792_v15, %v5796_v34  ;;  %v5797_v45 = vmax.f32 %v15850_v27, %v5662_v40  ;;  %v5664_v53 = vpop.f32.mrb[155].mxu1 }
 0xa2f   : > { %v5889_v44 = vmax.f32 %v5793_v36, %v5797_v45 }
 0xa31   : > { %v14678_v62 = vpack.c.bf16 %v5889_v44, %v5888_v26  ;;  %v15854_v26 = vld [vmem:[#allocation56_spill] sm:$0xff] }
 0xa32   : > { %v5667_v25 = vpop.f32.mrb[156].mxu1 }
 0xa33   : > { %v5798_v2 = vmax.f32 %v15851_v47, %v5667_v25  ;;  %v5669_v30 = vpop.f32.mrb[157].mxu1  ;;  %10510 = vmatmul.mubr.msk.bf16.gmra.mrb[200].mxu1 %vm5994_vm4, %v14533_v28  ;;  %v15855_v25 = vld [vmem:[#allocation55_spill] sm:$0xff] }
 0xa34   : > { %v5670_v17 = vpop.f32.mrb[158].mxu1  ;;  %10513 = vmatprep.mubr.msk.bf16.mxu1 %vm5994_vm4, %v14541_v4 }
 0xa35   : > { %v5890_v11 = vmax.f32 %v5794_v29, %v5798_v2  ;;  %v5799_v15 = vmax.f32 %v15852_v42, %v5670_v17  ;;  %v5672_v22 = vpop.f32.mrb[159].mxu1  ;;  %v15856_v42 = vld [vmem:[#allocation58_spill] sm:$0xff] }
 0xa37   : > { %v5891_v63 = vmax.f32 %v5795_v1, %v5799_v15 }
 0xa39   : > { %v14686_v20 = vpack.c.bf16 %v5891_v63, %v5890_v11 }
 0xa3a   : > { %v5675_v36 = vpop.f32.mrb[160].mxu1 }
 0xa3b   : > { %v5800_v32 = vmax.f32 %v15853_v9, %v5675_v36  ;;  %v5677_v21 = vpop.f32.mrb[161].mxu1  ;;  %10514 = vmatmul.mubr.msk.bf16.gmra.mrb[204].mxu1 %vm5994_vm4, %v14549_v31  ;;  %v15857_v9 = vld [vmem:[#allocation57_spill] sm:$0xff] }
 0xa3c   : > { %v5678_v56 = vpop.f32.mrb[162].mxu1  ;;  %10517 = vmatprep.mubr.msk.bf16.mxu1 %vm5994_vm4, %v14557_v57 }
 0xa3d   : > { %v5892_v40 = vmax.f32 %v5796_v34, %v5800_v32  ;;  %v5801_v29 = vmax.f32 %v15854_v26, %v5678_v56  ;;  %v5680_v27 = vpop.f32.mrb[163].mxu1 }
 0xa3e   : > { %v15858_v27 = vld [vmem:[#allocation60_spill] sm:$0xff] }
 0xa3f   : > { %v5893_v53 = vmax.f32 %v5797_v45, %v5801_v29 }
 0xa41   : > { %v14694_v44 = vpack.c.bf16 %v5893_v53, %v5892_v40 }
 0xa42   : > { %v5683_v1 = vpop.f32.mrb[164].mxu1 }
 0xa43   : > { %v5802_v47 = vmax.f32 %v15855_v25, %v5683_v1  ;;  %v5685_v30 = vpop.f32.mrb[165].mxu1  ;;  %10518 = vmatmul.mubr.msk.bf16.gmra.mrb[208].mxu1 %vm5994_vm4, %v14565_v6 }
 0xa44   : > { %v5686_v17 = vpop.f32.mrb[166].mxu1  ;;  %10521 = vmatprep.mubr.msk.bf16.mxu1 %vm5994_vm4, %v14573_v8  ;;  %v15859_v30 = vld [vmem:[#allocation59_spill] sm:$0xff] }
 0xa45   : > { %v5894_v11 = vmax.f32 %v5798_v2, %v5802_v47  ;;  %v5803_v34 = vmax.f32 %v15856_v42, %v5686_v17  ;;  %v5688_v22 = vpop.f32.mrb[167].mxu1 }
 0xa47   : > { %v5895_v63 = vmax.f32 %v5799_v15, %v5803_v34 }
 0xa49   : > { %v14702_v36 = vpack.c.bf16 %v5895_v63, %v5894_v11 }
 0xa4a   : > { %v5691_v45 = vpop.f32.mrb[168].mxu1 }
 0xa4b   : > { %v5804_v21 = vmax.f32 %v15857_v9, %v5691_v45  ;;  %v5693_v56 = vpop.f32.mrb[169].mxu1  ;;  %10522 = vmatmul.mubr.msk.bf16.gmra.mrb[212].mxu1 %vm5994_vm4, %v14581_v35 }
 0xa4c   : > { %v5694_v40 = vpop.f32.mrb[170].mxu1  ;;  %10525 = vmatprep.mubr.msk.bf16.mxu1 %vm5994_vm4, %v14589_v54 }
 0xa4d   : > { %v5896_v26 = vmax.f32 %v5800_v32, %v5804_v21  ;;  %v5805_v2 = vmax.f32 %v15858_v27, %v5694_v40  ;;  %v5696_v53 = vpop.f32.mrb[171].mxu1  ;;  %v15860_v32 = vld [vmem:[#allocation62_spill] sm:$0xff]  ;;  %v15861_v40 = vld [vmem:[#allocation61_spill] sm:$0xff] }
 0xa4f   : > { %v5897_v1 = vmax.f32 %v5801_v29, %v5805_v2 }
 0xa51   : > { %v14710_v25 = vpack.c.bf16 %v5897_v1, %v5896_v26  ;;  %v15862_v1 = vld [vmem:[#allocation64_spill] sm:$0xff] }
 0xa52   : > { %v5699_v15 = vpop.f32.mrb[172].mxu1 }
 0xa53   : > { %v5806_v17 = vmax.f32 %v15859_v30, %v5699_v15  ;;  %v5701_v11 = vpop.f32.mrb[173].mxu1  ;;  %10526 = vmatmul.mubr.msk.bf16.gmra.mrb[216].mxu1 %vm5994_vm4, %v14597_v58 }
 0xa54   : > { %v5702_v42 = vpop.f32.mrb[174].mxu1  ;;  %10529 = vmatprep.mubr.msk.bf16.mxu1 %vm5994_vm4, %v14603_v61  ;;  %v12138_v11 = vld [vmem:[%s15447_s4 + $0x18] sm:$0xff]  }
 0xa55   : > { %v14717_v22 = vmax.f32 %v5802_v47, %v5806_v17  ;;  %v5807_v63 = vmax.f32 %v15860_v32, %v5702_v42  ;;  %v5704_v45 = vpop.f32.mrb[175].mxu1  ;;  %v12140_v32 = vld [vmem:[%s15447_s4 + $0x48] sm:$0xff]  }
 0xa57   : > { %v14720_v9 = vmax.f32 %v5803_v34, %v5807_v63 }
 0xa59   : > { %v5946_v29 = vpack.c.bf16 %v14720_v9, %v14717_v22  ;;  %v12143_v22 = vld [vmem:[%s15447_s4 + $0x60] sm:$0xff]  }
 0xa5a   : > { %v5707_v56 = vpop.f32.mrb[176].mxu1 }
 0xa5b   : > { %v5808_v26 = vmax.f32 %v15861_v40, %v5707_v56  ;;  %v5709_v27 = vpop.f32.mrb[177].mxu1  ;;  %10530 = vmatmul.mubr.msk.bf16.gmra.mrb[220].mxu1 %vm5994_vm4, %v14609_v33 }
 0xa5c   : > { %v5710_v53 = vpop.f32.mrb[178].mxu1  ;;  %10533 = vmatprep.mubr.msk.bf16.mxu1 %vm5994_vm4, %v14617_v41 }
 0xa5d   : > { %v5900_v47 = vmax.f32 %v5804_v21, %v5808_v26  ;;  %v5809_v15 = vmax.f32 %v15862_v1, %v5710_v53  ;;  %v5712_v30 = vpop.f32.mrb[179].mxu1  ;;  %v12136_v21 = vld [vmem:[%s15447_s4 + $0x8] sm:$0xff]  }
 0xa5f   : > { %v5901_v34 = vmax.f32 %v5805_v2, %v5809_v15  ;;  %v12137_v2 = vld [vmem:[%s15447_s4 + $0x10] sm:$0xff]  }
 0xa61   : > { %v5947_v17 = vpack.c.bf16 %v5901_v34, %v5900_v47  ;;  %v12154_v47 = vld [vmem:[%s15449_s6 + $0x48] sm:$0xff]  }
 0xa63   : > { %10534 = vmatmul.mubr.msk.bf16.gmra.mrb[224].mxu1 %vm5994_vm4, %v14632_v50 }
 0xa64   : > { %10537 = vmatprep.mubr.msk.bf16.mxu1 %vm5994_vm4, %v14646_v51 }
 0xa6b   : > { %10538 = vmatmul.mubr.msk.bf16.gmra.mrb[228].mxu1 %vm5994_vm4, %v14662_v48 }
 0xa6c   : > { %10541 = vmatprep.mubr.msk.bf16.mxu1 %vm5994_vm4, %v14670_v23 }
 0xa73   : > { %10542 = vmatmul.mubr.msk.bf16.gmra.mrb[232].mxu1 %vm5994_vm4, %v14678_v62 }
 0xa74   : > { %10545 = vmatprep.mubr.msk.bf16.mxu1 %vm5994_vm4, %v14686_v20 }
 0xa7b   : > { %10546 = vmatmul.mubr.msk.bf16.gmra.mrb[236].mxu1 %vm5994_vm4, %v14694_v44 }
 0xa7c   : > { %10559 = vmatprep.mubr.msk.bf16.mxu1 %vm5994_vm4, %v14458_v13 }
 0xa83   : > { %10560 = vmatmul.mubr.msk.bf16.vlgmr.msra.gmra.mrb[180].mxu1 %vm5994_vm4, %v14465_v49 }
 0xa84   : > { %10563 = vmatprep.mubr.msk.bf16.mxu1 %vm5994_vm4, %v14472_v7  ;;  %10620 = vmatpush3.bf16.msra.mxu1 %v14653_v24  ;;  %v12139_v24 = vld [vmem:[%s15447_s4 + $0x20] ss:$0 sps:$4 sm:$0xff]  }
 0xa85   : > { %10621 = vmatprep.subr.bf16.mxu1 %v12136_v21  ;;  %v7074_v42 = vsel %vm6085_vm3, %v12139_v24, 0 }
 0xa88   : > { %10622 = vmatpush3.bf16.msra.mxu1 %v12136_v21 }
 0xa89   : > { %10623 = vmatprep.subr.bf16.mxu1 %v12137_v2 }
 0xa8b   : > { %10564 = vmatmul.mubr.msk.bf16.gmra.mrb[184].mxu1 %vm5994_vm4, %v14484_v18 }
 0xa8c   : > { %10567 = vmatprep.mubr.msk.bf16.mxu1 %vm5994_vm4, %v14498_v19  ;;  %10624 = vmatpush3.bf16.msra.mxu1 %v12137_v2 }
 0xa8d   : > { %10625 = vmatprep.subr.bf16.mxu1 %v12138_v11 }
 0xa90   : > { %10626 = vmatpush3.bf16.msra.mxu1 %v12138_v11  ;;  %v12155_v11 = vld [vmem:[%s15449_s6 + $0x50] sm:$0xff]  }
 0xa91   : > { %12002 = vmatprep.subr.msk.bf16.mxu1 %vm6085_vm3, %v12139_v24 }
 0xa93   : > { %10568 = vmatmul.mubr.msk.bf16.gmra.mrb[188].mxu1 %vm5994_vm4, %v14516_v52 }
 0xa94   : > { %10571 = vmatprep.mubr.msk.bf16.mxu1 %vm5994_vm4, %v14525_v16  ;;  %10628 = vmatpush3.bf16.msra.mxu1 %v7074_v42 }
 0xa95   : > { %10689 = vmatprep.subr.bf16.mxu1 %v12140_v32 }
 0xa9b   : > { %10572 = vmatmul.mubr.msk.bf16.gmra.mrb[192].mxu1 %vm5994_vm4, %v14533_v28 }
 0xa9c   : > { %10575 = vmatprep.mubr.msk.bf16.mxu1 %vm5994_vm4, %v14541_v4 }
 0xaa3   : > { %10576 = vmatmul.mubr.msk.bf16.gmra.mrb[196].mxu1 %vm5994_vm4, %v14549_v31 }
 0xaa4   : > { %10579 = vmatprep.mubr.msk.bf16.mxu1 %vm5994_vm4, %v14557_v57 }
 0xaab   : > { %10580 = vmatmul.mubr.msk.bf16.gmra.mrb[200].mxu1 %vm5994_vm4, %v14565_v6 }
 0xaac   : > { %10583 = vmatprep.mubr.msk.bf16.mxu1 %vm5994_vm4, %v14573_v8 }
 0xab3   : > { %10584 = vmatmul.mubr.msk.bf16.gmra.mrb[204].mxu1 %vm5994_vm4, %v14581_v35 }
 0xab4   : > { %10587 = vmatprep.mubr.msk.bf16.mxu1 %vm5994_vm4, %v14589_v54 }
 0xabb   : > { %10588 = vmatmul.mubr.msk.bf16.gmra.mrb[208].mxu1 %vm5994_vm4, %v14597_v58 }
 0xabc   : > { %10591 = vmatprep.mubr.msk.bf16.mxu1 %vm5994_vm4, %v14603_v61 }
 0xac3   : > { %10592 = vmatmul.mubr.msk.bf16.gmra.mrb[212].mxu1 %vm5994_vm4, %v14609_v33 }
 0xac4   : > { %10595 = vmatprep.mubr.msk.bf16.mxu1 %vm5994_vm4, %v14617_v41 }
 0xacb   : > { %10596 = vmatmul.mubr.msk.bf16.gmra.mrb[216].mxu1 %vm5994_vm4, %v14632_v50 }
 0xacc   : > { %10599 = vmatprep.mubr.msk.bf16.mxu1 %vm5994_vm4, %v14646_v51 }
 0xad3   : > { %10600 = vmatmul.mubr.msk.bf16.gmra.mrb[220].mxu1 %vm5994_vm4, %v14662_v48 }
 0xad4   : > { %10603 = vmatprep.mubr.msk.bf16.mxu1 %vm5994_vm4, %v14670_v23  ;;  %v15863_v23 = vld [vmem:[#allocation67_spill] sm:$0xff] }
 0xadb   : > { %10604 = vmatmul.mubr.msk.bf16.gmra.mrb[224].mxu1 %vm5994_vm4, %v14678_v62  ;;  %v15864_v62 = vld [vmem:[#allocation63_spill] sm:$0xff] }
 0xadc   : > { %10607 = vmatprep.mubr.msk.bf16.mxu1 %vm5994_vm4, %v14686_v20  ;;  %v15865_v63 = vpack.c.bf16 %v15863_v23, %v15864_v62  ;;  %v12141_v20 = vld [vmem:[%s15447_s4 + $0x50] sm:$0xff]  }
 0xae3   : > { %10608 = vmatmul.mubr.msk.bf16.gmra.mrb[228].mxu1 %vm5994_vm4, %v14694_v44  ;;  %v15866_v44 = vld [vmem:[#allocation68_spill] sm:$0xff] }
 0xae4   : > { %10611 = vmatprep.mubr.msk.bf16.mxu1 %vm5994_vm4, %v14702_v36  ;;  %v15867_v36 = vld [vmem:[#allocation65_spill] sm:$0xff] }
 0xae5   : > { %v15868_v45 = vpack.c.bf16 %v15866_v44, %v15867_v36  ;;  %v12156_v44 = vld [vmem:[%s15449_s6 + $0x58] sm:$0xff]  }
 0xaeb   : > { %10612 = vmatmul.mubr.msk.bf16.gmra.mrb[232].mxu1 %vm5994_vm4, %v14710_v25  ;;  %v12142_v25 = vld [vmem:[%s15447_s4 + $0x58] sm:$0xff]  }
 0xaec   : > { %10615 = vmatprep.mubr.msk.bf16.mxu1 %vm5994_vm4, %v5946_v29 }
 0xaf3   : > { %10616 = vmatmul.mubr.msk.bf16.gmra.mrb[236].mxu1 %vm5994_vm4, %v5947_v17 }
 0xaf4   : > { %10629 = vmatprep.mubr.msk.bf16.mxu1 %vm5994_vm4, %v15865_v63 }
 0xafb   : > { %10630 = vmatmul.mubr.msk.bf16.vlgmr.msra.gmra.mrb[180].mxu1 %vm5994_vm4, %v15868_v45 }
 0xafc   : > { %10633 = vmatprep.mubr.msk.bf16.mxu1 %vm5994_vm4, %v14354_v46  ;;  %10690 = vmatpush3.bf16.msra.mxu1 %v12140_v32  ;;  %v12144_v46 = vld [vmem:[%s15447_s4 + $0x68] ss:$0 sps:$4 sm:$0xff]  }
 0xafd   : > { %10691 = vmatprep.subr.bf16.mxu1 %v12141_v20  ;;  %v7377_v9 = vsel %vm6085_vm3, %v12144_v46, 0 }
 0xb00   : > { %10692 = vmatpush3.bf16.msra.mxu1 %v12141_v20 }
 0xb01   : > { %10693 = vmatprep.subr.bf16.mxu1 %v12142_v25 }
 0xb03   : > { %10634 = vmatmul.mubr.msk.bf16.gmra.mrb[184].mxu1 %vm5994_vm4, %v14361_v14  ;;  %v12145_v14 = vld [vmem:[%s15449_s6] sm:$0xff]  }
 0xb04   : > { %10637 = vmatprep.mubr.msk.bf16.mxu1 %vm5994_vm4, %v14374_v5  ;;  %10694 = vmatpush3.bf16.msra.mxu1 %v12142_v25  ;;  %v12146_v5 = vld [vmem:[%s15449_s6 + $0x8] sm:$0xff]  }
 0xb05   : > { %10695 = vmatprep.subr.bf16.mxu1 %v12143_v22 }
 0xb08   : > { %10696 = vmatpush3.bf16.msra.mxu1 %v12143_v22 }
 0xb09   : > { %12003 = vmatprep.subr.msk.bf16.mxu1 %vm6085_vm3, %v12144_v46 }
 0xb0b   : > { %10638 = vmatmul.mubr.msk.bf16.gmra.mrb[188].mxu1 %vm5994_vm4, %v14381_v55  ;;  %v12147_v55 = vld [vmem:[%s15449_s6 + $0x10] sm:$0xff]  }
 0xb0c   : > { %10641 = vmatprep.mubr.msk.bf16.mxu1 %vm5994_vm4, %v14388_v59  ;;  %10698 = vmatpush3.bf16.msra.mxu1 %v7377_v9  ;;  %v12148_v59 = vld [vmem:[%s15449_s6 + $0x18] sm:$0xff]  }
 0xb0d   : > { %10759 = vmatprep.subr.bf16.mxu1 %v12145_v14 }
 0xb13   : > { %10642 = vmatmul.mubr.msk.bf16.gmra.mrb[192].mxu1 %vm5994_vm4, %v14395_v38  ;;  %v12149_v38 = vld [vmem:[%s15449_s6 + $0x20] sm:$0xff]  }
 0xb14   : > { %10645 = vmatprep.mubr.msk.bf16.mxu1 %vm5994_vm4, %v14402_v10 }
 0xb1b   : > { %10646 = vmatmul.mubr.msk.bf16.gmra.mrb[196].mxu1 %vm5994_vm4, %v14409_v39 }
 0xb1c   : > { %10649 = vmatprep.mubr.msk.bf16.mxu1 %vm5994_vm4, %v14416_v12 }
 0xb23   : > { %10650 = vmatmul.mubr.msk.bf16.gmra.mrb[200].mxu1 %vm5994_vm4, %v14423_v43 }
 0xb24   : > { %10653 = vmatprep.mubr.msk.bf16.mxu1 %vm5994_vm4, %v14430_v60 }
 0xb2b   : > { %10654 = vmatmul.mubr.msk.bf16.gmra.mrb[204].mxu1 %vm5994_vm4, %v14437_v0 }
 0xb2c   : > { %10657 = vmatprep.mubr.msk.bf16.mxu1 %vm5994_vm4, %v14444_v3 }
 0xb33   : > { %10658 = vmatmul.mubr.msk.bf16.gmra.mrb[208].mxu1 %vm5994_vm4, %v14451_v37 }
 0xb34   : > { %10661 = vmatprep.mubr.msk.bf16.mxu1 %vm5994_vm4, %v14458_v13 }
 0xb3b   : > { %10662 = vmatmul.mubr.msk.bf16.gmra.mrb[212].mxu1 %vm5994_vm4, %v14465_v49 }
 0xb3c   : > { %10665 = vmatprep.mubr.msk.bf16.mxu1 %vm5994_vm4, %v14472_v7 }
 0xb43   : > { %10666 = vmatmul.mubr.msk.bf16.gmra.mrb[216].mxu1 %vm5994_vm4, %v14484_v18 }
 0xb44   : > { %10669 = vmatprep.mubr.msk.bf16.mxu1 %vm5994_vm4, %v14498_v19 }
 0xb4b   : > { %10670 = vmatmul.mubr.msk.bf16.gmra.mrb[220].mxu1 %vm5994_vm4, %v14516_v52 }
 0xb4c   : > { %10673 = vmatprep.mubr.msk.bf16.mxu1 %vm5994_vm4, %v14525_v16 }
 0xb53   : > { %10674 = vmatmul.mubr.msk.bf16.gmra.mrb[224].mxu1 %vm5994_vm4, %v14533_v28 }
 0xb54   : > { %10677 = vmatprep.mubr.msk.bf16.mxu1 %vm5994_vm4, %v14541_v4 }
 0xb5b   : > { %10678 = vmatmul.mubr.msk.bf16.gmra.mrb[228].mxu1 %vm5994_vm4, %v14549_v31 }
 0xb5c   : > { %10681 = vmatprep.mubr.msk.bf16.mxu1 %vm5994_vm4, %v14557_v57 }
 0xb63   : > { %10682 = vmatmul.mubr.msk.bf16.gmra.mrb[232].mxu1 %vm5994_vm4, %v14565_v6 }
 0xb64   : > { %10685 = vmatprep.mubr.msk.bf16.mxu1 %vm5994_vm4, %v14573_v8 }
 0xb6b   : > { %10686 = vmatmul.mubr.msk.bf16.gmra.mrb[236].mxu1 %vm5994_vm4, %v14581_v35 }
 0xb6c   : > { %10699 = vmatprep.mubr.msk.bf16.mxu1 %vm5994_vm4, %v14402_v10  ;;  %v12150_v10 = vld [vmem:[%s15449_s6 + $0x28] sm:$0xff]  }
 0xb73   : > { %10700 = vmatmul.mubr.msk.bf16.vlgmr.msra.gmra.mrb[180].mxu1 %vm5994_vm4, %v14409_v39  ;;  %v12151_v39 = vld [vmem:[%s15449_s6 + $0x30] sm:$0xff]  }
 0xb74   : > { %10703 = vmatprep.mubr.msk.bf16.mxu1 %vm5994_vm4, %v14416_v12  ;;  %10760 = vmatpush3.bf16.msra.mxu1 %v12145_v14  ;;  %v14985_v12 = vld [vmem:[%s15448_s5] ss:$0 sm:$0xff] }
 0xb75   : > { %10761 = vmatprep.subr.bf16.mxu1 %v12146_v5 }
 0xb78   : > { %10762 = vmatpush3.bf16.msra.mxu1 %v12146_v5 }
 0xb79   : > { %10763 = vmatprep.subr.bf16.mxu1 %v12147_v55 }
 0xb7b   : > { %10704 = vmatmul.mubr.msk.bf16.gmra.mrb[184].mxu1 %vm5994_vm4, %v14423_v43 }
 0xb7c   : > { %10707 = vmatprep.mubr.msk.bf16.mxu1 %vm5994_vm4, %v14430_v60  ;;  %10764 = vmatpush3.bf16.msra.mxu1 %v12147_v55 }
 0xb7d   : > { %10765 = vmatprep.subr.bf16.mxu1 %v12148_v59 }
 0xb80   : > { %10766 = vmatpush3.bf16.msra.mxu1 %v12148_v59 }
 0xb81   : > { %10767 = vmatprep.subr.bf16.mxu1 %v12149_v38 }
 0xb83   : > { %10708 = vmatmul.mubr.msk.bf16.gmra.mrb[188].mxu1 %vm5994_vm4, %v14437_v0 }
 0xb84   : > { %10711 = vmatprep.mubr.msk.bf16.mxu1 %vm5994_vm4, %v14444_v3  ;;  %10768 = vmatpush3.bf16.msra.mxu1 %v12149_v38 }
 0xb85   : > { %10769 = vmatprep.subr.bf16.mxu1 %v12150_v10 }
 0xb88   : > { %10770 = vmatpush3.bf16.msra.mxu1 %v12150_v10 }
 0xb89   : > { %10831 = vmatprep.subr.bf16.mxu1 %v12151_v39 }
 0xb8b   : > { %10712 = vmatmul.mubr.msk.bf16.gmra.mrb[192].mxu1 %vm5994_vm4, %v14451_v37 }
 0xb8c   : > { %10715 = vmatprep.mubr.msk.bf16.mxu1 %vm5994_vm4, %v14458_v13 }
 0xb93   : > { %10716 = vmatmul.mubr.msk.bf16.gmra.mrb[196].mxu1 %vm5994_vm4, %v14465_v49 }
 0xb94   : > { %10719 = vmatprep.mubr.msk.bf16.mxu1 %vm5994_vm4, %v14472_v7 }
 0xb9b   : > { %10720 = vmatmul.mubr.msk.bf16.gmra.mrb[200].mxu1 %vm5994_vm4, %v14484_v18 }
 0xb9c   : > { %10723 = vmatprep.mubr.msk.bf16.mxu1 %vm5994_vm4, %v14498_v19 }
 0xba3   : > { %10724 = vmatmul.mubr.msk.bf16.gmra.mrb[204].mxu1 %vm5994_vm4, %v14516_v52 }
 0xba4   : > { %10727 = vmatprep.mubr.msk.bf16.mxu1 %vm5994_vm4, %v14525_v16 }
 0xbab   : > { %10728 = vmatmul.mubr.msk.bf16.gmra.mrb[208].mxu1 %vm5994_vm4, %v14533_v28 }
 0xbac   : > { %10731 = vmatprep.mubr.msk.bf16.mxu1 %vm5994_vm4, %v14541_v4 }
 0xbb3   : > { %10732 = vmatmul.mubr.msk.bf16.gmra.mrb[212].mxu1 %vm5994_vm4, %v14549_v31 }
 0xbb4   : > { %10735 = vmatprep.mubr.msk.bf16.mxu1 %vm5994_vm4, %v14557_v57 }
 0xbbb   : > { %10736 = vmatmul.mubr.msk.bf16.gmra.mrb[216].mxu1 %vm5994_vm4, %v14565_v6 }
 0xbbc   : > { %10739 = vmatprep.mubr.msk.bf16.mxu1 %vm5994_vm4, %v14573_v8  ;;  %v12152_v8 = vld [vmem:[%s15449_s6 + $0x38] sm:$0xff]  }
 0xbc3   : > { %10740 = vmatmul.mubr.msk.bf16.gmra.mrb[220].mxu1 %vm5994_vm4, %v14581_v35 }
 0xbc4   : > { %10743 = vmatprep.mubr.msk.bf16.mxu1 %vm5994_vm4, %v14589_v54 }
 0xbcb   : > { %10744 = vmatmul.mubr.msk.bf16.gmra.mrb[224].mxu1 %vm5994_vm4, %v14597_v58 }
 0xbcc   : > { %10747 = vmatprep.mubr.msk.bf16.mxu1 %vm5994_vm4, %v14603_v61 }
 0xbd3   : > { %10748 = vmatmul.mubr.msk.bf16.gmra.mrb[228].mxu1 %vm5994_vm4, %v14609_v33 }
 0xbd4   : > { %10751 = vmatprep.mubr.msk.bf16.mxu1 %vm5994_vm4, %v14617_v41 }
 0xbdb   : > { %10752 = vmatmul.mubr.msk.bf16.gmra.mrb[232].mxu1 %vm5994_vm4, %v14632_v50 }
 0xbdc   : > { %10755 = vmatprep.mubr.msk.bf16.mxu1 %vm5994_vm4, %v14646_v51  ;;  %v12153_v51 = vld [vmem:[%s15449_s6 + $0x40] sm:$0xff]  }
 0xbe3   : > { %10756 = vmatmul.mubr.msk.bf16.gmra.mrb[236].mxu1 %vm5994_vm4, %v14662_v48 }
 0xc46   : > { %v10701_v43 = vpop.f32.mrb[180].mxu1 }
 0xc47   : > { %v7781_v60 = vadd.f32 %v10701_v43, %v14985_v12  ;;  %v7413_v0 = vpop.f32.mrb[181].mxu1 }
 0xc48   : > { %v7779_v3 = vadd.f32 %v14985_v12, %v7413_v0  ;;  %v10702_v37 = vpop.f32.mrb[182].mxu1 }
 0xc49   : > { %v7782_v13 = vadd.f32 %v10702_v37, %v14985_v12  ;;  %v7416_v49 = vpop.f32.mrb[183].mxu1  ;;  %v7841_v18 = vmax.f32 %v7781_v60, 0.0 }
 0xc4a   : > { %v7780_v7 = vadd.f32 %v14985_v12, %v7416_v49  ;;  %v7839_v52 = vmax.f32 %v7779_v3, 0.0 }
 0xc4b   : > { %v7842_v19 = vmax.f32 %v7782_v13, 0.0 }
 0xc4c   : > { %v7840_v16 = vmax.f32 %v7780_v7, 0.0 }
 0xc4d   : > { %v14991_v28 = vpack.c.bf16 %v7842_v19, %v7841_v18 }
 0xc4e   : > { %v14993_v4 = vpack.c.bf16 %v7840_v16, %v7839_v52  ;;  %v10705_v31 = vpop.f32.mrb[184].mxu1 }
 0xc4f   : > { %v7785_v57 = vadd.f32 %v10705_v31, %v14985_v12  ;;  %v7429_v6 = vpop.f32.mrb[185].mxu1 }
 0xc50   : > { %v7783_v35 = vadd.f32 %v14985_v12, %v7429_v6  ;;  %v10706_v54 = vpop.f32.mrb[186].mxu1  ;;  %10771 = vmatprep.mubr.msk.bf16.mxu1 %vm7977_vm5, %v14993_v4 }
 0xc51   : > { %v7786_v58 = vadd.f32 %v10706_v54, %v14985_v12  ;;  %v7432_v61 = vpop.f32.mrb[187].mxu1  ;;  %10772 = vmatmul.mubr.msk.bf16.vlgmr.msra.gmra.mrb[240].mxu1 %vm7977_vm5, %v14991_v28  ;;  %v7845_v41 = vmax.f32 %v7785_v57, 0.0 }
 0xc52   : > { %v7784_v33 = vadd.f32 %v14985_v12, %v7432_v61  ;;  %10832 = vmatpush3.bf16.msra.mxu1 %v12151_v39  ;;  %v7843_v48 = vmax.f32 %v7783_v35, 0.0 }
 0xc53   : > { %v7846_v50 = vmax.f32 %v7786_v58, 0.0  ;;  %10833 = vmatprep.subr.bf16.mxu1 %v12152_v8 }
 0xc54   : > { %v7844_v29 = vmax.f32 %v7784_v33, 0.0 }
 0xc55   : > { %v15009_v56 = vpack.c.bf16 %v7846_v50, %v7845_v41 }
 0xc56   : > { %v15011_v40 = vpack.c.bf16 %v7844_v29, %v7843_v48  ;;  %v10709_v26 = vpop.f32.mrb[188].mxu1  ;;  %10834 = vmatpush3.bf16.msra.mxu1 %v12152_v8 }
 0xc57   : > { %v7789_v27 = vadd.f32 %v10709_v26, %v14985_v12  ;;  %v7445_v53 = vpop.f32.mrb[189].mxu1  ;;  %10835 = vmatprep.subr.bf16.mxu1 %v12153_v51 }
 0xc58   : > { %v7787_v1 = vadd.f32 %v14985_v12, %v7445_v53  ;;  %v10710_v15 = vpop.f32.mrb[190].mxu1  ;;  %10775 = vmatprep.mubr.msk.bf16.mxu1 %vm7977_vm5, %v15011_v40 }
 0xc59   : > { %v7790_v30 = vadd.f32 %v10710_v15, %v14985_v12  ;;  %v7448_v34 = vpop.f32.mrb[191].mxu1  ;;  %10776 = vmatmul.mubr.msk.bf16.gmra.mrb[244].mxu1 %vm7977_vm5, %v15009_v56  ;;  %v7849_v21 = vmax.f32 %v7789_v27, 0.0 }
 0xc5a   : > { %v7788_v17 = vadd.f32 %v14985_v12, %v7448_v34  ;;  %10836 = vmatpush3.bf16.msra.mxu1 %v12153_v51  ;;  %v7847_v24 = vmax.f32 %v7787_v1, 0.0 }
 0xc5b   : > { %v7850_v2 = vmax.f32 %v7790_v30, 0.0  ;;  %10837 = vmatprep.subr.bf16.mxu1 %v12154_v47 }
 0xc5c   : > { %v7848_v42 = vmax.f32 %v7788_v17, 0.0 }
 0xc5d   : > { %v15027_v32 = vpack.c.bf16 %v7850_v2, %v7849_v21 }
 0xc5e   : > { %v15029_v23 = vpack.c.bf16 %v7848_v42, %v7847_v24  ;;  %v10713_v62 = vpop.f32.mrb[192].mxu1  ;;  %10838 = vmatpush3.bf16.msra.mxu1 %v12154_v47 }
 0xc5f   : > { %v7793_v63 = vadd.f32 %v10713_v62, %v14985_v12  ;;  %v7461_v20 = vpop.f32.mrb[193].mxu1  ;;  %10839 = vmatprep.subr.bf16.mxu1 %v12155_v11 }
 0xc60   : > { %v7791_v36 = vadd.f32 %v14985_v12, %v7461_v20  ;;  %v10714_v45 = vpop.f32.mrb[194].mxu1  ;;  %10779 = vmatprep.mubr.msk.bf16.mxu1 %vm7977_vm5, %v15029_v23 }
 0xc61   : > { %v7794_v25 = vadd.f32 %v10714_v45, %v14985_v12  ;;  %v7464_v22 = vpop.f32.mrb[195].mxu1  ;;  %10780 = vmatmul.mubr.msk.bf16.gmra.mrb[248].mxu1 %vm7977_vm5, %v15027_v32  ;;  %v7853_v9 = vmax.f32 %v7793_v63, 0.0 }
 0xc62   : > { %v7792_v46 = vadd.f32 %v14985_v12, %v7464_v22  ;;  %10840 = vmatpush3.bf16.msra.mxu1 %v12155_v11  ;;  %v7851_v5 = vmax.f32 %v7791_v36, 0.0 }
 0xc63   : > { %v7854_v14 = vmax.f32 %v7794_v25, 0.0  ;;  %10841 = vmatprep.subr.bf16.mxu1 %v12156_v44 }
 0xc64   : > { %v7852_v55 = vmax.f32 %v7792_v46, 0.0 }
 0xc65   : > { %v15042_v59 = vpack.c.bf16 %v7854_v14, %v7853_v9 }
 0xc66   : > { %v15044_v38 = vpack.c.bf16 %v7852_v55, %v7851_v5  ;;  %v10717_v10 = vpop.f32.mrb[196].mxu1  ;;  %10842 = vmatpush3.bf16.msra.mxu1 %v12156_v44 }
 0xc67   : > { %v7797_v39 = vadd.f32 %v10717_v10, %v14985_v12  ;;  %v7477_v43 = vpop.f32.mrb[197].mxu1 }
 0xc68   : > { %v7795_v60 = vadd.f32 %v14985_v12, %v7477_v43  ;;  %v10718_v0 = vpop.f32.mrb[198].mxu1  ;;  %10783 = vmatprep.mubr.msk.bf16.mxu1 %vm7977_vm5, %v15044_v38 }
 0xc69   : > { %v7798_v3 = vadd.f32 %v10718_v0, %v14985_v12  ;;  %v7480_v37 = vpop.f32.mrb[199].mxu1  ;;  %10784 = vmatmul.mubr.msk.bf16.gmra.mrb[252].mxu1 %vm7977_vm5, %v15042_v59  ;;  %v7857_v49 = vmax.f32 %v7797_v39, 0.0 }
 0xc6a   : > { %v7796_v13 = vadd.f32 %v14985_v12, %v7480_v37  ;;  %v7855_v18 = vmax.f32 %v7795_v60, 0.0 }
 0xc6b   : > { %v7858_v7 = vmax.f32 %v7798_v3, 0.0 }
 0xc6c   : > { %v7856_v19 = vmax.f32 %v7796_v13, 0.0 }
 0xc6d   : > { %v15054_v52 = vpack.c.bf16 %v7858_v7, %v7857_v49 }
 0xc6e   : > { %v15056_v16 = vpack.c.bf16 %v7856_v19, %v7855_v18  ;;  %v10721_v31 = vpop.f32.mrb[200].mxu1 }
 0xc6f   : > { %v7801_v57 = vadd.f32 %v10721_v31, %v14985_v12  ;;  %v7493_v6 = vpop.f32.mrb[201].mxu1 }
 0xc70   : > { %v7799_v8 = vadd.f32 %v14985_v12, %v7493_v6  ;;  %v10722_v35 = vpop.f32.mrb[202].mxu1  ;;  %10787 = vmatprep.mubr.msk.bf16.mxu1 %vm7977_vm5, %v15056_v16 }
 0xc71   : > { %v7802_v54 = vadd.f32 %v10722_v35, %v14985_v12  ;;  %v7496_v58 = vpop.f32.mrb[203].mxu1  ;;  %10788 = vmatmul.mubr.msk.bf16.gmra.mrb[0].mxu1 %vm7977_vm5, %v15054_v52  ;;  %v7861_v33 = vmax.f32 %v7801_v57, 0.0 }
 0xc72   : > { %v7800_v61 = vadd.f32 %v14985_v12, %v7496_v58  ;;  %v7859_v50 = vmax.f32 %v7799_v8, 0.0 }
 0xc73   : > { %v7862_v41 = vmax.f32 %v7802_v54, 0.0 }
 0xc74   : > { %v7860_v51 = vmax.f32 %v7800_v61, 0.0 }
 0xc75   : > { %v15066_v48 = vpack.c.bf16 %v7862_v41, %v7861_v33 }
 0xc76   : > { %v15068_v29 = vpack.c.bf16 %v7860_v51, %v7859_v50  ;;  %v10725_v26 = vpop.f32.mrb[204].mxu1 }
 0xc77   : > { %v7805_v27 = vadd.f32 %v10725_v26, %v14985_v12  ;;  %v7509_v53 = vpop.f32.mrb[205].mxu1 }
 0xc78   : > { %v7803_v47 = vadd.f32 %v14985_v12, %v7509_v53  ;;  %v10726_v1 = vpop.f32.mrb[206].mxu1  ;;  %10791 = vmatprep.mubr.msk.bf16.mxu1 %vm7977_vm5, %v15068_v29 }
 0xc79   : > { %v7806_v15 = vadd.f32 %v10726_v1, %v14985_v12  ;;  %v7512_v30 = vpop.f32.mrb[207].mxu1  ;;  %10792 = vmatmul.mubr.msk.bf16.gmra.mrb[4].mxu1 %vm7977_vm5, %v15066_v48  ;;  %v7865_v17 = vmax.f32 %v7805_v27, 0.0 }
 0xc7a   : > { %v7804_v34 = vadd.f32 %v14985_v12, %v7512_v30  ;;  %v7863_v2 = vmax.f32 %v7803_v47, 0.0 }
 0xc7b   : > { %v7866_v21 = vmax.f32 %v7806_v15, 0.0 }
 0xc7c   : > { %v7864_v11 = vmax.f32 %v7804_v34, 0.0 }
 0xc7d   : > { %v15078_v24 = vpack.c.bf16 %v7866_v21, %v7865_v17 }
 0xc7e   : > { %v15080_v42 = vpack.c.bf16 %v7864_v11, %v7863_v2  ;;  %v10729_v62 = vpop.f32.mrb[208].mxu1 }
 0xc7f   : > { %v7809_v63 = vadd.f32 %v10729_v62, %v14985_v12  ;;  %v7525_v20 = vpop.f32.mrb[209].mxu1 }
 0xc80   : > { %v7807_v44 = vadd.f32 %v14985_v12, %v7525_v20  ;;  %v10730_v36 = vpop.f32.mrb[210].mxu1  ;;  %10795 = vmatprep.mubr.msk.bf16.mxu1 %vm7977_vm5, %v15080_v42 }
 0xc81   : > { %v7810_v45 = vadd.f32 %v10730_v36, %v14985_v12  ;;  %v7528_v25 = vpop.f32.mrb[211].mxu1  ;;  %10796 = vmatmul.mubr.msk.bf16.gmra.mrb[8].mxu1 %vm7977_vm5, %v15078_v24  ;;  %v7869_v46 = vmax.f32 %v7809_v63, 0.0 }
 0xc82   : > { %v7808_v22 = vadd.f32 %v14985_v12, %v7528_v25  ;;  %v7867_v14 = vmax.f32 %v7807_v44, 0.0 }
 0xc83   : > { %v7870_v9 = vmax.f32 %v7810_v45, 0.0 }
 0xc84   : > { %v7868_v5 = vmax.f32 %v7808_v22, 0.0 }
 0xc85   : > { %v15090_v55 = vpack.c.bf16 %v7870_v9, %v7869_v46 }
 0xc86   : > { %v15092_v10 = vpack.c.bf16 %v7868_v5, %v7867_v14  ;;  %v10733_v39 = vpop.f32.mrb[212].mxu1 }
 0xc87   : > { %v7813_v43 = vadd.f32 %v10733_v39, %v14985_v12  ;;  %v7541_v60 = vpop.f32.mrb[213].mxu1 }
 0xc88   : > { %v7811_v0 = vadd.f32 %v14985_v12, %v7541_v60  ;;  %v10734_v3 = vpop.f32.mrb[214].mxu1  ;;  %10799 = vmatprep.mubr.msk.bf16.mxu1 %vm7977_vm5, %v15092_v10 }
 0xc89   : > { %v7814_v37 = vadd.f32 %v10734_v3, %v14985_v12  ;;  %v7544_v13 = vpop.f32.mrb[215].mxu1  ;;  %10800 = vmatmul.mubr.msk.bf16.gmra.mrb[12].mxu1 %vm7977_vm5, %v15090_v55  ;;  %v7873_v7 = vmax.f32 %v7813_v43, 0.0 }
 0xc8a   : > { %v7812_v49 = vadd.f32 %v14985_v12, %v7544_v13  ;;  %v7871_v19 = vmax.f32 %v7811_v0, 0.0 }
 0xc8b   : > { %v7874_v18 = vmax.f32 %v7814_v37, 0.0 }
 0xc8c   : > { %v7872_v31 = vmax.f32 %v7812_v49, 0.0 }
 0xc8d   : > { %v15102_v57 = vpack.c.bf16 %v7874_v18, %v7873_v7 }
 0xc8e   : > { %v15104_v6 = vpack.c.bf16 %v7872_v31, %v7871_v19  ;;  %v10737_v8 = vpop.f32.mrb[216].mxu1 }
 0xc8f   : > { %v7817_v35 = vadd.f32 %v10737_v8, %v14985_v12  ;;  %v7557_v54 = vpop.f32.mrb[217].mxu1 }
 0xc90   : > { %v7815_v58 = vadd.f32 %v14985_v12, %v7557_v54  ;;  %v10738_v61 = vpop.f32.mrb[218].mxu1  ;;  %10803 = vmatprep.mubr.msk.bf16.mxu1 %vm7977_vm5, %v15104_v6 }
 0xc91   : > { %v7818_v33 = vadd.f32 %v10738_v61, %v14985_v12  ;;  %v7560_v41 = vpop.f32.mrb[219].mxu1  ;;  %10804 = vmatmul.mubr.msk.bf16.gmra.mrb[16].mxu1 %vm7977_vm5, %v15102_v57  ;;  %v7877_v51 = vmax.f32 %v7817_v35, 0.0 }
 0xc92   : > { %v7816_v50 = vadd.f32 %v14985_v12, %v7560_v41  ;;  %v7875_v27 = vmax.f32 %v7815_v58, 0.0 }
 0xc93   : > { %v7878_v26 = vmax.f32 %v7818_v33, 0.0 }
 0xc94   : > { %v7876_v53 = vmax.f32 %v7816_v50, 0.0 }
 0xc95   : > { %v15114_v47 = vpack.c.bf16 %v7878_v26, %v7877_v51 }
 0xc96   : > { %v15116_v1 = vpack.c.bf16 %v7876_v53, %v7875_v27  ;;  %v10741_v15 = vpop.f32.mrb[220].mxu1 }
 0xc97   : > { %v7821_v30 = vadd.f32 %v10741_v15, %v14985_v12  ;;  %v7573_v34 = vpop.f32.mrb[221].mxu1 }
 0xc98   : > { %v7819_v17 = vadd.f32 %v14985_v12, %v7573_v34  ;;  %v10742_v21 = vpop.f32.mrb[222].mxu1  ;;  %10807 = vmatprep.mubr.msk.bf16.mxu1 %vm7977_vm5, %v15116_v1 }
 0xc99   : > { %v7822_v2 = vadd.f32 %v10742_v21, %v14985_v12  ;;  %v7576_v11 = vpop.f32.mrb[223].mxu1  ;;  %10808 = vmatmul.mubr.msk.bf16.gmra.mrb[20].mxu1 %vm7977_vm5, %v15114_v47  ;;  %v7881_v63 = vmax.f32 %v7821_v30, 0.0 }
 0xc9a   : > { %v7820_v62 = vadd.f32 %v14985_v12, %v7576_v11  ;;  %v7879_v44 = vmax.f32 %v7819_v17, 0.0 }
 0xc9b   : > { %v7882_v20 = vmax.f32 %v7822_v2, 0.0 }
 0xc9c   : > { %v7880_v36 = vmax.f32 %v7820_v62, 0.0 }
 0xc9d   : > { %v15126_v45 = vpack.c.bf16 %v7882_v20, %v7881_v63 }
 0xc9e   : > { %v15128_v25 = vpack.c.bf16 %v7880_v36, %v7879_v44  ;;  %v10745_v22 = vpop.f32.mrb[224].mxu1 }
 0xc9f   : > { %v7825_v46 = vadd.f32 %v10745_v22, %v14985_v12  ;;  %v7589_v9 = vpop.f32.mrb[225].mxu1 }
 0xca0   : > { %v7823_v14 = vadd.f32 %v14985_v12, %v7589_v9  ;;  %v10746_v5 = vpop.f32.mrb[226].mxu1  ;;  %10811 = vmatprep.mubr.msk.bf16.mxu1 %vm7977_vm5, %v15128_v25 }
 0xca1   : > { %v7826_v39 = vadd.f32 %v10746_v5, %v14985_v12  ;;  %v7592_v43 = vpop.f32.mrb[227].mxu1  ;;  %10812 = vmatmul.mubr.msk.bf16.gmra.mrb[24].mxu1 %vm7977_vm5, %v15126_v45  ;;  %v7885_v0 = vmax.f32 %v7825_v46, 0.0 }
 0xca2   : > { %v7824_v60 = vadd.f32 %v14985_v12, %v7592_v43  ;;  %v7883_v37 = vmax.f32 %v7823_v14, 0.0 }
 0xca3   : > { %v7886_v3 = vmax.f32 %v7826_v39, 0.0 }
 0xca4   : > { %v7884_v13 = vmax.f32 %v7824_v60, 0.0 }
 0xca5   : > { %v15138_v49 = vpack.c.bf16 %v7886_v3, %v7885_v0 }
 0xca6   : > { %v15140_v7 = vpack.c.bf16 %v7884_v13, %v7883_v37  ;;  %v10749_v18 = vpop.f32.mrb[228].mxu1 }
 0xca7   : > { %v7829_v19 = vadd.f32 %v10749_v18, %v14985_v12  ;;  %v7605_v31 = vpop.f32.mrb[229].mxu1 }
 0xca8   : > { %v7827_v8 = vadd.f32 %v14985_v12, %v7605_v31  ;;  %v10750_v35 = vpop.f32.mrb[230].mxu1  ;;  %10815 = vmatprep.mubr.msk.bf16.mxu1 %vm7977_vm5, %v15140_v7 }
 0xca9   : > { %v7830_v54 = vadd.f32 %v10750_v35, %v14985_v12  ;;  %v7608_v58 = vpop.f32.mrb[231].mxu1  ;;  %10816 = vmatmul.mubr.msk.bf16.gmra.mrb[28].mxu1 %vm7977_vm5, %v15138_v49  ;;  %v7889_v33 = vmax.f32 %v7829_v19, 0.0  ;;  %v12159_v35 = vld [vmem:[%s15450_s7 + $0x28] sm:$0xff]  }
 0xcaa   : > { %v7828_v61 = vadd.f32 %v14985_v12, %v7608_v58  ;;  %v7887_v50 = vmax.f32 %v7827_v8, 0.0 }
 0xcab   : > { %v7890_v41 = vmax.f32 %v7830_v54, 0.0 }
 0xcac   : > { %v7888_v51 = vmax.f32 %v7828_v61, 0.0 }
 0xcad   : > { %v15150_v26 = vpack.c.bf16 %v7890_v41, %v7889_v33 }
 0xcae   : > { %v7923_v27 = vpack.c.bf16 %v7888_v51, %v7887_v50  ;;  %v10753_v53 = vpop.f32.mrb[232].mxu1 }
 0xcaf   : > { %v7833_v15 = vadd.f32 %v10753_v53, %v14985_v12  ;;  %v7621_v30 = vpop.f32.mrb[233].mxu1 }
 0xcb0   : > { %v7831_v34 = vadd.f32 %v14985_v12, %v7621_v30  ;;  %v10754_v17 = vpop.f32.mrb[234].mxu1  ;;  %10819 = vmatprep.mubr.msk.bf16.mxu1 %vm7977_vm5, %v7923_v27 }
 0xcb1   : > { %v7834_v21 = vadd.f32 %v10754_v17, %v14985_v12  ;;  %v7624_v2 = vpop.f32.mrb[235].mxu1  ;;  %10820 = vmatmul.mubr.msk.bf16.gmra.mrb[32].mxu1 %vm7977_vm5, %v15150_v26  ;;  %v7893_v62 = vmax.f32 %v7833_v15, 0.0 }
 0xcb2   : > { %v7832_v11 = vadd.f32 %v14985_v12, %v7624_v2  ;;  %v7891_v20 = vmax.f32 %v7831_v34, 0.0 }
 0xcb3   : > { %v7894_v63 = vmax.f32 %v7834_v21, 0.0 }
 0xcb4   : > { %v7892_v44 = vmax.f32 %v7832_v11, 0.0 }
 0xcb5   : > { %v7926_v36 = vpack.c.bf16 %v7894_v63, %v7893_v62 }
 0xcb6   : > { %v7925_v22 = vpack.c.bf16 %v7892_v44, %v7891_v20  ;;  %v10757_v46 = vpop.f32.mrb[236].mxu1 }
 0xcb7   : > { %v7837_v9 = vadd.f32 %v10757_v46, %v14985_v12  ;;  %v7637_v14 = vpop.f32.mrb[237].mxu1 }
 0xcb8   : > { %v7835_v5 = vadd.f32 %v14985_v12, %v7637_v14  ;;  %v10758_v39 = vpop.f32.mrb[238].mxu1  ;;  %10823 = vmatprep.mubr.msk.bf16.mxu1 %vm7977_vm5, %v7925_v22 }
 0xcb9   : > { %v7838_v43 = vadd.f32 %v10758_v39, %v14985_v12  ;;  %v7640_v60 = vpop.f32.mrb[239].mxu1  ;;  %10824 = vmatmul.mubr.msk.bf16.gmra.mrb[36].mxu1 %vm7977_vm5, %v7926_v36  ;;  %v7897_v3 = vmax.f32 %v7837_v9, 0.0 }
 0xcba   : > { %v7836_v0 = vadd.f32 %v14985_v12, %v7640_v60  ;;  %v7895_v13 = vmax.f32 %v7835_v5, 0.0  ;;  %v12157_v12 = vld [vmem:[%s15450_s7 + $0x18] sm:$0xff]  }
 0xcbb   : > { %v7898_v37 = vmax.f32 %v7838_v43, 0.0  ;;  %10903 = vmatprep.subr.bf16.mxu1 %v12157_v12  ;;  %v15290_v43 = vld [vmem:[%s15450_s7 + $0x48] sm:$0xff]  }
 0xcbc   : > { %v7896_v18 = vmax.f32 %v7836_v0, 0.0 }
 0xcbd   : > { %v7928_v19 = vpack.c.bf16 %v7898_v37, %v7897_v3 }
 0xcbe   : > { %v7927_v31 = vpack.c.bf16 %v7896_v18, %v7895_v13 }
 0xcc0   : > { %10827 = vmatprep.mubr.msk.bf16.mxu1 %vm7977_vm5, %v7927_v31 }
 0xcc1   : > { %10828 = vmatmul.mubr.msk.bf16.gmra.mrb[40].mxu1 %vm7977_vm5, %v7928_v19 }
 0xcc2   : > { %10843 = vmatprep.mubr.msk.bf16.mxu1 %vm7977_vm5, %v14993_v4 }
 0xcc9   : > { %10844 = vmatmul.mubr.msk.bf16.vlgmr.msra.gmra.mrb[44].mxu1 %vm7977_vm5, %v14991_v28 }
 0xcca   : > { %10847 = vmatprep.mubr.msk.bf16.mxu1 %vm7977_vm5, %v15011_v40  ;;  %10904 = vmatpush3.bf16.msra.mxu1 %v12157_v12 }
 0xcd1   : > { %10848 = vmatmul.mubr.msk.bf16.gmra.mrb[48].mxu1 %vm7977_vm5, %v15009_v56 }
 0xcd2   : > { %10851 = vmatprep.mubr.msk.bf16.mxu1 %vm7977_vm5, %v15029_v23 }
 0xcd9   : > { %10852 = vmatmul.mubr.msk.bf16.gmra.mrb[52].mxu1 %vm7977_vm5, %v15027_v32 }
 0xcda   : > { %10855 = vmatprep.mubr.msk.bf16.mxu1 %vm7977_vm5, %v15044_v38 }
 0xce1   : > { %10856 = vmatmul.mubr.msk.bf16.gmra.mrb[56].mxu1 %vm7977_vm5, %v15042_v59 }
 0xce2   : > { %10859 = vmatprep.mubr.msk.bf16.mxu1 %vm7977_vm5, %v15056_v16 }
 0xce9   : > { %10860 = vmatmul.mubr.msk.bf16.gmra.mrb[60].mxu1 %vm7977_vm5, %v15054_v52 }
 0xcea   : > { %10863 = vmatprep.mubr.msk.bf16.mxu1 %vm7977_vm5, %v15068_v29 }
 0xcf1   : > { %10864 = vmatmul.mubr.msk.bf16.gmra.mrb[64].mxu1 %vm7977_vm5, %v15066_v48 }
 0xcf2   : > { %10867 = vmatprep.mubr.msk.bf16.mxu1 %vm7977_vm5, %v15080_v42 }
 0xcf9   : > { %10868 = vmatmul.mubr.msk.bf16.gmra.mrb[68].mxu1 %vm7977_vm5, %v15078_v24  ;;  %v12158_v24 = vld [vmem:[%s15450_s7 + $0x20] sm:$0xff]  }
 0xcfa   : > { %10871 = vmatprep.mubr.msk.bf16.mxu1 %vm7977_vm5, %v15092_v10  ;;  %10905 = vmatprep.subr.bf16.mxu1 %v12158_v24 }
 0xcfb   : > { %10906 = vmatpush3.bf16.msra.mxu1 %v12158_v24 }
 0xcfc   : > { %10907 = vmatprep.subr.bf16.mxu1 %v12159_v35 }
 0xcff   : > { %10908 = vmatpush3.bf16.msra.mxu1 %v12159_v35 }
 0xd00   : > { %10913 = vmatprep.subr.bf16.mxu1 %v15290_v43 }
 0xd01   : > { %10872 = vmatmul.mubr.msk.bf16.gmra.mrb[72].mxu1 %vm7977_vm5, %v15090_v55 }
 0xd02   : > { %10875 = vmatprep.mubr.msk.bf16.mxu1 %vm7977_vm5, %v15104_v6 }
 0xd09   : > { %10876 = vmatmul.mubr.msk.bf16.gmra.mrb[76].mxu1 %vm7977_vm5, %v15102_v57 }
 0xd0a   : > { %10879 = vmatprep.mubr.msk.bf16.mxu1 %vm7977_vm5, %v15116_v1 }
 0xd11   : > { %10880 = vmatmul.mubr.msk.bf16.gmra.mrb[80].mxu1 %vm7977_vm5, %v15114_v47 }
 0xd12   : > { %10883 = vmatprep.mubr.msk.bf16.mxu1 %vm7977_vm5, %v15128_v25 }
 0xd19   : > { %10884 = vmatmul.mubr.msk.bf16.gmra.mrb[84].mxu1 %vm7977_vm5, %v15126_v45 }
 0xd1a   : > { %10887 = vmatprep.mubr.msk.bf16.mxu1 %vm7977_vm5, %v15140_v7 }
 0xd21   : > { %10888 = vmatmul.mubr.msk.bf16.gmra.mrb[88].mxu1 %vm7977_vm5, %v15138_v49 }
 0xd22   : > { %10891 = vmatprep.mubr.msk.bf16.mxu1 %vm7977_vm5, %v7923_v27 }
 0xd24   : > { %v15219_v28 = vpop.f32.mrb[240].mxu1 }
 0xd25   : > { %v15221_v4 = vpop.f32.mrb[241].mxu1 }
 0xd26   : > { %v15223_v56 = vpop.f32.mrb[242].mxu1 }
 0xd27   : > { %v15225_v40 = vpop.f32.mrb[243].mxu1 }
 0xd29   : > { %10892 = vmatmul.mubr.msk.bf16.gmra.mrb[92].mxu1 %vm7977_vm5, %v15150_v26 }
 0xd2a   : > { %10895 = vmatprep.mubr.msk.bf16.mxu1 %vm7977_vm5, %v7925_v22 }
 0xd2c   : > { %v10777_v32 = vpop.f32.mrb[244].mxu1 }
 0xd2d   : > { %v8118_v23 = vpop.f32.mrb[245].mxu1 }
 0xd2e   : > { %v10778_v59 = vpop.f32.mrb[246].mxu1 }
 0xd2f   : > { %v8120_v38 = vpop.f32.mrb[247].mxu1 }
 0xd31   : > { %10896 = vmatmul.mubr.msk.bf16.gmra.mrb[96].mxu1 %vm7977_vm5, %v7926_v36 }
 0xd32   : > { %10899 = vmatprep.mubr.msk.bf16.mxu1 %vm7977_vm5, %v7927_v31 }
 0xd34   : > { %v15232_v52 = vpop.f32.mrb[248].mxu1 }
 0xd35   : > { %v15234_v16 = vpop.f32.mrb[249].mxu1 }
 0xd36   : > { %v15236_v48 = vpop.f32.mrb[250].mxu1 }
 0xd37   : > { %v15238_v29 = vpop.f32.mrb[251].mxu1 }
 0xd39   : > { %10900 = vmatmul.mubr.msk.bf16.gmra.mrb[100].mxu1 %vm7977_vm5, %v7928_v19 }
 0xd3c   : > { %v10785_v42 = vpop.f32.mrb[252].mxu1 }
 0xd3d   : > { %v8146_v55 = vpop.f32.mrb[253].mxu1 }
 0xd3e   : > { %v10786_v10 = vpop.f32.mrb[254].mxu1 }
 0xd3f   : > { %v8148_v57 = vpop.f32.mrb[255].mxu1 }
 0xd44   : > { %v15244_v6 = vpop.f32.mrb[0].mxu1 }
 0xd45   : > { %v15246_v47 = vpop.f32.mrb[1].mxu1 }
 0xd46   : > { %v15248_v1 = vpop.f32.mrb[2].mxu1 }
 0xd47   : > { %v15250_v45 = vpop.f32.mrb[3].mxu1 }
 0xd4c   : > { %v10793_v25 = vpop.f32.mrb[4].mxu1 }
 0xd4d   : > { %v8174_v49 = vpop.f32.mrb[5].mxu1 }
 0xd4e   : > { %v10794_v7 = vpop.f32.mrb[6].mxu1 }
 0xd4f   : > { %v8176_v8 = vpop.f32.mrb[7].mxu1 }
 0xd54   : > { %v15255_v54 = vpop.f32.mrb[8].mxu1 }
 0xd55   : > { %v15257_v58 = vpop.f32.mrb[9].mxu1 }
 0xd56   : > { %v15259_v61 = vpop.f32.mrb[10].mxu1 }
 0xd57   : > { %v15261_v33 = vpop.f32.mrb[11].mxu1 }
 0xd5c   : > { %v10801_v41 = vpop.f32.mrb[12].mxu1 }
 0xd5d   : > { %v8202_v50 = vpop.f32.mrb[13].mxu1 }
 0xd5e   : > { %v10802_v51 = vpop.f32.mrb[14].mxu1 }
 0xd5f   : > { %v8204_v26 = vpop.f32.mrb[15].mxu1 }
 0xd64   : > { %v15263_v27 = vpop.f32.mrb[16].mxu1 }
 0xd65   : > { %v15265_v53 = vpop.f32.mrb[17].mxu1 }
 0xd66   : > { %v15267_v15 = vpop.f32.mrb[18].mxu1 }
 0xd67   : > { %v15269_v30 = vpop.f32.mrb[19].mxu1 }
 0xd6c   : > { %v10809_v34 = vpop.f32.mrb[20].mxu1 }
 0xd6d   : > { %v8230_v17 = vpop.f32.mrb[21].mxu1 }
 0xd6e   : > { %v10810_v21 = vpop.f32.mrb[22].mxu1 }
 0xd6f   : > { %v8232_v2 = vpop.f32.mrb[23].mxu1 }
 0xd74   : > { %v15271_v11 = vpop.f32.mrb[24].mxu1 }
 0xd75   : > { %v15273_v62 = vpop.f32.mrb[25].mxu1 }
 0xd76   : > { %v15275_v63 = vpop.f32.mrb[26].mxu1 }
 0xd77   : > { %v15277_v20 = vpop.f32.mrb[27].mxu1 }
 0xd7c   : > { %v10817_v44 = vpop.f32.mrb[28].mxu1 }
 0xd7d   : > { %v8258_v36 = vpop.f32.mrb[29].mxu1 }
 0xd7e   : > { %v10818_v22 = vpop.f32.mrb[30].mxu1 }
 0xd7f   : > { %v8260_v46 = vpop.f32.mrb[31].mxu1 }
 0xd84   : > { %v15279_v9 = vpop.f32.mrb[32].mxu1 }
 0xd85   : > { %v15281_v14 = vpop.f32.mrb[33].mxu1 }
 0xd86   : > { %v15283_v5 = vpop.f32.mrb[34].mxu1 }
 0xd87   : > { %v15285_v39 = vpop.f32.mrb[35].mxu1 }
 0xd8c   : > { %v10825_v60 = vpop.f32.mrb[36].mxu1 }
 0xd8d   : > { %v8286_v0 = vpop.f32.mrb[37].mxu1 }
 0xd8e   : > { %v10826_v3 = vpop.f32.mrb[38].mxu1 }
 0xd8f   : > { %v8288_v37 = vpop.f32.mrb[39].mxu1 }
 0xd94   : > { %v15293_v13 = vpop.f32.mrb[40].mxu1 }
 0xd95   : > { %v15295_v18 = vpop.f32.mrb[41].mxu1 }
 0xd96   : > { %v15297_v19 = vpop.f32.mrb[42].mxu1 }
 0xd97   : > { %v15299_v31 = vpop.f32.mrb[43].mxu1 }
 0xd9c   : > { %v10845_v12 = vpop.f32.mrb[44].mxu1 }
 0xd9d   : > { %v8609_v32 = vmax.f32 %v15219_v28, %v10845_v12  ;;  %v8396_v23 = vpop.f32.mrb[45].mxu1 }
 0xd9e   : > { %v8607_v59 = vmax.f32 %v15221_v4, %v8396_v23  ;;  %v10846_v38 = vpop.f32.mrb[46].mxu1 }
 0xd9f   : > { %v8610_v24 = vmax.f32 %v15223_v56, %v10846_v38  ;;  %v8399_v42 = vpop.f32.mrb[47].mxu1 }
 0xda0   : > { %v8608_v55 = vmax.f32 %v15225_v40, %v8399_v42 }
 0xda4   : > { %v10849_v10 = vpop.f32.mrb[48].mxu1 }
 0xda5   : > { %v8412_v57 = vpop.f32.mrb[49].mxu1 }
 0xda6   : > { %v10850_v25 = vpop.f32.mrb[50].mxu1 }
 0xda7   : > { %v8414_v49 = vpop.f32.mrb[51].mxu1 }
 0xdac   : > { %v10853_v7 = vpop.f32.mrb[52].mxu1 }
 0xdad   : > { %v8613_v8 = vmax.f32 %v15232_v52, %v10853_v7  ;;  %v8424_v35 = vpop.f32.mrb[53].mxu1 }
 0xdae   : > { %v8611_v41 = vmax.f32 %v15234_v16, %v8424_v35  ;;  %v10854_v28 = vpop.f32.mrb[54].mxu1 }
 0xdaf   : > { %v15307_v50 = vmax.f32 %v8609_v32, %v8613_v8  ;;  %v8614_v4 = vmax.f32 %v15236_v48, %v10854_v28  ;;  %v8427_v51 = vpop.f32.mrb[55].mxu1 }
 0xdb0   : > { %v15310_v56 = vmax.f32 %v8607_v59, %v8611_v41  ;;  %v8612_v40 = vmax.f32 %v15238_v29, %v8427_v51  ;;  %v12163_v51 = vld [vmem:[%s15450_s7] sm:$0xff]  }
 0xdb1   : > { %v15313_v26 = vmax.f32 %v8610_v24, %v8614_v4 }
 0xdb2   : > { %v15315_v34 = vmax.f32 %v8608_v55, %v8612_v40 }
 0xdb3   : > { %v8656_v52 = vpack.c.bf16 %v15313_v26, %v15307_v50  ;;  %v12170_v50 = vld [vmem:[%s15452_s9 + $0x8] sm:$0xff]   ;;  %v12171_v26 = vld [vmem:[%s15452_s9 + $0x10] sm:$0xff]  }
 0xdb4   : > { %v8655_v16 = vpack.c.bf16 %v15315_v34, %v15310_v56  ;;  %v10857_v17 = vpop.f32.mrb[56].mxu1  ;;  %v12169_v56 = vld [vmem:[%s15452_s9] sm:$0xff]   ;;  %v12172_v34 = vld [vmem:[%s15452_s9 + $0x18] sm:$0xff]  }
 0xdb5   : > { %v8440_v21 = vpop.f32.mrb[57].mxu1 }
 0xdb6   : > { %v10858_v2 = vpop.f32.mrb[58].mxu1 }
 0xdb7   : > { %v8442_v44 = vpop.f32.mrb[59].mxu1 }
 0xdbc   : > { %v10861_v48 = vpop.f32.mrb[60].mxu1 }
 0xdbd   : > { %v8617_v36 = vmax.f32 %v15244_v6, %v10861_v48  ;;  %v8452_v22 = vpop.f32.mrb[61].mxu1 }
 0xdbe   : > { %v8615_v29 = vmax.f32 %v15246_v47, %v8452_v22  ;;  %v10862_v46 = vpop.f32.mrb[62].mxu1 }
 0xdbf   : > { %v8618_v60 = vmax.f32 %v15248_v1, %v10862_v46  ;;  %v8455_v0 = vpop.f32.mrb[63].mxu1 }
 0xdc0   : > { %v8616_v3 = vmax.f32 %v15250_v45, %v8455_v0 }
 0xdc4   : > { %v10865_v37 = vpop.f32.mrb[64].mxu1 }
 0xdc5   : > { %v8468_v12 = vpop.f32.mrb[65].mxu1 }
 0xdc6   : > { %v10866_v32 = vpop.f32.mrb[66].mxu1 }
 0xdc7   : > { %v8470_v23 = vpop.f32.mrb[67].mxu1 }
 0xdcc   : > { %v10869_v59 = vpop.f32.mrb[68].mxu1 }
 0xdcd   : > { %v8621_v38 = vmax.f32 %v15255_v54, %v10869_v59  ;;  %v8480_v24 = vpop.f32.mrb[69].mxu1  ;;  %v12161_v54 = vld [vmem:[%s15450_s7 + $0x50] sm:$0xff]  }
 0xdce   : > { %v8619_v42 = vmax.f32 %v15257_v58, %v8480_v24  ;;  %v10870_v6 = vpop.f32.mrb[70].mxu1 }
 0xdcf   : > { %v8645_v55 = vmax.f32 %v8617_v36, %v8621_v38  ;;  %v8622_v47 = vmax.f32 %v15259_v61, %v10870_v6  ;;  %v8483_v10 = vpop.f32.mrb[71].mxu1  ;;  %v12162_v61 = vld [vmem:[%s15450_s7 + $0x58] sm:$0xff]  }
 0xdd0   : > { %v8643_v57 = vmax.f32 %v8615_v29, %v8619_v42  ;;  %v8620_v1 = vmax.f32 %v15261_v33, %v8483_v10 }
 0xdd1   : > { %v8646_v25 = vmax.f32 %v8618_v60, %v8622_v47 }
 0xdd2   : > { %v8644_v45 = vmax.f32 %v8616_v3, %v8620_v1 }
 0xdd3   : > { %v8658_v49 = vpack.c.bf16 %v8646_v25, %v8645_v55 }
 0xdd4   : > { %v8657_v7 = vpack.c.bf16 %v8644_v45, %v8643_v57  ;;  %v10873_v8 = vpop.f32.mrb[72].mxu1 }
 0xdd5   : > { %v8496_v35 = vpop.f32.mrb[73].mxu1 }
 0xdd6   : > { %v10874_v58 = vpop.f32.mrb[74].mxu1  ;;  %10909 = vmatprep.mubr.msk.bf16.mxu1 %vm8694_vm6, %v8657_v7 }
 0xdd7   : > { %v8498_v41 = vpop.f32.mrb[75].mxu1  ;;  %10910 = vmatmul.mubr.msk.bf16.vlgmr.msra.gmra.mrb[104].mxu1 %vm8694_vm6, %v8658_v49 }
 0xdd8   : > { %10914 = vmatpush3.bf16.msra.mxu1 %v15290_v43 }
 0xdd9   : > { %10915 = vmatprep.subr.bf16.mxu1 %v12161_v54 }
 0xddc   : > { %v10877_v33 = vpop.f32.mrb[76].mxu1  ;;  %10916 = vmatpush3.bf16.msra.mxu1 %v12161_v54 }
 0xddd   : > { %v8625_v28 = vmax.f32 %v15263_v27, %v10877_v33  ;;  %v8508_v4 = vpop.f32.mrb[77].mxu1  ;;  %10917 = vmatprep.subr.bf16.mxu1 %v12162_v61 }
 0xdde   : > { %v8623_v40 = vmax.f32 %v15265_v53, %v8508_v4  ;;  %v10878_v17 = vpop.f32.mrb[78].mxu1 }
 0xddf   : > { %v8626_v43 = vmax.f32 %v15267_v15, %v10878_v17  ;;  %v8511_v21 = vpop.f32.mrb[79].mxu1  ;;  %v12176_v17 = vld [vmem:[%s15452_s9 + $0x38] ss:$0 sps:$4 sm:$0xff]  }
 0xde0   : > { %v8624_v2 = vmax.f32 %v15269_v30, %v8511_v21  ;;  %10918 = vmatpush3.bf16.msra.mxu1 %v12162_v61  ;;  %v12177_v21 = vld [vmem:[%s15454_s11] sm:$0xff]  }
 0xde1   : > { %10923 = vmatprep.subr.bf16.mxu1 %v12163_v51 }
 0xde4   : > { %v10881_v44 = vpop.f32.mrb[80].mxu1 }
 0xde5   : > { %v8524_v48 = vpop.f32.mrb[81].mxu1 }
 0xde6   : > { %v10882_v36 = vpop.f32.mrb[82].mxu1 }
 0xde7   : > { %v8526_v27 = vpop.f32.mrb[83].mxu1 }
 0xdec   : > { %v10885_v22 = vpop.f32.mrb[84].mxu1 }
 0xded   : > { %v8629_v29 = vmax.f32 %v15271_v11, %v10885_v22  ;;  %v8536_v46 = vpop.f32.mrb[85].mxu1 }
 0xdee   : > { %v8627_v60 = vmax.f32 %v15273_v62, %v8536_v46  ;;  %v10886_v0 = vpop.f32.mrb[86].mxu1 }
 0xdef   : > { %v15347_v53 = vmax.f32 %v8625_v28, %v8629_v29  ;;  %v8630_v15 = vmax.f32 %v15275_v63, %v10886_v0  ;;  %v8539_v3 = vpop.f32.mrb[87].mxu1 }
 0xdf0   : > { %v8647_v37 = vmax.f32 %v8623_v40, %v8627_v60  ;;  %v8628_v30 = vmax.f32 %v15277_v20, %v8539_v3  ;;  %v12164_v40 = vld [vmem:[%s15450_s7 + $0x8] sm:$0xff]  }
 0xdf1   : > { %v8650_v12 = vmax.f32 %v8626_v43, %v8630_v15  ;;  %v9079_v43 = vsel %vm6085_vm3, %v12176_v17, 0 }
 0xdf2   : > { %v8648_v32 = vmax.f32 %v8624_v2, %v8628_v30  ;;  %v10105_v2 = vld [vmem:[%s15451_s8] ss:$0 sm:$0xff] }
 0xdf3   : > { %v8660_v23 = vpack.c.bf16 %v8650_v12, %v15347_v53  ;;  %v12178_v12 = vld [vmem:[%s15454_s11 + $0x8] sm:$0xff]  }
 0xdf4   : > { %v8659_v59 = vpack.c.bf16 %v8648_v32, %v8647_v37  ;;  %v10889_v38 = vpop.f32.mrb[88].mxu1  ;;  %v12179_v32 = vld [vmem:[%s15454_s11 + $0x10] sm:$0xff]  }
 0xdf5   : > { %v8552_v24 = vpop.f32.mrb[89].mxu1  ;;  %v10106_v38 = vld [vmem:[%s15453_s10] ss:$0 sm:$0xff] }
 0xdf6   : > { %v10890_v11 = vpop.f32.mrb[90].mxu1 }
 0xdf7   : > { %v8554_v42 = vpop.f32.mrb[91].mxu1 }
 0xdfc   : > { %v10893_v6 = vpop.f32.mrb[92].mxu1 }
 0xdfd   : > { %v8633_v62 = vmax.f32 %v15279_v9, %v10893_v6  ;;  %v8564_v55 = vpop.f32.mrb[93].mxu1 }
 0xdfe   : > { %v8631_v47 = vmax.f32 %v15281_v14, %v8564_v55  ;;  %v10894_v63 = vpop.f32.mrb[94].mxu1 }
 0xdff   : > { %v8634_v10 = vmax.f32 %v15283_v5, %v10894_v63  ;;  %v8567_v57 = vpop.f32.mrb[95].mxu1 }
 0xe00   : > { %v8632_v20 = vmax.f32 %v15285_v39, %v8567_v57 }
 0xe04   : > { %v10897_v1 = vpop.f32.mrb[96].mxu1 }
 0xe05   : > { %v8580_v25 = vpop.f32.mrb[97].mxu1 }
 0xe06   : > { %v10898_v45 = vpop.f32.mrb[98].mxu1 }
 0xe07   : > { %v8582_v49 = vpop.f32.mrb[99].mxu1 }
 0xe08   : > { %v10117_v49 = vld [vmem:[%s15455_s12] ss:$0 sm:$0xff] }
 0xe0c   : > { %v10901_v7 = vpop.f32.mrb[100].mxu1 }
 0xe0d   : > { %v8637_v8 = vmax.f32 %v15293_v13, %v10901_v7  ;;  %v8592_v35 = vpop.f32.mrb[101].mxu1  ;;  %v12165_v13 = vld [vmem:[%s15450_s7 + $0x10] sm:$0xff]  }
 0xe0e   : > { %v8635_v54 = vmax.f32 %v15295_v18, %v8592_v35  ;;  %v10902_v9 = vpop.f32.mrb[102].mxu1  ;;  %v12166_v18 = vld [vmem:[%s15450_s7 + $0x30] sm:$0xff]  }
 0xe0f   : > { %v8653_v58 = vmax.f32 %v8633_v62, %v8637_v8  ;;  %v8638_v14 = vmax.f32 %v15297_v19, %v10902_v9  ;;  %v8595_v41 = vpop.f32.mrb[103].mxu1  ;;  %v12167_v19 = vld [vmem:[%s15450_s7 + $0x38] sm:$0xff]  }
 0xe10   : > { %v8651_v61 = vmax.f32 %v8631_v47, %v8635_v54  ;;  %v8636_v5 = vmax.f32 %v15299_v31, %v8595_v41  ;;  %v12168_v31 = vld [vmem:[%s15450_s7 + $0x40] sm:$0xff]  }
 0xe11   : > { %v8654_v33 = vmax.f32 %v8634_v10, %v8638_v14 }
 0xe12   : > { %v8652_v39 = vmax.f32 %v8632_v20, %v8636_v5 }
 0xe13   : > { %v8662_v28 = vpack.c.bf16 %v8654_v33, %v8653_v58 }
 0xe14   : > { %v8661_v4 = vpack.c.bf16 %v8652_v39, %v8651_v61 }
 0xe16   : > { %10919 = vmatprep.mubr.msk.bf16.mxu1 %vm8694_vm6, %v8661_v4 }
 0xe17   : > { %10920 = vmatmul.mubr.msk.bf16.vlgmr.msra.gmra.mrb[104].mxu1 %vm8694_vm6, %v8662_v28 }
 0xe18   : > { %10924 = vmatpush3.bf16.msra.mxu1 %v12163_v51  ;;  %10929 = vmatprep.mubr.msk.bf16.mxu1 %vm8694_vm6, %v8655_v16  ;;  %v12174_v16 = vld [vmem:[%s15452_s9 + $0x28] sm:$0xff]   ;;  %v12175_v51 = vld [vmem:[%s15452_s9 + $0x30] sm:$0xff]  }
 0xe19   : > { %10925 = vmatprep.subr.bf16.mxu1 %v12164_v40 }
 0xe1c   : > { %10926 = vmatpush3.bf16.msra.mxu1 %v12164_v40 }
 0xe1d   : > { %10927 = vmatprep.subr.bf16.mxu1 %v12165_v13 }
 0xe20   : > { %10928 = vmatpush3.bf16.msra.mxu1 %v12165_v13 }
 0xe21   : > { %10933 = vmatprep.subr.bf16.mxu1 %v12166_v18 }
 0xe23   : > { %10930 = vmatmul.mubr.msk.bf16.vlgmr.msra.gmra.mrb[104].mxu1 %vm8694_vm6, %v8656_v52  ;;  %v12173_v52 = vld [vmem:[%s15452_s9 + $0x20] sm:$0xff]  }
 0xe24   : > { %10934 = vmatpush3.bf16.msra.mxu1 %v12166_v18  ;;  %10939 = vmatprep.mubr.msk.bf16.mxu1 %vm8694_vm6, %v8659_v59 }
 0xe25   : > { %10935 = vmatprep.subr.bf16.mxu1 %v12167_v19 }
 0xe28   : > { %10936 = vmatpush3.bf16.msra.mxu1 %v12167_v19 }
 0xe29   : > { %10937 = vmatprep.subr.bf16.mxu1 %v12168_v31 }
 0xe2c   : > { %10938 = vmatpush3.bf16.msra.mxu1 %v12168_v31 }
 0xe2d   : > { %10943 = vmatprep.subr.bf16.mxu1 %v12169_v56 }
 0xe2f   : > { %10940 = vmatmul.mubr.msk.bf16.vlgmr.msra.gmra.mrb[104].mxu1 %vm8694_vm6, %v8660_v23  ;;  %v12180_v23 = vld [vmem:[%s15454_s11 + $0x18] sm:$0x3f]  }
 0xe30   : > { %10944 = vmatpush3.bf16.msra.mxu1 %v12169_v56  ;;  %v9182_v59 = vsel %vm967_vm0, %v12180_v23, 0 }
 0xe31   : > { %10945 = vmatprep.subr.bf16.mxu1 %v12170_v50 }
 0xe34   : > { %10946 = vmatpush3.bf16.msra.mxu1 %v12170_v50 }
 0xe35   : > { %10947 = vmatprep.subr.bf16.mxu1 %v12171_v26 }
 0xe38   : > { %10948 = vmatpush3.bf16.msra.mxu1 %v12171_v26 }
 0xe39   : > { %10949 = vmatprep.subr.bf16.mxu1 %v12172_v34 }
 0xe3c   : > { %10950 = vmatpush3.bf16.msra.mxu1 %v12172_v34 }
 0xe3d   : > { %10951 = vmatprep.subr.bf16.mxu1 %v12173_v52 }
 0xe40   : > { %10952 = vmatpush3.bf16.msra.mxu1 %v12173_v52 }
 0xe41   : > { %10953 = vmatprep.subr.bf16.mxu1 %v12174_v16 }
 0xe44   : > { %10954 = vmatpush3.bf16.msra.mxu1 %v12174_v16 }
 0xe45   : > { %10955 = vmatprep.subr.bf16.mxu1 %v12175_v51 }
 0xe48   : > { %10956 = vmatpush3.bf16.msra.mxu1 %v12175_v51 }
 0xe49   : > { %12004 = vmatprep.subr.msk.bf16.mxu1 %vm6085_vm3, %v12176_v17 }
 0xe4c   : > { %10958 = vmatpush3.bf16.msra.mxu1 %v9079_v43 }
 0xe4d   : > { %10963 = vmatprep.subr.bf16.mxu1 %v12177_v21 }
 0xf02   : > { %v10941_v44 = vpop.f32.mrb[104].mxu1 }
 0xf03   : > { %v8996_v48 = vadd.f32 %v10941_v44, %v10105_v2  ;;  %v8968_v36 = vpop.f32.mrb[105].mxu1 }
 0xf04   : > { %v8994_v27 = vadd.f32 %v10105_v2, %v8968_v36  ;;  %v10942_v22 = vpop.f32.mrb[106].mxu1 }
 0xf05   : > { %v8997_v29 = vadd.f32 %v10942_v22, %v10105_v2  ;;  %v8971_v46 = vpop.f32.mrb[107].mxu1  ;;  %v9000_v0 = vmax.f32 %v8996_v48, 0.0 }
 0xf06   : > { %v8995_v60 = vadd.f32 %v10105_v2, %v8971_v46  ;;  %v8998_v15 = vmax.f32 %v8994_v27, 0.0 }
 0xf07   : > { %v9001_v53 = vmax.f32 %v8997_v29, 0.0 }
 0xf08   : > { %v8999_v3 = vmax.f32 %v8995_v60, 0.0 }
 0xf09   : > { %v9003_v37 = vpack.c.bf16 %v9001_v53, %v9000_v0 }
 0xf0a   : > { %v9002_v30 = vpack.c.bf16 %v8999_v3, %v8998_v15 }
 0xf0c   : > { %10959 = vmatprep.mubr.msk.bf16.mxu1 %vm9071_vm7, %v9002_v30 }
 0xf0d   : > { %10960 = vmatmul.mubr.msk.bf16.vlgmr.msra.gmra.mrb[108].mxu1 %vm9071_vm7, %v9003_v37 }
 0xf0e   : > { %10964 = vmatpush3.bf16.msra.mxu1 %v12177_v21 }
 0xf0f   : > { %10965 = vmatprep.subr.bf16.mxu1 %v12178_v12 }
 0xf12   : > { %10966 = vmatpush3.bf16.msra.mxu1 %v12178_v12 }
 0xf13   : > { %10967 = vmatprep.subr.bf16.mxu1 %v12179_v32 }
 0xf16   : > { %10968 = vmatpush3.bf16.msra.mxu1 %v12179_v32 }
 0xf17   : > { %12005 = vmatprep.subr.msk.bf16.mxu1 %vm967_vm0, %v12180_v23 }
 0xf1a   : > { %10970 = vmatpush3.bf16.msra.mxu1 %v9182_v59 }
 0xfe0   : > { %v10961_v24 = vpop.f32.mrb[108].mxu1 }
 0xfe1   : > { %v9124_v11 = vadd.f32 %v10961_v24, %v10106_v38  ;;  %v9115_v42 = vpop.f32.mrb[109].mxu1 }
 0xfe2   : > { %v9116_v6 = vadd.f32 %v10106_v38, %v9115_v42  ;;  %v10962_v62 = vpop.f32.mrb[110].mxu1 }
 0xfe3   : > { %v9127_v55 = vadd.f32 %v10962_v62, %v10106_v38  ;;  %v9118_v47 = vpop.f32.mrb[111].mxu1  ;;  %v9132_v10 = vmax.f32 %v9124_v11, 0.0 }
 0xfe4   : > { %v9119_v63 = vadd.f32 %v10106_v38, %v9118_v47  ;;  %v9130_v20 = vmax.f32 %v9116_v6, 0.0 }
 0xfe5   : > { %v9133_v57 = vmax.f32 %v9127_v55, 0.0 }
 0xfe6   : > { %v9131_v1 = vmax.f32 %v9119_v63, 0.0 }
 0xfe7   : > { %v9135_v25 = vpack.c.bf16 %v9133_v57, %v9132_v10 }
 0xfe8   : > { %v9134_v45 = vpack.c.bf16 %v9131_v1, %v9130_v20 }
 0xfea   : > { %10971 = vmatprep.mubr.msk.bf16.mxu1 %vm9174_vm8, %v9134_v45 }
 0xfeb   : > { %10972 = vmatmul.mubr.msk.bf16.vlgmr.msra.gmra.mrb[112].mxu1 %vm9174_vm8, %v9135_v25 }
0x10be   : > { %v10973_v7 = vpop.f32.mrb[112].mxu1 }
0x10bf   : > { %v9218_v8 = vpop.f32.mrb[113].mxu1  ;;  %v9227_v14 = vadd.f32 %v10973_v7, %v10117_v49 }
0x10c0   : > { %v9219_v35 = vadd.f32 %v10117_v49, %v9218_v8  ;;  %v10974_v54 = vpop.f32.mrb[114].mxu1 }
0x10c1   : > { %v9221_v9 = vpop.f32.mrb[115].mxu1  ;;  %v9230_v41 = vadd.f32 %v10974_v54, %v10117_v49  ;;  %9236 = vst.msk [vmem:[%s440_s20 + $0x10] sm:$0xff] %vm9233_vm9, %v9227_v14 }
0x10c2   : > { %9234 = vst.msk [vmem:[%s440_s20] sm:$0xff] %vm9233_vm9, %v9219_v35  ;;  %v9222_v58 = vadd.f32 %v10117_v49, %v9221_v9 }
0x10c3   : > { %9237 = vst.msk [vmem:[%s440_s20 + $0x18] sm:$0xff] %vm9233_vm9, %v9230_v41 }
0x10c4   : > { %9235 = vst.msk [vmem:[%s440_s20 + $0x8] sm:$0xff] %vm9233_vm9, %v9222_v58 }
0x10c5 PF: > { %s23_s25 = sadd.s32 1, %s12218_s25  }
0x10c6   : > { %p20_p5 = scmp.ge.s32.totalorder %s23_s25, 4  }
0x10c8   :  { %22 = sbr.rel (!%p20_p5) target bundleno = 1 (0x1), region = 115 }

</bundles_post_ra>
